<compile_context>
chip_gen: v6e
topology: v6e:2x2x1
jax: 0.10.0
libtpu: 0.0.40
codegen_flags: <defaults>
</compile_context>

<pallas_src>
import jax
import jax.numpy as jnp
from jax.experimental import pallas as pl
from jax.experimental.pallas import tpu as pltpu


LANE = 128


def _round_up(x, m):
    return (x + m - 1) // m * m


# ---------------------------------------------------------------------------
# Layout plumbing: spatial pad + stride-phase split (1x traffic, done once)
# ---------------------------------------------------------------------------
def _phase_split(x_nhwc, pad, stride, pad_value):
    """Pad spatially and split into stride*stride phase grids.

    Returns (phases, Hq, Wq) where phases has shape (N*stride*stride, Hq, Wq, C)
    and row n*stride*stride + (pr*stride + pc) holds
    x_padded[n, pr::stride, pc::stride, :].  With this layout every conv/pool
    tap (kh, kw) becomes a *contiguous* slice of one phase.
    """
    N, H, W, C = x_nhwc.shape
    s = stride
    xp = jnp.pad(x_nhwc, ((0, 0), (pad, pad), (pad, pad), (0, 0)),
                 constant_values=pad_value)
    Hp, Wp = H + 2 * pad, W + 2 * pad
    eh, ew = (-Hp) % s, (-Wp) % s          # align to the stride (never read)
    if eh or ew:
        xp = jnp.pad(xp, ((0, 0), (0, eh), (0, ew), (0, 0)),
                     constant_values=pad_value)
        Hp, Wp = Hp + eh, Wp + ew
    Hq, Wq = Hp // s, Wp // s
    if s == 1:
        ph = xp[:, None]
    else:
        ph = jnp.stack([xp[:, pr::s, pc::s, :]
                        for pr in range(s) for pc in range(s)], axis=1)
    return ph.reshape(N * s * s, Hq, Wq, C), Hq, Wq


# ---------------------------------------------------------------------------
# Fused conv kernel: K*K shifted matmuls accumulated in f32 on the MXU
# ---------------------------------------------------------------------------
def _make_conv_kernel(KH, KW, stride, Ho, Wo, Cout_p):
    s = stride

    def kernel(x_ref, w_ref, o_ref):
        # x_ref: (s*s, Hq, Wq, Cin) f32   -- phase-split padded input, 1 batch
        # w_ref: (KH*KW, Cin, Cout_p) bf16
        # o_ref: (1, Ho, Wo, Cout_p)      -- lane-dense (Cout_p % 128 == 0)
        cin = x_ref.shape[-1]
        acc = jnp.zeros((Ho * Wo, Cout_p), jnp.float32)
        for kh in range(KH):
            for kw in range(KW):
                q = (kh % s) * s + (kw % s)        # phase holding this tap
                ro, co = kh // s, kw // s          # offsets within the phase
                a = x_ref[q, ro:ro + Ho, co:co + Wo, :]      # (Ho, Wo, Cin)
                a = a.reshape(Ho * Wo, cin).astype(jnp.bfloat16)
                acc += jnp.dot(a, w_ref[kh * KW + kw],
                               preferred_element_type=jnp.float32)
        o_ref[...] = acc.reshape(1, Ho, Wo, Cout_p).astype(o_ref.dtype)

    return kernel


def conv2d_pallas(x_nhwc, w_oihw, stride, pad, out_dtype=jnp.float32):
    """Conv2d (no bias), PyTorch semantics. Activations NHWC, weight OIHW."""
    N, H, W, Cin = x_nhwc.shape
    Cout, Cin_w, KH, KW = w_oihw.shape
    assert Cin == Cin_w, (Cin, Cin_w)
    Ho = (H + 2 * pad - KH) // stride + 1
    Wo = (W + 2 * pad - KW) // stride + 1
    Cout_p = _round_up(Cout, LANE)
    s2 = stride * stride

    # Activation tile is DMA'd once per batch; f32 inside the kernel so the
    # per-tap slices/reshapes stay on well-supported 32-bit layouts.
    phases, Hq, Wq = _phase_split(x_nhwc.astype(jnp.float32), pad, stride, 0.0)

    # OIHW -> (KH*KW, Cin, Cout_p), zero-padded to a lane-dense Cout, bf16.
    w = jnp.transpose(w_oihw, (2, 3, 1, 0)).reshape(KH * KW, Cin, Cout)
    if Cout_p != Cout:
        w = jnp.pad(w, ((0, 0), (0, 0), (0, Cout_p - Cout)))
    w = w.astype(jnp.bfloat16)

    out = pl.pallas_call(
        _make_conv_kernel(KH, KW, stride, Ho, Wo, Cout_p),
        out_shape=jax.ShapeDtypeStruct((N, Ho, Wo, Cout_p), out_dtype),
        grid=(N,),
        in_specs=[
            pl.BlockSpec((s2, Hq, Wq, Cin), lambda n: (n, 0, 0, 0)),
            pl.BlockSpec((KH * KW, Cin, Cout_p), lambda n: (0, 0, 0)),
        ],
        out_specs=pl.BlockSpec((1, Ho, Wo, Cout_p), lambda n: (n, 0, 0, 0)),
        compiler_params=pltpu.CompilerParams(
            dimension_semantics=("parallel",)),
    )(phases, w)
    if Cout_p != Cout:
        out = out[..., :Cout]
    return out


# ---------------------------------------------------------------------------
# Max-pool kernel: 9 shifted maxima, no im2col, grid over batch
# ---------------------------------------------------------------------------
def _make_pool_kernel(K, stride, Ho, Wo):
    s = stride

    def kernel(x_ref, o_ref):
        # x_ref: (s*s, Hq, Wq, C) f32 ;  o_ref: (1, Ho, Wo, C)
        res = None
        for kh in range(K):
            for kw in range(K):
                q = (kh % s) * s + (kw % s)
                ro, co = kh // s, kw // s
                tap = x_ref[q, ro:ro + Ho, co:co + Wo, :]
                res = tap if res is None else jnp.maximum(res, tap)
        o_ref[...] = res.reshape((1,) + res.shape).astype(o_ref.dtype)

    return kernel


def maxpool2d_pallas(x_nhwc, k, stride, pad):
    N, H, W, C = x_nhwc.shape
    Ho = (H + 2 * pad - k) // stride + 1
    Wo = (W + 2 * pad - k) // stride + 1
    s2 = stride * stride
    phases, Hq, Wq = _phase_split(x_nhwc, pad, stride, -jnp.inf)
    return pl.pallas_call(
        _make_pool_kernel(k, stride, Ho, Wo),
        out_shape=jax.ShapeDtypeStruct((N, Ho, Wo, C), x_nhwc.dtype),
        grid=(N,),
        in_specs=[pl.BlockSpec((s2, Hq, Wq, C), lambda n: (n, 0, 0, 0))],
        out_specs=pl.BlockSpec((1, Ho, Wo, C), lambda n: (n, 0, 0, 0)),
        compiler_params=pltpu.CompilerParams(
            dimension_semantics=("parallel",)),
    )(phases)


# ---------------------------------------------------------------------------
# Reduction_A module
# ---------------------------------------------------------------------------
def init_reduction_a_params(key, in_channels, k, l, m, n):
    """Deterministic Kaiming-normal-like init; weight layout OIHW (PyTorch)."""
    shapes = {
        "b0":   (n, in_channels, 3, 3),   # branch_0: 3x3 s2 p1
        "b1_0": (k, in_channels, 1, 1),   # branch_1: 1x1 s1
        "b1_1": (l, k, 3, 3),             # branch_1: 3x3 s1 p1
        "b1_2": (m, l, 3, 3),             # branch_1: 3x3 s2 p1
    }
    params = {}
    keys = jax.random.split(key, len(shapes))
    for (name, shp), kk in zip(sorted(shapes.items()), keys):
        fan_in = shp[1] * shp[2] * shp[3]
        std = (2.0 / fan_in) ** 0.5
        params[name] = std * jax.random.normal(kk, shp, dtype=jnp.float32)
    return params


@jax.jit
def reduction_a_forward(x_nchw, params):
    """Matches PyTorch Reduction_A.forward.  Input/output are NCHW."""
    x = jnp.transpose(x_nchw, (0, 2, 3, 1)).astype(jnp.float32)   # -> NHWC

    # branch 0: 3x3 stride-2 conv
    x0 = conv2d_pallas(x, params["b0"], stride=2, pad=1)

    # branch 1: 1x1 s1 -> 3x3 s1 p1 -> 3x3 s2 p1 (bf16 intermediates)
    y = conv2d_pallas(x, params["b1_0"], stride=1, pad=0,
                      out_dtype=jnp.bfloat16)
    y = conv2d_pallas(y, params["b1_1"], stride=1, pad=1,
                      out_dtype=jnp.bfloat16)
    x1 = conv2d_pallas(y, params["b1_2"], stride=2, pad=1)

    # branch 2: maxpool 3x3 s2 p1 (f32, exact)
    x2 = maxpool2d_pallas(x, k=3, stride=2, pad=1)

    out = jnp.concatenate([x0, x1, x2], axis=-1)   # channels-last concat
    return jnp.transpose(out, (0, 3, 1, 2))        # -> NCHW


# ---------------------------------------------------------------------------
# Reference (XLA) mirroring the kernel's bf16-operand / f32-accumulate flow
# ---------------------------------------------------------------------------
def _conv_ref(x_nchw, w, stride, pad):
    return jax.lax.conv_general_dilated(
        x_nchw.astype(jnp.bfloat16), w.astype(jnp.bfloat16),
        window_strides=(stride, stride),
        padding=((pad, pad), (pad, pad)),
        dimension_numbers=("NCHW", "OIHW", "NCHW"),
        preferred_element_type=jnp.float32)


def reduction_a_reference(x_nchw, params):
    x = x_nchw.astype(jnp.float32)
    x0 = _conv_ref(x, params["b0"], 2, 1)
    y = _conv_ref(x, params["b1_0"], 1, 0).astype(jnp.bfloat16)
    y = _conv_ref(y, params["b1_1"], 1, 1).astype(jnp.bfloat16)
    x1 = _conv_ref(y, params["b1_2"], 2, 1)
    x2 = jax.lax.reduce_window(
        x, -jnp.inf, jax.lax.max,
        window_dimensions=(1, 1, 3, 3), window_strides=(1, 1, 2, 2),
        padding=((0, 0), (0, 0), (1, 1), (1, 1)))
    return jnp.concatenate([x0, x1, x2], axis=1)


# ---------------------------------------------------------------------------
if __name__ == "__main__":
    key = jax.random.PRNGKey(0)
    k_x, k_p = jax.random.split(key)

    # Small shapes consistent with the module: batch=2, in_channels=4, 16x16.
    N, C_in, H, W = 2, 4, 16, 16
    k, l, m, n = 32, 48, 64, 96
    x = jax.random.normal(k_x, (N, C_in, H, W), dtype=jnp.float32)
    params = init_reduction_a_params(k_p, C_in, k, l, m, n)

    out = jax.block_until_ready(reduction_a_forward(x, params))

    # Expected output: (N, n + m + in_channels, H//2, W//2)
    expected_shape = (N, n + m + C_in, H // 2, W // 2)
    assert out.shape == expected_shape, (out.shape, expected_shape)
    assert out.dtype == jnp.float32
    assert bool(jnp.isfinite(out).all())

    ref = jax.block_until_ready(reduction_a_reference(x, params))
    err = float(jnp.max(jnp.abs(out - ref)))
    assert err < 1e-2, f"max abs error vs XLA reference: {err}"

    print("KERNEL_OK")
</pallas_src>

<mosaic_0001>
module attributes {stable_mosaic.version = 11 : i64} {
  func.func @kernel(%arg0: i32, %arg1: memref<1x18x18x32xf32, #tpu.memory_space<vmem>>, %arg2: memref<9x32x128xbf16, #tpu.memory_space<vmem>>, %arg3: memref<1x16x16x128xbf16, #tpu.memory_space<vmem>>) attributes {dimension_semantics = [#tpu.dimension_semantics<parallel>], iteration_bounds = array<i64: 2>, scalar_prefetch = 0 : i64, scratch_operands = 0 : i64, tpu.core_type = #tpu.core_type<tc>, window_params = [{transform_indices = @transform_0, window_bounds = array<i64: 1, 18, 18, 32>}, {pipeline_mode = #tpu.pipeline_mode<synchronous>, transform_indices = @transform_1, window_bounds = array<i64: 9, 32, 128>}, {transform_indices = @transform_2, window_bounds = array<i64: 1, 16, 16, 128>}]} {
    %cst = arith.constant 0.000000e+00 : f32
    %0 = vector.broadcast %cst : f32 to vector<256x128xf32>
    %c0 = arith.constant 0 : index
    %c0_0 = arith.constant 0 : index
    %c0_1 = arith.constant 0 : index
    %c0_2 = arith.constant 0 : index
    %1 = vector.load %arg1[%c0, %c0_0, %c0_1, %c0_2] : memref<1x18x18x32xf32, #tpu.memory_space<vmem>>, vector<1x16x16x32xf32>
    %2 = vector.shape_cast %1 : vector<1x16x16x32xf32> to vector<16x16x32xf32>
    %3 = vector.shape_cast %2 : vector<16x16x32xf32> to vector<256x32xf32>
    %4 = arith.truncf %3 : vector<256x32xf32> to vector<256x32xbf16>
    %c0_3 = arith.constant 0 : index
    %c0_4 = arith.constant 0 : index
    %c0_5 = arith.constant 0 : index
    %5 = vector.load %arg2[%c0_3, %c0_4, %c0_5] : memref<9x32x128xbf16, #tpu.memory_space<vmem>>, vector<1x32x128xbf16>
    %6 = vector.shape_cast %5 : vector<1x32x128xbf16> to vector<32x128xbf16>
    %cst_6 = arith.constant dense<0.000000e+00> : vector<256x128xf32>
    %7 = tpu.matmul %4, %6, %cst_6 {dimension_numbers = #tpu.dot_dimension_numbers<[1], [0], [0], [1], [0, 0, 1, 1], [], []>} : vector<256x32xbf16>, vector<32x128xbf16>, vector<256x128xf32> -> vector<256x128xf32>
    %8 = arith.addf %0, %7 : vector<256x128xf32>
    %c0_7 = arith.constant 0 : index
    %c0_8 = arith.constant 0 : index
    %c1 = arith.constant 1 : index
    %c0_9 = arith.constant 0 : index
    %9 = vector.load %arg1[%c0_7, %c0_8, %c1, %c0_9] : memref<1x18x18x32xf32, #tpu.memory_space<vmem>>, vector<1x16x16x32xf32>
    %10 = vector.shape_cast %9 : vector<1x16x16x32xf32> to vector<16x16x32xf32>
    %11 = vector.shape_cast %10 : vector<16x16x32xf32> to vector<256x32xf32>
    %12 = arith.truncf %11 : vector<256x32xf32> to vector<256x32xbf16>
    %c1_10 = arith.constant 1 : index
    %c0_11 = arith.constant 0 : index
    %c0_12 = arith.constant 0 : index
    %13 = vector.load %arg2[%c1_10, %c0_11, %c0_12] : memref<9x32x128xbf16, #tpu.memory_space<vmem>>, vector<1x32x128xbf16>
    %14 = vector.shape_cast %13 : vector<1x32x128xbf16> to vector<32x128xbf16>
    %cst_13 = arith.constant dense<0.000000e+00> : vector<256x128xf32>
    %15 = tpu.matmul %12, %14, %cst_13 {dimension_numbers = #tpu.dot_dimension_numbers<[1], [0], [0], [1], [0, 0, 1, 1], [], []>} : vector<256x32xbf16>, vector<32x128xbf16>, vector<256x128xf32> -> vector<256x128xf32>
    %16 = arith.addf %8, %15 : vector<256x128xf32>
    %c0_14 = arith.constant 0 : index
    %c0_15 = arith.constant 0 : index
    %c2 = arith.constant 2 : index
    %c0_16 = arith.constant 0 : index
    %17 = vector.load %arg1[%c0_14, %c0_15, %c2, %c0_16] : memref<1x18x18x32xf32, #tpu.memory_space<vmem>>, vector<1x16x16x32xf32>
    %18 = vector.shape_cast %17 : vector<1x16x16x32xf32> to vector<16x16x32xf32>
    %19 = vector.shape_cast %18 : vector<16x16x32xf32> to vector<256x32xf32>
    %20 = arith.truncf %19 : vector<256x32xf32> to vector<256x32xbf16>
    %c2_17 = arith.constant 2 : index
    %c0_18 = arith.constant 0 : index
    %c0_19 = arith.constant 0 : index
    %21 = vector.load %arg2[%c2_17, %c0_18, %c0_19] : memref<9x32x128xbf16, #tpu.memory_space<vmem>>, vector<1x32x128xbf16>
    %22 = vector.shape_cast %21 : vector<1x32x128xbf16> to vector<32x128xbf16>
    %cst_20 = arith.constant dense<0.000000e+00> : vector<256x128xf32>
    %23 = tpu.matmul %20, %22, %cst_20 {dimension_numbers = #tpu.dot_dimension_numbers<[1], [0], [0], [1], [0, 0, 1, 1], [], []>} : vector<256x32xbf16>, vector<32x128xbf16>, vector<256x128xf32> -> vector<256x128xf32>
    %24 = arith.addf %16, %23 : vector<256x128xf32>
    %c0_21 = arith.constant 0 : index
    %c1_22 = arith.constant 1 : index
    %c0_23 = arith.constant 0 : index
    %c0_24 = arith.constant 0 : index
    %25 = vector.load %arg1[%c0_21, %c1_22, %c0_23, %c0_24] : memref<1x18x18x32xf32, #tpu.memory_space<vmem>>, vector<1x16x16x32xf32>
    %26 = vector.shape_cast %25 : vector<1x16x16x32xf32> to vector<16x16x32xf32>
    %27 = vector.shape_cast %26 : vector<16x16x32xf32> to vector<256x32xf32>
    %28 = arith.truncf %27 : vector<256x32xf32> to vector<256x32xbf16>
    %c3 = arith.constant 3 : index
    %c0_25 = arith.constant 0 : index
    %c0_26 = arith.constant 0 : index
    %29 = vector.load %arg2[%c3, %c0_25, %c0_26] : memref<9x32x128xbf16, #tpu.memory_space<vmem>>, vector<1x32x128xbf16>
    %30 = vector.shape_cast %29 : vector<1x32x128xbf16> to vector<32x128xbf16>
    %cst_27 = arith.constant dense<0.000000e+00> : vector<256x128xf32>
    %31 = tpu.matmul %28, %30, %cst_27 {dimension_numbers = #tpu.dot_dimension_numbers<[1], [0], [0], [1], [0, 0, 1, 1], [], []>} : vector<256x32xbf16>, vector<32x128xbf16>, vector<256x128xf32> -> vector<256x128xf32>
    %32 = arith.addf %24, %31 : vector<256x128xf32>
    %c0_28 = arith.constant 0 : index
    %c1_29 = arith.constant 1 : index
    %c1_30 = arith.constant 1 : index
    %c0_31 = arith.constant 0 : index
    %33 = vector.load %arg1[%c0_28, %c1_29, %c1_30, %c0_31] : memref<1x18x18x32xf32, #tpu.memory_space<vmem>>, vector<1x16x16x32xf32>
    %34 = vector.shape_cast %33 : vector<1x16x16x32xf32> to vector<16x16x32xf32>
    %35 = vector.shape_cast %34 : vector<16x16x32xf32> to vector<256x32xf32>
    %36 = arith.truncf %35 : vector<256x32xf32> to vector<256x32xbf16>
    %c4 = arith.constant 4 : index
    %c0_32 = arith.constant 0 : index
    %c0_33 = arith.constant 0 : index
    %37 = vector.load %arg2[%c4, %c0_32, %c0_33] : memref<9x32x128xbf16, #tpu.memory_space<vmem>>, vector<1x32x128xbf16>
    %38 = vector.shape_cast %37 : vector<1x32x128xbf16> to vector<32x128xbf16>
    %cst_34 = arith.constant dense<0.000000e+00> : vector<256x128xf32>
    %39 = tpu.matmul %36, %38, %cst_34 {dimension_numbers = #tpu.dot_dimension_numbers<[1], [0], [0], [1], [0, 0, 1, 1], [], []>} : vector<256x32xbf16>, vector<32x128xbf16>, vector<256x128xf32> -> vector<256x128xf32>
    %40 = arith.addf %32, %39 : vector<256x128xf32>
    %c0_35 = arith.constant 0 : index
    %c1_36 = arith.constant 1 : index
    %c2_37 = arith.constant 2 : index
    %c0_38 = arith.constant 0 : index
    %41 = vector.load %arg1[%c0_35, %c1_36, %c2_37, %c0_38] : memref<1x18x18x32xf32, #tpu.memory_space<vmem>>, vector<1x16x16x32xf32>
    %42 = vector.shape_cast %41 : vector<1x16x16x32xf32> to vector<16x16x32xf32>
    %43 = vector.shape_cast %42 : vector<16x16x32xf32> to vector<256x32xf32>
    %44 = arith.truncf %43 : vector<256x32xf32> to vector<256x32xbf16>
    %c5 = arith.constant 5 : index
    %c0_39 = arith.constant 0 : index
    %c0_40 = arith.constant 0 : index
    %45 = vector.load %arg2[%c5, %c0_39, %c0_40] : memref<9x32x128xbf16, #tpu.memory_space<vmem>>, vector<1x32x128xbf16>
    %46 = vector.shape_cast %45 : vector<1x32x128xbf16> to vector<32x128xbf16>
    %cst_41 = arith.constant dense<0.000000e+00> : vector<256x128xf32>
    %47 = tpu.matmul %44, %46, %cst_41 {dimension_numbers = #tpu.dot_dimension_numbers<[1], [0], [0], [1], [0, 0, 1, 1], [], []>} : vector<256x32xbf16>, vector<32x128xbf16>, vector<256x128xf32> -> vector<256x128xf32>
    %48 = arith.addf %40, %47 : vector<256x128xf32>
    %c0_42 = arith.constant 0 : index
    %c2_43 = arith.constant 2 : index
    %c0_44 = arith.constant 0 : index
    %c0_45 = arith.constant 0 : index
    %49 = vector.load %arg1[%c0_42, %c2_43, %c0_44, %c0_45] : memref<1x18x18x32xf32, #tpu.memory_space<vmem>>, vector<1x16x16x32xf32>
    %50 = vector.shape_cast %49 : vector<1x16x16x32xf32> to vector<16x16x32xf32>
    %51 = vector.shape_cast %50 : vector<16x16x32xf32> to vector<256x32xf32>
    %52 = arith.truncf %51 : vector<256x32xf32> to vector<256x32xbf16>
    %c6 = arith.constant 6 : index
    %c0_46 = arith.constant 0 : index
    %c0_47 = arith.constant 0 : index
    %53 = vector.load %arg2[%c6, %c0_46, %c0_47] : memref<9x32x128xbf16, #tpu.memory_space<vmem>>, vector<1x32x128xbf16>
    %54 = vector.shape_cast %53 : vector<1x32x128xbf16> to vector<32x128xbf16>
    %cst_48 = arith.constant dense<0.000000e+00> : vector<256x128xf32>
    %55 = tpu.matmul %52, %54, %cst_48 {dimension_numbers = #tpu.dot_dimension_numbers<[1], [0], [0], [1], [0, 0, 1, 1], [], []>} : vector<256x32xbf16>, vector<32x128xbf16>, vector<256x128xf32> -> vector<256x128xf32>
    %56 = arith.addf %48, %55 : vector<256x128xf32>
    %c0_49 = arith.constant 0 : index
    %c2_50 = arith.constant 2 : index
    %c1_51 = arith.constant 1 : index
    %c0_52 = arith.constant 0 : index
    %57 = vector.load %arg1[%c0_49, %c2_50, %c1_51, %c0_52] : memref<1x18x18x32xf32, #tpu.memory_space<vmem>>, vector<1x16x16x32xf32>
    %58 = vector.shape_cast %57 : vector<1x16x16x32xf32> to vector<16x16x32xf32>
    %59 = vector.shape_cast %58 : vector<16x16x32xf32> to vector<256x32xf32>
    %60 = arith.truncf %59 : vector<256x32xf32> to vector<256x32xbf16>
    %c7 = arith.constant 7 : index
    %c0_53 = arith.constant 0 : index
    %c0_54 = arith.constant 0 : index
    %61 = vector.load %arg2[%c7, %c0_53, %c0_54] : memref<9x32x128xbf16, #tpu.memory_space<vmem>>, vector<1x32x128xbf16>
    %62 = vector.shape_cast %61 : vector<1x32x128xbf16> to vector<32x128xbf16>
    %cst_55 = arith.constant dense<0.000000e+00> : vector<256x128xf32>
    %63 = tpu.matmul %60, %62, %cst_55 {dimension_numbers = #tpu.dot_dimension_numbers<[1], [0], [0], [1], [0, 0, 1, 1], [], []>} : vector<256x32xbf16>, vector<32x128xbf16>, vector<256x128xf32> -> vector<256x128xf32>
    %64 = arith.addf %56, %63 : vector<256x128xf32>
    %c0_56 = arith.constant 0 : index
    %c2_57 = arith.constant 2 : index
    %c2_58 = arith.constant 2 : index
    %c0_59 = arith.constant 0 : index
    %65 = vector.load %arg1[%c0_56, %c2_57, %c2_58, %c0_59] : memref<1x18x18x32xf32, #tpu.memory_space<vmem>>, vector<1x16x16x32xf32>
    %66 = vector.shape_cast %65 : vector<1x16x16x32xf32> to vector<16x16x32xf32>
    %67 = vector.shape_cast %66 : vector<16x16x32xf32> to vector<256x32xf32>
    %68 = arith.truncf %67 : vector<256x32xf32> to vector<256x32xbf16>
    %c8 = arith.constant 8 : index
    %c0_60 = arith.constant 0 : index
    %c0_61 = arith.constant 0 : index
    %69 = vector.load %arg2[%c8, %c0_60, %c0_61] : memref<9x32x128xbf16, #tpu.memory_space<vmem>>, vector<1x32x128xbf16>
    %70 = vector.shape_cast %69 : vector<1x32x128xbf16> to vector<32x128xbf16>
    %cst_62 = arith.constant dense<0.000000e+00> : vector<256x128xf32>
    %71 = tpu.matmul %68, %70, %cst_62 {dimension_numbers = #tpu.dot_dimension_numbers<[1], [0], [0], [1], [0, 0, 1, 1], [], []>} : vector<256x32xbf16>, vector<32x128xbf16>, vector<256x128xf32> -> vector<256x128xf32>
    %72 = arith.addf %64, %71 : vector<256x128xf32>
    %73 = vector.shape_cast %72 : vector<256x128xf32> to vector<1x16x16x128xf32>
    %74 = arith.truncf %73 : vector<1x16x16x128xf32> to vector<1x16x16x128xbf16>
    %c0_63 = arith.constant 0 : index
    %c0_64 = arith.constant 0 : index
    %c0_65 = arith.constant 0 : index
    %c0_66 = arith.constant 0 : index
    %75 = vector.load %arg3[%c0_63, %c0_64, %c0_65, %c0_66] : memref<1x16x16x128xbf16, #tpu.memory_space<vmem>>, vector<1x16x16x128xbf16>
    tpu.vector_store %arg3[%c0_63, %c0_64, %c0_65, %c0_66], %74 {strides = array<i32>} : memref<1x16x16x128xbf16, #tpu.memory_space<vmem>>, vector<1x16x16x128xbf16>,
    return
  }
  func.func @transform_0(%arg0: i32) -> (i32, i32, i32, i32) {
    %c0_i32 = arith.constant 0 : i32
    %c0_i32_0 = arith.constant 0 : i32
    %c0_i32_1 = arith.constant 0 : i32
    %c0_i32_2 = arith.constant 0 : i32
    return %arg0, %c0_i32, %c0_i32_0, %c0_i32_1 : i32, i32, i32, i32
  }
  func.func @transform_1(%arg0: i32) -> (i32, i32, i32) {
    %c0_i32 = arith.constant 0 : i32
    %c0_i32_0 = arith.constant 0 : i32
    %c0_i32_1 = arith.constant 0 : i32
    %c0_i32_2 = arith.constant 0 : i32
    return %c0_i32, %c0_i32_0, %c0_i32_1 : i32, i32, i32
  }
  func.func @transform_2(%arg0: i32) -> (i32, i32, i32, i32) {
    %c0_i32 = arith.constant 0 : i32
    %c0_i32_0 = arith.constant 0 : i32
    %c0_i32_1 = arith.constant 0 : i32
    %c0_i32_2 = arith.constant 0 : i32
    return %arg0, %c0_i32, %c0_i32_0, %c0_i32_1 : i32, i32, i32, i32
  }
}

module attributes {stable_mosaic.version = 11 : i64} {
  func.func @kernel(%arg0: i32, %arg1: memref<1x16x16x4xf32, #tpu.memory_space<vmem>>, %arg2: memref<1x4x128xbf16, #tpu.memory_space<vmem>>, %arg3: memref<1x16x16x128xbf16, #tpu.memory_space<vmem>>) attributes {dimension_semantics = [#tpu.dimension_semantics<parallel>], iteration_bounds = array<i64: 2>, scalar_prefetch = 0 : i64, scratch_operands = 0 : i64, tpu.core_type = #tpu.core_type<tc>, window_params = [{transform_indices = @transform_0, window_bounds = array<i64: 1, 16, 16, 4>}, {pipeline_mode = #tpu.pipeline_mode<synchronous>, transform_indices = @transform_1, window_bounds = array<i64: 1, 4, 128>}, {transform_indices = @transform_2, window_bounds = array<i64: 1, 16, 16, 128>}]} {
    %cst = arith.constant 0.000000e+00 : f32
    %0 = vector.broadcast %cst : f32 to vector<256x128xf32>
    %c0 = arith.constant 0 : index
    %c0_0 = arith.constant 0 : index
    %c0_1 = arith.constant 0 : index
    %c0_2 = arith.constant 0 : index
    %1 = vector.load %arg1[%c0, %c0_0, %c0_1, %c0_2] : memref<1x16x16x4xf32, #tpu.memory_space<vmem>>, vector<1x16x16x4xf32>
    %2 = vector.shape_cast %1 : vector<1x16x16x4xf32> to vector<16x16x4xf32>
    %3 = vector.shape_cast %2 : vector<16x16x4xf32> to vector<256x4xf32>
    %4 = arith.truncf %3 : vector<256x4xf32> to vector<256x4xbf16>
    %c0_3 = arith.constant 0 : index
    %c0_4 = arith.constant 0 : index
    %c0_5 = arith.constant 0 : index
    %5 = vector.load %arg2[%c0_3, %c0_4, %c0_5] : memref<1x4x128xbf16, #tpu.memory_space<vmem>>, vector<1x4x128xbf16>
    %6 = vector.shape_cast %5 : vector<1x4x128xbf16> to vector<4x128xbf16>
    %cst_6 = arith.constant dense<0.000000e+00> : vector<256x128xf32>
    %7 = tpu.matmul %4, %6, %cst_6 {dimension_numbers = #tpu.dot_dimension_numbers<[1], [0], [0], [1], [0, 0, 1, 1], [], []>} : vector<256x4xbf16>, vector<4x128xbf16>, vector<256x128xf32> -> vector<256x128xf32>
    %8 = arith.addf %0, %7 : vector<256x128xf32>
    %9 = vector.shape_cast %8 : vector<256x128xf32> to vector<1x16x16x128xf32>
    %10 = arith.truncf %9 : vector<1x16x16x128xf32> to vector<1x16x16x128xbf16>
    %c0_7 = arith.constant 0 : index
    %c0_8 = arith.constant 0 : index
    %c0_9 = arith.constant 0 : index
    %c0_10 = arith.constant 0 : index
    %11 = vector.load %arg3[%c0_7, %c0_8, %c0_9, %c0_10] : memref<1x16x16x128xbf16, #tpu.memory_space<vmem>>, vector<1x16x16x128xbf16>
    tpu.vector_store %arg3[%c0_7, %c0_8, %c0_9, %c0_10], %10 {strides = array<i32>} : memref<1x16x16x128xbf16, #tpu.memory_space<vmem>>, vector<1x16x16x128xbf16>,
    return
  }
  func.func @transform_0(%arg0: i32) -> (i32, i32, i32, i32) {
    %c0_i32 = arith.constant 0 : i32
    %c0_i32_0 = arith.constant 0 : i32
    %c0_i32_1 = arith.constant 0 : i32
    %c0_i32_2 = arith.constant 0 : i32
    return %arg0, %c0_i32, %c0_i32_0, %c0_i32_1 : i32, i32, i32, i32
  }
  func.func @transform_1(%arg0: i32) -> (i32, i32, i32) {
    %c0_i32 = arith.constant 0 : i32
    %c0_i32_0 = arith.constant 0 : i32
    %c0_i32_1 = arith.constant 0 : i32
    %c0_i32_2 = arith.constant 0 : i32
    return %c0_i32, %c0_i32_0, %c0_i32_1 : i32, i32, i32
  }
  func.func @transform_2(%arg0: i32) -> (i32, i32, i32, i32) {
    %c0_i32 = arith.constant 0 : i32
    %c0_i32_0 = arith.constant 0 : i32
    %c0_i32_1 = arith.constant 0 : i32
    %c0_i32_2 = arith.constant 0 : i32
    return %arg0, %c0_i32, %c0_i32_0, %c0_i32_1 : i32, i32, i32, i32
  }
}

module attributes {stable_mosaic.version = 11 : i64} {
  func.func @kernel(%arg0: i32, %arg1: memref<4x9x9x48xf32, #tpu.memory_space<vmem>>, %arg2: memref<9x48x128xbf16, #tpu.memory_space<vmem>>, %arg3: memref<1x8x8x128xf32, #tpu.memory_space<vmem>>) attributes {dimension_semantics = [#tpu.dimension_semantics<parallel>], iteration_bounds = array<i64: 2>, scalar_prefetch = 0 : i64, scratch_operands = 0 : i64, tpu.core_type = #tpu.core_type<tc>, window_params = [{transform_indices = @transform_0, window_bounds = array<i64: 4, 9, 9, 48>}, {pipeline_mode = #tpu.pipeline_mode<synchronous>, transform_indices = @transform_1, window_bounds = array<i64: 9, 48, 128>}, {transform_indices = @transform_2, window_bounds = array<i64: 1, 8, 8, 128>}]} {
    %cst = arith.constant 0.000000e+00 : f32
    %0 = vector.broadcast %cst : f32 to vector<64x128xf32>
    %c0 = arith.constant 0 : index
    %c0_0 = arith.constant 0 : index
    %c0_1 = arith.constant 0 : index
    %c0_2 = arith.constant 0 : index
    %1 = vector.load %arg1[%c0, %c0_0, %c0_1, %c0_2] : memref<4x9x9x48xf32, #tpu.memory_space<vmem>>, vector<1x8x8x48xf32>
    %2 = vector.shape_cast %1 : vector<1x8x8x48xf32> to vector<8x8x48xf32>
    %3 = vector.shape_cast %2 : vector<8x8x48xf32> to vector<64x48xf32>
    %4 = arith.truncf %3 : vector<64x48xf32> to vector<64x48xbf16>
    %c0_3 = arith.constant 0 : index
    %c0_4 = arith.constant 0 : index
    %c0_5 = arith.constant 0 : index
    %5 = vector.load %arg2[%c0_3, %c0_4, %c0_5] : memref<9x48x128xbf16, #tpu.memory_space<vmem>>, vector<1x48x128xbf16>
    %6 = vector.shape_cast %5 : vector<1x48x128xbf16> to vector<48x128xbf16>
    %cst_6 = arith.constant dense<0.000000e+00> : vector<64x128xf32>
    %7 = tpu.matmul %4, %6, %cst_6 {dimension_numbers = #tpu.dot_dimension_numbers<[1], [0], [0], [1], [0, 0, 1, 1], [], []>} : vector<64x48xbf16>, vector<48x128xbf16>, vector<64x128xf32> -> vector<64x128xf32>
    %8 = arith.addf %0, %7 : vector<64x128xf32>
    %c1 = arith.constant 1 : index
    %c0_7 = arith.constant 0 : index
    %c0_8 = arith.constant 0 : index
    %c0_9 = arith.constant 0 : index
    %9 = vector.load %arg1[%c1, %c0_7, %c0_8, %c0_9] : memref<4x9x9x48xf32, #tpu.memory_space<vmem>>, vector<1x8x8x48xf32>
    %10 = vector.shape_cast %9 : vector<1x8x8x48xf32> to vector<8x8x48xf32>
    %11 = vector.shape_cast %10 : vector<8x8x48xf32> to vector<64x48xf32>
    %12 = arith.truncf %11 : vector<64x48xf32> to vector<64x48xbf16>
    %c1_10 = arith.constant 1 : index
    %c0_11 = arith.constant 0 : index
    %c0_12 = arith.constant 0 : index
    %13 = vector.load %arg2[%c1_10, %c0_11, %c0_12] : memref<9x48x128xbf16, #tpu.memory_space<vmem>>, vector<1x48x128xbf16>
    %14 = vector.shape_cast %13 : vector<1x48x128xbf16> to vector<48x128xbf16>
    %cst_13 = arith.constant dense<0.000000e+00> : vector<64x128xf32>
    %15 = tpu.matmul %12, %14, %cst_13 {dimension_numbers = #tpu.dot_dimension_numbers<[1], [0], [0], [1], [0, 0, 1, 1], [], []>} : vector<64x48xbf16>, vector<48x128xbf16>, vector<64x128xf32> -> vector<64x128xf32>
    %16 = arith.addf %8, %15 : vector<64x128xf32>
    %c0_14 = arith.constant 0 : index
    %c0_15 = arith.constant 0 : index
    %c1_16 = arith.constant 1 : index
    %c0_17 = arith.constant 0 : index
    %17 = vector.load %arg1[%c0_14, %c0_15, %c1_16, %c0_17] : memref<4x9x9x48xf32, #tpu.memory_space<vmem>>, vector<1x8x8x48xf32>
    %18 = vector.shape_cast %17 : vector<1x8x8x48xf32> to vector<8x8x48xf32>
    %19 = vector.shape_cast %18 : vector<8x8x48xf32> to vector<64x48xf32>
    %20 = arith.truncf %19 : vector<64x48xf32> to vector<64x48xbf16>
    %c2 = arith.constant 2 : index
    %c0_18 = arith.constant 0 : index
    %c0_19 = arith.constant 0 : index
    %21 = vector.load %arg2[%c2, %c0_18, %c0_19] : memref<9x48x128xbf16, #tpu.memory_space<vmem>>, vector<1x48x128xbf16>
    %22 = vector.shape_cast %21 : vector<1x48x128xbf16> to vector<48x128xbf16>
    %cst_20 = arith.constant dense<0.000000e+00> : vector<64x128xf32>
    %23 = tpu.matmul %20, %22, %cst_20 {dimension_numbers = #tpu.dot_dimension_numbers<[1], [0], [0], [1], [0, 0, 1, 1], [], []>} : vector<64x48xbf16>, vector<48x128xbf16>, vector<64x128xf32> -> vector<64x128xf32>
    %24 = arith.addf %16, %23 : vector<64x128xf32>
    %c2_21 = arith.constant 2 : index
    %c0_22 = arith.constant 0 : index
    %c0_23 = arith.constant 0 : index
    %c0_24 = arith.constant 0 : index
    %25 = vector.load %arg1[%c2_21, %c0_22, %c0_23, %c0_24] : memref<4x9x9x48xf32, #tpu.memory_space<vmem>>, vector<1x8x8x48xf32>
    %26 = vector.shape_cast %25 : vector<1x8x8x48xf32> to vector<8x8x48xf32>
    %27 = vector.shape_cast %26 : vector<8x8x48xf32> to vector<64x48xf32>
    %28 = arith.truncf %27 : vector<64x48xf32> to vector<64x48xbf16>
    %c3 = arith.constant 3 : index
    %c0_25 = arith.constant 0 : index
    %c0_26 = arith.constant 0 : index
    %29 = vector.load %arg2[%c3, %c0_25, %c0_26] : memref<9x48x128xbf16, #tpu.memory_space<vmem>>, vector<1x48x128xbf16>
    %30 = vector.shape_cast %29 : vector<1x48x128xbf16> to vector<48x128xbf16>
    %cst_27 = arith.constant dense<0.000000e+00> : vector<64x128xf32>
    %31 = tpu.matmul %28, %30, %cst_27 {dimension_numbers = #tpu.dot_dimension_numbers<[1], [0], [0], [1], [0, 0, 1, 1], [], []>} : vector<64x48xbf16>, vector<48x128xbf16>, vector<64x128xf32> -> vector<64x128xf32>
    %32 = arith.addf %24, %31 : vector<64x128xf32>
    %c3_28 = arith.constant 3 : index
    %c0_29 = arith.constant 0 : index
    %c0_30 = arith.constant 0 : index
    %c0_31 = arith.constant 0 : index
    %33 = vector.load %arg1[%c3_28, %c0_29, %c0_30, %c0_31] : memref<4x9x9x48xf32, #tpu.memory_space<vmem>>, vector<1x8x8x48xf32>
    %34 = vector.shape_cast %33 : vector<1x8x8x48xf32> to vector<8x8x48xf32>
    %35 = vector.shape_cast %34 : vector<8x8x48xf32> to vector<64x48xf32>
    %36 = arith.truncf %35 : vector<64x48xf32> to vector<64x48xbf16>
    %c4 = arith.constant 4 : index
    %c0_32 = arith.constant 0 : index
    %c0_33 = arith.constant 0 : index
    %37 = vector.load %arg2[%c4, %c0_32, %c0_33] : memref<9x48x128xbf16, #tpu.memory_space<vmem>>, vector<1x48x128xbf16>
    %38 = vector.shape_cast %37 : vector<1x48x128xbf16> to vector<48x128xbf16>
    %cst_34 = arith.constant dense<0.000000e+00> : vector<64x128xf32>
    %39 = tpu.matmul %36, %38, %cst_34 {dimension_numbers = #tpu.dot_dimension_numbers<[1], [0], [0], [1], [0, 0, 1, 1], [], []>} : vector<64x48xbf16>, vector<48x128xbf16>, vector<64x128xf32> -> vector<64x128xf32>
    %40 = arith.addf %32, %39 : vector<64x128xf32>
    %c2_35 = arith.constant 2 : index
    %c0_36 = arith.constant 0 : index
    %c1_37 = arith.constant 1 : index
    %c0_38 = arith.constant 0 : index
    %41 = vector.load %arg1[%c2_35, %c0_36, %c1_37, %c0_38] : memref<4x9x9x48xf32, #tpu.memory_space<vmem>>, vector<1x8x8x48xf32>
    %42 = vector.shape_cast %41 : vector<1x8x8x48xf32> to vector<8x8x48xf32>
    %43 = vector.shape_cast %42 : vector<8x8x48xf32> to vector<64x48xf32>
    %44 = arith.truncf %43 : vector<64x48xf32> to vector<64x48xbf16>
    %c5 = arith.constant 5 : index
    %c0_39 = arith.constant 0 : index
    %c0_40 = arith.constant 0 : index
    %45 = vector.load %arg2[%c5, %c0_39, %c0_40] : memref<9x48x128xbf16, #tpu.memory_space<vmem>>, vector<1x48x128xbf16>
    %46 = vector.shape_cast %45 : vector<1x48x128xbf16> to vector<48x128xbf16>
    %cst_41 = arith.constant dense<0.000000e+00> : vector<64x128xf32>
    %47 = tpu.matmul %44, %46, %cst_41 {dimension_numbers = #tpu.dot_dimension_numbers<[1], [0], [0], [1], [0, 0, 1, 1], [], []>} : vector<64x48xbf16>, vector<48x128xbf16>, vector<64x128xf32> -> vector<64x128xf32>
    %48 = arith.addf %40, %47 : vector<64x128xf32>
    %c0_42 = arith.constant 0 : index
    %c1_43 = arith.constant 1 : index
    %c0_44 = arith.constant 0 : index
    %c0_45 = arith.constant 0 : index
    %49 = vector.load %arg1[%c0_42, %c1_43, %c0_44, %c0_45] : memref<4x9x9x48xf32, #tpu.memory_space<vmem>>, vector<1x8x8x48xf32>
    %50 = vector.shape_cast %49 : vector<1x8x8x48xf32> to vector<8x8x48xf32>
    %51 = vector.shape_cast %50 : vector<8x8x48xf32> to vector<64x48xf32>
    %52 = arith.truncf %51 : vector<64x48xf32> to vector<64x48xbf16>
    %c6 = arith.constant 6 : index
    %c0_46 = arith.constant 0 : index
    %c0_47 = arith.constant 0 : index
    %53 = vector.load %arg2[%c6, %c0_46, %c0_47] : memref<9x48x128xbf16, #tpu.memory_space<vmem>>, vector<1x48x128xbf16>
    %54 = vector.shape_cast %53 : vector<1x48x128xbf16> to vector<48x128xbf16>
    %cst_48 = arith.constant dense<0.000000e+00> : vector<64x128xf32>
    %55 = tpu.matmul %52, %54, %cst_48 {dimension_numbers = #tpu.dot_dimension_numbers<[1], [0], [0], [1], [0, 0, 1, 1], [], []>} : vector<64x48xbf16>, vector<48x128xbf16>, vector<64x128xf32> -> vector<64x128xf32>
    %56 = arith.addf %48, %55 : vector<64x128xf32>
    %c1_49 = arith.constant 1 : index
    %c1_50 = arith.constant 1 : index
    %c0_51 = arith.constant 0 : index
    %c0_52 = arith.constant 0 : index
    %57 = vector.load %arg1[%c1_49, %c1_50, %c0_51, %c0_52] : memref<4x9x9x48xf32, #tpu.memory_space<vmem>>, vector<1x8x8x48xf32>
    %58 = vector.shape_cast %57 : vector<1x8x8x48xf32> to vector<8x8x48xf32>
    %59 = vector.shape_cast %58 : vector<8x8x48xf32> to vector<64x48xf32>
    %60 = arith.truncf %59 : vector<64x48xf32> to vector<64x48xbf16>
    %c7 = arith.constant 7 : index
    %c0_53 = arith.constant 0 : index
    %c0_54 = arith.constant 0 : index
    %61 = vector.load %arg2[%c7, %c0_53, %c0_54] : memref<9x48x128xbf16, #tpu.memory_space<vmem>>, vector<1x48x128xbf16>
    %62 = vector.shape_cast %61 : vector<1x48x128xbf16> to vector<48x128xbf16>
    %cst_55 = arith.constant dense<0.000000e+00> : vector<64x128xf32>
    %63 = tpu.matmul %60, %62, %cst_55 {dimension_numbers = #tpu.dot_dimension_numbers<[1], [0], [0], [1], [0, 0, 1, 1], [], []>} : vector<64x48xbf16>, vector<48x128xbf16>, vector<64x128xf32> -> vector<64x128xf32>
    %64 = arith.addf %56, %63 : vector<64x128xf32>
    %c0_56 = arith.constant 0 : index
    %c1_57 = arith.constant 1 : index
    %c1_58 = arith.constant 1 : index
    %c0_59 = arith.constant 0 : index
    %65 = vector.load %arg1[%c0_56, %c1_57, %c1_58, %c0_59] : memref<4x9x9x48xf32, #tpu.memory_space<vmem>>, vector<1x8x8x48xf32>
    %66 = vector.shape_cast %65 : vector<1x8x8x48xf32> to vector<8x8x48xf32>
    %67 = vector.shape_cast %66 : vector<8x8x48xf32> to vector<64x48xf32>
    %68 = arith.truncf %67 : vector<64x48xf32> to vector<64x48xbf16>
    %c8 = arith.constant 8 : index
    %c0_60 = arith.constant 0 : index
    %c0_61 = arith.constant 0 : index
    %69 = vector.load %arg2[%c8, %c0_60, %c0_61] : memref<9x48x128xbf16, #tpu.memory_space<vmem>>, vector<1x48x128xbf16>
    %70 = vector.shape_cast %69 : vector<1x48x128xbf16> to vector<48x128xbf16>
    %cst_62 = arith.constant dense<0.000000e+00> : vector<64x128xf32>
    %71 = tpu.matmul %68, %70, %cst_62 {dimension_numbers = #tpu.dot_dimension_numbers<[1], [0], [0], [1], [0, 0, 1, 1], [], []>} : vector<64x48xbf16>, vector<48x128xbf16>, vector<64x128xf32> -> vector<64x128xf32>
    %72 = arith.addf %64, %71 : vector<64x128xf32>
    %73 = vector.shape_cast %72 : vector<64x128xf32> to vector<1x8x8x128xf32>
    %c0_63 = arith.constant 0 : index
    %c0_64 = arith.constant 0 : index
    %c0_65 = arith.constant 0 : index
    %c0_66 = arith.constant 0 : index
    %74 = vector.load %arg3[%c0_63, %c0_64, %c0_65, %c0_66] : memref<1x8x8x128xf32, #tpu.memory_space<vmem>>, vector<1x8x8x128xf32>
    tpu.vector_store %arg3[%c0_63, %c0_64, %c0_65, %c0_66], %73 {strides = array<i32>} : memref<1x8x8x128xf32, #tpu.memory_space<vmem>>, vector<1x8x8x128xf32>,
    return
  }
  func.func @transform_0(%arg0: i32) -> (i32, i32, i32, i32) {
    %c0_i32 = arith.constant 0 : i32
    %c0_i32_0 = arith.constant 0 : i32
    %c0_i32_1 = arith.constant 0 : i32
    %c0_i32_2 = arith.constant 0 : i32
    return %arg0, %c0_i32, %c0_i32_0, %c0_i32_1 : i32, i32, i32, i32
  }
  func.func @transform_1(%arg0: i32) -> (i32, i32, i32) {
    %c0_i32 = arith.constant 0 : i32
    %c0_i32_0 = arith.constant 0 : i32
    %c0_i32_1 = arith.constant 0 : i32
    %c0_i32_2 = arith.constant 0 : i32
    return %c0_i32, %c0_i32_0, %c0_i32_1 : i32, i32, i32
  }
  func.func @transform_2(%arg0: i32) -> (i32, i32, i32, i32) {
    %c0_i32 = arith.constant 0 : i32
    %c0_i32_0 = arith.constant 0 : i32
    %c0_i32_1 = arith.constant 0 : i32
    %c0_i32_2 = arith.constant 0 : i32
    return %arg0, %c0_i32, %c0_i32_0, %c0_i32_1 : i32, i32, i32, i32
  }
}

module attributes {stable_mosaic.version = 11 : i64} {
  func.func @kernel(%arg0: i32, %arg1: memref<4x9x9x4xf32, #tpu.memory_space<vmem>>, %arg2: memref<1x8x8x4xf32, #tpu.memory_space<vmem>>) attributes {dimension_semantics = [#tpu.dimension_semantics<parallel>], iteration_bounds = array<i64: 2>, scalar_prefetch = 0 : i64, scratch_operands = 0 : i64, tpu.core_type = #tpu.core_type<tc>, window_params = [{transform_indices = @transform_0, window_bounds = array<i64: 4, 9, 9, 4>}, {transform_indices = @transform_1, window_bounds = array<i64: 1, 8, 8, 4>}]} {
    %c0 = arith.constant 0 : index
    %c0_0 = arith.constant 0 : index
    %c0_1 = arith.constant 0 : index
    %c0_2 = arith.constant 0 : index
    %0 = vector.load %arg1[%c0, %c0_0, %c0_1, %c0_2] : memref<4x9x9x4xf32, #tpu.memory_space<vmem>>, vector<1x8x8x4xf32>
    %1 = vector.shape_cast %0 : vector<1x8x8x4xf32> to vector<8x8x4xf32>
    %c1 = arith.constant 1 : index
    %c0_3 = arith.constant 0 : index
    %c0_4 = arith.constant 0 : index
    %c0_5 = arith.constant 0 : index
    %2 = vector.load %arg1[%c1, %c0_3, %c0_4, %c0_5] : memref<4x9x9x4xf32, #tpu.memory_space<vmem>>, vector<1x8x8x4xf32>
    %3 = vector.shape_cast %2 : vector<1x8x8x4xf32> to vector<8x8x4xf32>
    %4 = arith.maximumf %1, %3 : vector<8x8x4xf32>
    %c0_6 = arith.constant 0 : index
    %c0_7 = arith.constant 0 : index
    %c1_8 = arith.constant 1 : index
    %c0_9 = arith.constant 0 : index
    %5 = vector.load %arg1[%c0_6, %c0_7, %c1_8, %c0_9] : memref<4x9x9x4xf32, #tpu.memory_space<vmem>>, vector<1x8x8x4xf32>
    %6 = vector.shape_cast %5 : vector<1x8x8x4xf32> to vector<8x8x4xf32>
    %7 = arith.maximumf %4, %6 : vector<8x8x4xf32>
    %c2 = arith.constant 2 : index
    %c0_10 = arith.constant 0 : index
    %c0_11 = arith.constant 0 : index
    %c0_12 = arith.constant 0 : index
    %8 = vector.load %arg1[%c2, %c0_10, %c0_11, %c0_12] : memref<4x9x9x4xf32, #tpu.memory_space<vmem>>, vector<1x8x8x4xf32>
    %9 = vector.shape_cast %8 : vector<1x8x8x4xf32> to vector<8x8x4xf32>
    %10 = arith.maximumf %7, %9 : vector<8x8x4xf32>
    %c3 = arith.constant 3 : index
    %c0_13 = arith.constant 0 : index
    %c0_14 = arith.constant 0 : index
    %c0_15 = arith.constant 0 : index
    %11 = vector.load %arg1[%c3, %c0_13, %c0_14, %c0_15] : memref<4x9x9x4xf32, #tpu.memory_space<vmem>>, vector<1x8x8x4xf32>
    %12 = vector.shape_cast %11 : vector<1x8x8x4xf32> to vector<8x8x4xf32>
    %13 = arith.maximumf %10, %12 : vector<8x8x4xf32>
    %c2_16 = arith.constant 2 : index
    %c0_17 = arith.constant 0 : index
    %c1_18 = arith.constant 1 : index
    %c0_19 = arith.constant 0 : index
    %14 = vector.load %arg1[%c2_16, %c0_17, %c1_18, %c0_19] : memref<4x9x9x4xf32, #tpu.memory_space<vmem>>, vector<1x8x8x4xf32>
    %15 = vector.shape_cast %14 : vector<1x8x8x4xf32> to vector<8x8x4xf32>
    %16 = arith.maximumf %13, %15 : vector<8x8x4xf32>
    %c0_20 = arith.constant 0 : index
    %c1_21 = arith.constant 1 : index
    %c0_22 = arith.constant 0 : index
    %c0_23 = arith.constant 0 : index
    %17 = vector.load %arg1[%c0_20, %c1_21, %c0_22, %c0_23] : memref<4x9x9x4xf32, #tpu.memory_space<vmem>>, vector<1x8x8x4xf32>
    %18 = vector.shape_cast %17 : vector<1x8x8x4xf32> to vector<8x8x4xf32>
    %19 = arith.maximumf %16, %18 : vector<8x8x4xf32>
    %c1_24 = arith.constant 1 : index
    %c1_25 = arith.constant 1 : index
    %c0_26 = arith.constant 0 : index
    %c0_27 = arith.constant 0 : index
    %20 = vector.load %arg1[%c1_24, %c1_25, %c0_26, %c0_27] : memref<4x9x9x4xf32, #tpu.memory_space<vmem>>, vector<1x8x8x4xf32>
    %21 = vector.shape_cast %20 : vector<1x8x8x4xf32> to vector<8x8x4xf32>
    %22 = arith.maximumf %19, %21 : vector<8x8x4xf32>
    %c0_28 = arith.constant 0 : index
    %c1_29 = arith.constant 1 : index
    %c1_30 = arith.constant 1 : index
    %c0_31 = arith.constant 0 : index
    %23 = vector.load %arg1[%c0_28, %c1_29, %c1_30, %c0_31] : memref<4x9x9x4xf32, #tpu.memory_space<vmem>>, vector<1x8x8x4xf32>
    %24 = vector.shape_cast %23 : vector<1x8x8x4xf32> to vector<8x8x4xf32>
    %25 = arith.maximumf %22, %24 : vector<8x8x4xf32>
    %26 = vector.shape_cast %25 : vector<8x8x4xf32> to vector<1x8x8x4xf32>
    %c0_32 = arith.constant 0 : index
    %c0_33 = arith.constant 0 : index
    %c0_34 = arith.constant 0 : index
    %c0_35 = arith.constant 0 : index
    %27 = vector.load %arg2[%c0_32, %c0_33, %c0_34, %c0_35] : memref<1x8x8x4xf32, #tpu.memory_space<vmem>>, vector<1x8x8x4xf32>
    tpu.vector_store %arg2[%c0_32, %c0_33, %c0_34, %c0_35], %26 {strides = array<i32>} : memref<1x8x8x4xf32, #tpu.memory_space<vmem>>, vector<1x8x8x4xf32>,
    return
  }
  func.func @transform_0(%arg0: i32) -> (i32, i32, i32, i32) {
    %c0_i32 = arith.constant 0 : i32
    %c0_i32_0 = arith.constant 0 : i32
    %c0_i32_1 = arith.constant 0 : i32
    %c0_i32_2 = arith.constant 0 : i32
    return %arg0, %c0_i32, %c0_i32_0, %c0_i32_1 : i32, i32, i32, i32
  }
  func.func @transform_1(%arg0: i32) -> (i32, i32, i32, i32) {
    %c0_i32 = arith.constant 0 : i32
    %c0_i32_0 = arith.constant 0 : i32
    %c0_i32_1 = arith.constant 0 : i32
    %c0_i32_2 = arith.constant 0 : i32
    return %arg0, %c0_i32, %c0_i32_0, %c0_i32_1 : i32, i32, i32, i32
  }
}

module attributes {stable_mosaic.version = 11 : i64} {
  func.func @kernel(%arg0: i32, %arg1: memref<4x9x9x4xf32, #tpu.memory_space<vmem>>, %arg2: memref<9x4x128xbf16, #tpu.memory_space<vmem>>, %arg3: memref<1x8x8x128xf32, #tpu.memory_space<vmem>>) attributes {dimension_semantics = [#tpu.dimension_semantics<parallel>], iteration_bounds = array<i64: 2>, scalar_prefetch = 0 : i64, scratch_operands = 0 : i64, tpu.core_type = #tpu.core_type<tc>, window_params = [{transform_indices = @transform_0, window_bounds = array<i64: 4, 9, 9, 4>}, {pipeline_mode = #tpu.pipeline_mode<synchronous>, transform_indices = @transform_1, window_bounds = array<i64: 9, 4, 128>}, {transform_indices = @transform_2, window_bounds = array<i64: 1, 8, 8, 128>}]} {
    %cst = arith.constant 0.000000e+00 : f32
    %0 = vector.broadcast %cst : f32 to vector<64x128xf32>
    %c0 = arith.constant 0 : index
    %c0_0 = arith.constant 0 : index
    %c0_1 = arith.constant 0 : index
    %c0_2 = arith.constant 0 : index
    %1 = vector.load %arg1[%c0, %c0_0, %c0_1, %c0_2] : memref<4x9x9x4xf32, #tpu.memory_space<vmem>>, vector<1x8x8x4xf32>
    %2 = vector.shape_cast %1 : vector<1x8x8x4xf32> to vector<8x8x4xf32>
    %3 = vector.shape_cast %2 : vector<8x8x4xf32> to vector<64x4xf32>
    %4 = arith.truncf %3 : vector<64x4xf32> to vector<64x4xbf16>
    %c0_3 = arith.constant 0 : index
    %c0_4 = arith.constant 0 : index
    %c0_5 = arith.constant 0 : index
    %5 = vector.load %arg2[%c0_3, %c0_4, %c0_5] : memref<9x4x128xbf16, #tpu.memory_space<vmem>>, vector<1x4x128xbf16>
    %6 = vector.shape_cast %5 : vector<1x4x128xbf16> to vector<4x128xbf16>
    %cst_6 = arith.constant dense<0.000000e+00> : vector<64x128xf32>
    %7 = tpu.matmul %4, %6, %cst_6 {dimension_numbers = #tpu.dot_dimension_numbers<[1], [0], [0], [1], [0, 0, 1, 1], [], []>} : vector<64x4xbf16>, vector<4x128xbf16>, vector<64x128xf32> -> vector<64x128xf32>
    %8 = arith.addf %0, %7 : vector<64x128xf32>
    %c1 = arith.constant 1 : index
    %c0_7 = arith.constant 0 : index
    %c0_8 = arith.constant 0 : index
    %c0_9 = arith.constant 0 : index
    %9 = vector.load %arg1[%c1, %c0_7, %c0_8, %c0_9] : memref<4x9x9x4xf32, #tpu.memory_space<vmem>>, vector<1x8x8x4xf32>
    %10 = vector.shape_cast %9 : vector<1x8x8x4xf32> to vector<8x8x4xf32>
    %11 = vector.shape_cast %10 : vector<8x8x4xf32> to vector<64x4xf32>
    %12 = arith.truncf %11 : vector<64x4xf32> to vector<64x4xbf16>
    %c1_10 = arith.constant 1 : index
    %c0_11 = arith.constant 0 : index
    %c0_12 = arith.constant 0 : index
    %13 = vector.load %arg2[%c1_10, %c0_11, %c0_12] : memref<9x4x128xbf16, #tpu.memory_space<vmem>>, vector<1x4x128xbf16>
    %14 = vector.shape_cast %13 : vector<1x4x128xbf16> to vector<4x128xbf16>
    %cst_13 = arith.constant dense<0.000000e+00> : vector<64x128xf32>
    %15 = tpu.matmul %12, %14, %cst_13 {dimension_numbers = #tpu.dot_dimension_numbers<[1], [0], [0], [1], [0, 0, 1, 1], [], []>} : vector<64x4xbf16>, vector<4x128xbf16>, vector<64x128xf32> -> vector<64x128xf32>
    %16 = arith.addf %8, %15 : vector<64x128xf32>
    %c0_14 = arith.constant 0 : index
    %c0_15 = arith.constant 0 : index
    %c1_16 = arith.constant 1 : index
    %c0_17 = arith.constant 0 : index
    %17 = vector.load %arg1[%c0_14, %c0_15, %c1_16, %c0_17] : memref<4x9x9x4xf32, #tpu.memory_space<vmem>>, vector<1x8x8x4xf32>
    %18 = vector.shape_cast %17 : vector<1x8x8x4xf32> to vector<8x8x4xf32>
    %19 = vector.shape_cast %18 : vector<8x8x4xf32> to vector<64x4xf32>
    %20 = arith.truncf %19 : vector<64x4xf32> to vector<64x4xbf16>
    %c2 = arith.constant 2 : index
    %c0_18 = arith.constant 0 : index
    %c0_19 = arith.constant 0 : index
    %21 = vector.load %arg2[%c2, %c0_18, %c0_19] : memref<9x4x128xbf16, #tpu.memory_space<vmem>>, vector<1x4x128xbf16>
    %22 = vector.shape_cast %21 : vector<1x4x128xbf16> to vector<4x128xbf16>
    %cst_20 = arith.constant dense<0.000000e+00> : vector<64x128xf32>
    %23 = tpu.matmul %20, %22, %cst_20 {dimension_numbers = #tpu.dot_dimension_numbers<[1], [0], [0], [1], [0, 0, 1, 1], [], []>} : vector<64x4xbf16>, vector<4x128xbf16>, vector<64x128xf32> -> vector<64x128xf32>
    %24 = arith.addf %16, %23 : vector<64x128xf32>
    %c2_21 = arith.constant 2 : index
    %c0_22 = arith.constant 0 : index
    %c0_23 = arith.constant 0 : index
    %c0_24 = arith.constant 0 : index
    %25 = vector.load %arg1[%c2_21, %c0_22, %c0_23, %c0_24] : memref<4x9x9x4xf32, #tpu.memory_space<vmem>>, vector<1x8x8x4xf32>
    %26 = vector.shape_cast %25 : vector<1x8x8x4xf32> to vector<8x8x4xf32>
    %27 = vector.shape_cast %26 : vector<8x8x4xf32> to vector<64x4xf32>
    %28 = arith.truncf %27 : vector<64x4xf32> to vector<64x4xbf16>
    %c3 = arith.constant 3 : index
    %c0_25 = arith.constant 0 : index
    %c0_26 = arith.constant 0 : index
    %29 = vector.load %arg2[%c3, %c0_25, %c0_26] : memref<9x4x128xbf16, #tpu.memory_space<vmem>>, vector<1x4x128xbf16>
    %30 = vector.shape_cast %29 : vector<1x4x128xbf16> to vector<4x128xbf16>
    %cst_27 = arith.constant dense<0.000000e+00> : vector<64x128xf32>
    %31 = tpu.matmul %28, %30, %cst_27 {dimension_numbers = #tpu.dot_dimension_numbers<[1], [0], [0], [1], [0, 0, 1, 1], [], []>} : vector<64x4xbf16>, vector<4x128xbf16>, vector<64x128xf32> -> vector<64x128xf32>
    %32 = arith.addf %24, %31 : vector<64x128xf32>
    %c3_28 = arith.constant 3 : index
    %c0_29 = arith.constant 0 : index
    %c0_30 = arith.constant 0 : index
    %c0_31 = arith.constant 0 : index
    %33 = vector.load %arg1[%c3_28, %c0_29, %c0_30, %c0_31] : memref<4x9x9x4xf32, #tpu.memory_space<vmem>>, vector<1x8x8x4xf32>
    %34 = vector.shape_cast %33 : vector<1x8x8x4xf32> to vector<8x8x4xf32>
    %35 = vector.shape_cast %34 : vector<8x8x4xf32> to vector<64x4xf32>
    %36 = arith.truncf %35 : vector<64x4xf32> to vector<64x4xbf16>
    %c4 = arith.constant 4 : index
    %c0_32 = arith.constant 0 : index
    %c0_33 = arith.constant 0 : index
    %37 = vector.load %arg2[%c4, %c0_32, %c0_33] : memref<9x4x128xbf16, #tpu.memory_space<vmem>>, vector<1x4x128xbf16>
    %38 = vector.shape_cast %37 : vector<1x4x128xbf16> to vector<4x128xbf16>
    %cst_34 = arith.constant dense<0.000000e+00> : vector<64x128xf32>
    %39 = tpu.matmul %36, %38, %cst_34 {dimension_numbers = #tpu.dot_dimension_numbers<[1], [0], [0], [1], [0, 0, 1, 1], [], []>} : vector<64x4xbf16>, vector<4x128xbf16>, vector<64x128xf32> -> vector<64x128xf32>
    %40 = arith.addf %32, %39 : vector<64x128xf32>
    %c2_35 = arith.constant 2 : index
    %c0_36 = arith.constant 0 : index
    %c1_37 = arith.constant 1 : index
    %c0_38 = arith.constant 0 : index
    %41 = vector.load %arg1[%c2_35, %c0_36, %c1_37, %c0_38] : memref<4x9x9x4xf32, #tpu.memory_space<vmem>>, vector<1x8x8x4xf32>
    %42 = vector.shape_cast %41 : vector<1x8x8x4xf32> to vector<8x8x4xf32>
    %43 = vector.shape_cast %42 : vector<8x8x4xf32> to vector<64x4xf32>
    %44 = arith.truncf %43 : vector<64x4xf32> to vector<64x4xbf16>
    %c5 = arith.constant 5 : index
    %c0_39 = arith.constant 0 : index
    %c0_40 = arith.constant 0 : index
    %45 = vector.load %arg2[%c5, %c0_39, %c0_40] : memref<9x4x128xbf16, #tpu.memory_space<vmem>>, vector<1x4x128xbf16>
    %46 = vector.shape_cast %45 : vector<1x4x128xbf16> to vector<4x128xbf16>
    %cst_41 = arith.constant dense<0.000000e+00> : vector<64x128xf32>
    %47 = tpu.matmul %44, %46, %cst_41 {dimension_numbers = #tpu.dot_dimension_numbers<[1], [0], [0], [1], [0, 0, 1, 1], [], []>} : vector<64x4xbf16>, vector<4x128xbf16>, vector<64x128xf32> -> vector<64x128xf32>
    %48 = arith.addf %40, %47 : vector<64x128xf32>
    %c0_42 = arith.constant 0 : index
    %c1_43 = arith.constant 1 : index
    %c0_44 = arith.constant 0 : index
    %c0_45 = arith.constant 0 : index
    %49 = vector.load %arg1[%c0_42, %c1_43, %c0_44, %c0_45] : memref<4x9x9x4xf32, #tpu.memory_space<vmem>>, vector<1x8x8x4xf32>
    %50 = vector.shape_cast %49 : vector<1x8x8x4xf32> to vector<8x8x4xf32>
    %51 = vector.shape_cast %50 : vector<8x8x4xf32> to vector<64x4xf32>
    %52 = arith.truncf %51 : vector<64x4xf32> to vector<64x4xbf16>
    %c6 = arith.constant 6 : index
    %c0_46 = arith.constant 0 : index
    %c0_47 = arith.constant 0 : index
    %53 = vector.load %arg2[%c6, %c0_46, %c0_47] : memref<9x4x128xbf16, #tpu.memory_space<vmem>>, vector<1x4x128xbf16>
    %54 = vector.shape_cast %53 : vector<1x4x128xbf16> to vector<4x128xbf16>
    %cst_48 = arith.constant dense<0.000000e+00> : vector<64x128xf32>
    %55 = tpu.matmul %52, %54, %cst_48 {dimension_numbers = #tpu.dot_dimension_numbers<[1], [0], [0], [1], [0, 0, 1, 1], [], []>} : vector<64x4xbf16>, vector<4x128xbf16>, vector<64x128xf32> -> vector<64x128xf32>
    %56 = arith.addf %48, %55 : vector<64x128xf32>
    %c1_49 = arith.constant 1 : index
    %c1_50 = arith.constant 1 : index
    %c0_51 = arith.constant 0 : index
    %c0_52 = arith.constant 0 : index
    %57 = vector.load %arg1[%c1_49, %c1_50, %c0_51, %c0_52] : memref<4x9x9x4xf32, #tpu.memory_space<vmem>>, vector<1x8x8x4xf32>
    %58 = vector.shape_cast %57 : vector<1x8x8x4xf32> to vector<8x8x4xf32>
    %59 = vector.shape_cast %58 : vector<8x8x4xf32> to vector<64x4xf32>
    %60 = arith.truncf %59 : vector<64x4xf32> to vector<64x4xbf16>
    %c7 = arith.constant 7 : index
    %c0_53 = arith.constant 0 : index
    %c0_54 = arith.constant 0 : index
    %61 = vector.load %arg2[%c7, %c0_53, %c0_54] : memref<9x4x128xbf16, #tpu.memory_space<vmem>>, vector<1x4x128xbf16>
    %62 = vector.shape_cast %61 : vector<1x4x128xbf16> to vector<4x128xbf16>
    %cst_55 = arith.constant dense<0.000000e+00> : vector<64x128xf32>
    %63 = tpu.matmul %60, %62, %cst_55 {dimension_numbers = #tpu.dot_dimension_numbers<[1], [0], [0], [1], [0, 0, 1, 1], [], []>} : vector<64x4xbf16>, vector<4x128xbf16>, vector<64x128xf32> -> vector<64x128xf32>
    %64 = arith.addf %56, %63 : vector<64x128xf32>
    %c0_56 = arith.constant 0 : index
    %c1_57 = arith.constant 1 : index
    %c1_58 = arith.constant 1 : index
    %c0_59 = arith.constant 0 : index
    %65 = vector.load %arg1[%c0_56, %c1_57, %c1_58, %c0_59] : memref<4x9x9x4xf32, #tpu.memory_space<vmem>>, vector<1x8x8x4xf32>
    %66 = vector.shape_cast %65 : vector<1x8x8x4xf32> to vector<8x8x4xf32>
    %67 = vector.shape_cast %66 : vector<8x8x4xf32> to vector<64x4xf32>
    %68 = arith.truncf %67 : vector<64x4xf32> to vector<64x4xbf16>
    %c8 = arith.constant 8 : index
    %c0_60 = arith.constant 0 : index
    %c0_61 = arith.constant 0 : index
    %69 = vector.load %arg2[%c8, %c0_60, %c0_61] : memref<9x4x128xbf16, #tpu.memory_space<vmem>>, vector<1x4x128xbf16>
    %70 = vector.shape_cast %69 : vector<1x4x128xbf16> to vector<4x128xbf16>
    %cst_62 = arith.constant dense<0.000000e+00> : vector<64x128xf32>
    %71 = tpu.matmul %68, %70, %cst_62 {dimension_numbers = #tpu.dot_dimension_numbers<[1], [0], [0], [1], [0, 0, 1, 1], [], []>} : vector<64x4xbf16>, vector<4x128xbf16>, vector<64x128xf32> -> vector<64x128xf32>
    %72 = arith.addf %64, %71 : vector<64x128xf32>
    %73 = vector.shape_cast %72 : vector<64x128xf32> to vector<1x8x8x128xf32>
    %c0_63 = arith.constant 0 : index
    %c0_64 = arith.constant 0 : index
    %c0_65 = arith.constant 0 : index
    %c0_66 = arith.constant 0 : index
    %74 = vector.load %arg3[%c0_63, %c0_64, %c0_65, %c0_66] : memref<1x8x8x128xf32, #tpu.memory_space<vmem>>, vector<1x8x8x128xf32>
    tpu.vector_store %arg3[%c0_63, %c0_64, %c0_65, %c0_66], %73 {strides = array<i32>} : memref<1x8x8x128xf32, #tpu.memory_space<vmem>>, vector<1x8x8x128xf32>,
    return
  }
  func.func @transform_0(%arg0: i32) -> (i32, i32, i32, i32) {
    %c0_i32 = arith.constant 0 : i32
    %c0_i32_0 = arith.constant 0 : i32
    %c0_i32_1 = arith.constant 0 : i32
    %c0_i32_2 = arith.constant 0 : i32
    return %arg0, %c0_i32, %c0_i32_0, %c0_i32_1 : i32, i32, i32, i32
  }
  func.func @transform_1(%arg0: i32) -> (i32, i32, i32) {
    %c0_i32 = arith.constant 0 : i32
    %c0_i32_0 = arith.constant 0 : i32
    %c0_i32_1 = arith.constant 0 : i32
    %c0_i32_2 = arith.constant 0 : i32
    return %c0_i32, %c0_i32_0, %c0_i32_1 : i32, i32, i32
  }
  func.func @transform_2(%arg0: i32) -> (i32, i32, i32, i32) {
    %c0_i32 = arith.constant 0 : i32
    %c0_i32_0 = arith.constant 0 : i32
    %c0_i32_1 = arith.constant 0 : i32
    %c0_i32_2 = arith.constant 0 : i32
    return %arg0, %c0_i32, %c0_i32_0, %c0_i32_1 : i32, i32, i32, i32
  }
}

</mosaic_0001>

<bundles_post_ra>
// kernel: reduction_a_forward.6
= control target key start
LH: loop header
LB: loop body
LE: loop exit
PB: predicated region body
PF: predicated region fallthrough
CT: control target
= control target key end

     0   :  { %s897_s9 = smov 0   ;;  %s989_s0 = inlined_call_operand.vmem [shape: f32[2,16,16,4], index: 0, kind: input, shape index: {}]   ;;  %s990_s1 = inlined_call_operand.vmem [shape: bf16[1,4,128], index: 1, kind: input, shape index: {}]   ;;  %s991_s2 = inlined_call_operand.vmem [shape: bf16[2,16,16,128], index: 2, kind: output, shape index: {}]  }
   0x1 LB: > { %s623_s10 = sadd.s32 4294967295, %s880_s9   ;;  %p627_p0 = scmp.ge.s32.totalorder %s880_s9, 1  ;;  %s880_s9 = sphi %s897_s9, %s12_s9  }
   0x2   : > { %p112_p1 = scmp.lt.s32.totalorder %s880_s9, 3 }
   0x4   : > { %p113_p2 = pnand %p627_p0, %p112_p1 }
   0x5   : > { %p134_p3 = scmp.lt.s32.totalorder (!%p113_p2), %s623_s10, 1 }
   0x6   : > { %116 = sbr.rel (%p113_p2) target bundleno = 245 (0xf5), region = 28 }
   0xb   : > { %v193_v0 = vld [vmem:[%s990_s1] sm:$0x3]  ;;  %vm243_vm0 = vcmask 1041408   ;;  %s993_s10 = smov (!%p134_p3, %s623_s10), 1  ;;  %vm194_vm1 = vcmask 31744  }
   0xc   : > { %864 = vmatprep.subr.msk.bf16.mxu0 %vm243_vm0, %v193_v0  ;;  %865 = vmatprep.subr.msk.bf16.mxu1 %vm243_vm0, %v193_v0  ;;  %v245_v1 = vsel %vm243_vm0, %v193_v0, 0  ;;  %s682_s13 = sshll.u32 %s993_s10, 8  ;;  %s683_s17 = sshll.u32 %s993_s10, 7 }
   0xd   : > { %829 = vmatpush3.bf16.msra.mxu0 %v245_v1  ;;  %863 = vmatpush3.bf16.msra.mxu1 %v245_v1  ;;  %s914_s16 = scalar_lea.vmem %s989_s0, %s682_s13  ;;  %s968_s20 = scalar_lea.vmem %s991_s2, %s683_s17 }
   0xe   : > { %v145_v2 = vld [vmem:[%s914_s16] sm:$0xff]  ;;  %v146_v3 = vld [vmem:[%s914_s16 + $0x8] sm:$0xff]  ;;  %v147_v7 = vld [vmem:[%s914_s16 + $0x10] sm:$0xff] }
   0xf   : > { %v161_v4 = vld [vmem:[%s914_s16 + $0x80] sm:$0xff]  ;;  %v177_v5 = vpack.c.bf16 %v146_v3, %v145_v2  ;;  %v162_v6 = vld [vmem:[%s914_s16 + $0x88] sm:$0xff]  ;;  %v148_v8 = vld [vmem:[%s914_s16 + $0x18] sm:$0xff] }
  0x10   : > { %v185_v9 = vpack.c.bf16 %v162_v6, %v161_v4  ;;  %v178_v10 = vpack.c.bf16 %v148_v8, %v147_v7  ;;  %v163_v11 = vld [vmem:[%s914_s16 + $0x90] sm:$0xff]  ;;  %v164_v12 = vld [vmem:[%s914_s16 + $0x98] sm:$0xff]  ;;  %v149_v13 = vld [vmem:[%s914_s16 + $0x20] sm:$0xff] }
  0x11   : > { %830 = vmatprep.mubr.msk.bf16.mxu0 %vm194_vm1, %v177_v5  ;;  %v186_v14 = vpack.c.bf16 %v164_v12, %v163_v11  ;;  %v150_v15 = vld [vmem:[%s914_s16 + $0x28] sm:$0xff]  ;;  %v165_v16 = vld [vmem:[%s914_s16 + $0xa0] sm:$0xff]  ;;  %v151_v20 = vld [vmem:[%s914_s16 + $0x30] sm:$0xff] }
  0x12   : > { %v166_v17 = vld [vmem:[%s914_s16 + $0xa8] sm:$0xff]  ;;  %846 = vmatprep.mubr.msk.bf16.mxu1 %vm194_vm1, %v185_v9  ;;  %831 = vmatmul.mubr.msk.bf16.vlgmr.msra.gmra.mxu0 %vm194_vm1, %v178_v10  ;;  %v179_v18 = vpack.c.bf16 %v150_v15, %v149_v13  ;;  %v152_v21 = vld [vmem:[%s914_s16 + $0x38] sm:$0xff]  ;;  %v167_v22 = vld [vmem:[%s914_s16 + $0xb0] sm:$0xff] }
  0x13   : > { %v187_v19 = vpack.c.bf16 %v166_v17, %v165_v16  ;;  %847 = vmatmul.mubr.msk.bf16.vlgmr.msra.gmra.mxu1 %vm194_vm1, %v186_v14  ;;  %v168_v23 = vld [vmem:[%s914_s16 + $0xb8] sm:$0xff]  ;;  %v153_v24 = vld [vmem:[%s914_s16 + $0x40] sm:$0xff]  ;;  %v154_v25 = vld [vmem:[%s914_s16 + $0x48] sm:$0xff]  ;;  %v180_v28 = vpack.c.bf16 %v152_v21, %v151_v20 }
  0x14   : > { %834 = vmatprep.mubr.msk.bf16.mxu0 %vm194_vm1, %v179_v18  ;;  %v169_v26 = vld [vmem:[%s914_s16 + $0xc0] sm:$0xff]  ;;  %v170_v27 = vld [vmem:[%s914_s16 + $0xc8] sm:$0xff]  ;;  %v188_v29 = vpack.c.bf16 %v168_v23, %v167_v22  ;;  %v181_v30 = vpack.c.bf16 %v154_v25, %v153_v24  ;;  %v155_v32 = vld [vmem:[%s914_s16 + $0x50] sm:$0xff] }
  0x15   : > { %850 = vmatprep.mubr.msk.bf16.mxu1 %vm194_vm1, %v187_v19  ;;  %v189_v31 = vpack.c.bf16 %v170_v27, %v169_v26  ;;  %v156_v33 = vld [vmem:[%s914_s16 + $0x58] sm:$0xff]  ;;  %v171_v34 = vld [vmem:[%s914_s16 + $0xd0] sm:$0xff]  ;;  %v157_v36 = vld [vmem:[%s914_s16 + $0x60] sm:$0xff] }
  0x16   : > { %v172_v35 = vld [vmem:[%s914_s16 + $0xd8] sm:$0xff]  ;;  %v158_v37 = vld [vmem:[%s914_s16 + $0x68] sm:$0xff]  ;;  %v173_v38 = vld [vmem:[%s914_s16 + $0xe0] sm:$0xff]  ;;  %v182_v40 = vpack.c.bf16 %v156_v33, %v155_v32 }
  0x17   : > { %v174_v39 = vld [vmem:[%s914_s16 + $0xe8] sm:$0xff]  ;;  %v190_v41 = vpack.c.bf16 %v172_v35, %v171_v34  ;;  %v183_v42 = vpack.c.bf16 %v158_v37, %v157_v36  ;;  %v159_v44 = vld [vmem:[%s914_s16 + $0x70] sm:$0xff]  ;;  %v160_v45 = vld [vmem:[%s914_s16 + $0x78] sm:$0xff] }
  0x18   : > { %v191_v43 = vpack.c.bf16 %v174_v39, %v173_v38  ;;  %v175_v46 = vld [vmem:[%s914_s16 + $0xf0] sm:$0xff]  ;;  %v176_v47 = vld [vmem:[%s914_s16 + $0xf8] sm:$0xff]  ;;  %v184_v48 = vpack.c.bf16 %v160_v45, %v159_v44 }
  0x19   : > { %v192_v49 = vpack.c.bf16 %v176_v47, %v175_v46 }
  0x1a   : > { %835 = vmatmul.mubr.msk.bf16.gmra.mxu0 %vm194_vm1, %v180_v28 }
  0x1b   : > { %851 = vmatmul.mubr.msk.bf16.gmra.mxu1 %vm194_vm1, %v188_v29  ;;  %838 = vmatprep.mubr.msk.bf16.mxu0 %vm194_vm1, %v181_v30 }
  0x1c   : > { %854 = vmatprep.mubr.msk.bf16.mxu1 %vm194_vm1, %v189_v31 }
  0x22   : > { %839 = vmatmul.mubr.msk.bf16.gmra.mxu0 %vm194_vm1, %v182_v40 }
  0x23   : > { %855 = vmatmul.mubr.msk.bf16.gmra.mxu1 %vm194_vm1, %v190_v41  ;;  %842 = vmatprep.mubr.msk.bf16.mxu0 %vm194_vm1, %v183_v42 }
  0x24   : > { %858 = vmatprep.mubr.msk.bf16.mxu1 %vm194_vm1, %v191_v43 }
  0x2a   : > { %843 = vmatmul.mubr.msk.bf16.gmra.mxu0 %vm194_vm1, %v184_v48 }
  0x2b   : > { %859 = vmatmul.mubr.msk.bf16.gmra.mxu1 %vm194_vm1, %v192_v49 }
  0xd2   : > { %v832_v50 = vpop.f32.mrf.mxu0 }
  0xd3   : > { %v848_v51 = vpop.f32.mrf.mxu1 }
  0xd4   : > { %v281_v52 = vpop.f32.mrf.mxu0 }
  0xd5   : > { %v345_v53 = vpop.f32.mrf.mxu1 }
  0xd6   : > { %v833_v54 = vpop.f32.mrf.mxu0 }
  0xd7   : > { %v724_v55 = vpack.c.bf16 %v833_v54, %v832_v50  ;;  %v849_v56 = vpop.f32.mrf.mxu1 }
  0xd8   : > { %v764_v57 = vpack.c.bf16 %v849_v56, %v848_v51  ;;  %v284_v58 = vpop.f32.mrf.mxu0 }
  0xd9   : > { %796 = vst [vmem:[%s968_s20 + $0x8] sm:$0xff] %v724_v55   ;;  %v719_v59 = vpack.c.bf16 %v284_v58, %v281_v52  ;;  %v348_v60 = vpop.f32.mrf.mxu1 }
  0xda   : > { %804 = vst [vmem:[%s968_s20 + $0x48] sm:$0xff] %v764_v57   ;;  %v759_v61 = vpack.c.bf16 %v348_v60, %v345_v53  ;;  %v836_v62 = vpop.f32.mrf.mxu0 }
  0xdb   : > { %720 = vst [vmem:[%s968_s20] sm:$0xff] %v719_v59   ;;  %v852_v63 = vpop.f32.mrf.mxu1 }
  0xdc   : > { %803 = vst [vmem:[%s968_s20 + $0x40] sm:$0xff] %v759_v61   ;;  %v297_v0 = vpop.f32.mrf.mxu0 }
  0xdd   : > { %v361_v1 = vpop.f32.mrf.mxu1 }
  0xde   : > { %v837_v2 = vpop.f32.mrf.mxu0 }
  0xdf   : > { %v734_v3 = vpack.c.bf16 %v837_v2, %v836_v62  ;;  %v853_v4 = vpop.f32.mrf.mxu1 }
  0xe0   : > { %v774_v5 = vpack.c.bf16 %v853_v4, %v852_v63  ;;  %v300_v6 = vpop.f32.mrf.mxu0 }
  0xe1   : > { %798 = vst [vmem:[%s968_s20 + $0x18] sm:$0xff] %v734_v3   ;;  %v729_v7 = vpack.c.bf16 %v300_v6, %v297_v0  ;;  %v364_v8 = vpop.f32.mrf.mxu1 }
  0xe2   : > { %806 = vst [vmem:[%s968_s20 + $0x58] sm:$0xff] %v774_v5   ;;  %v769_v9 = vpack.c.bf16 %v364_v8, %v361_v1  ;;  %v840_v10 = vpop.f32.mrf.mxu0 }
  0xe3   : > { %797 = vst [vmem:[%s968_s20 + $0x10] sm:$0xff] %v729_v7   ;;  %v856_v11 = vpop.f32.mrf.mxu1 }
  0xe4   : > { %805 = vst [vmem:[%s968_s20 + $0x50] sm:$0xff] %v769_v9   ;;  %v313_v12 = vpop.f32.mrf.mxu0 }
  0xe5   : > { %v377_v13 = vpop.f32.mrf.mxu1 }
  0xe6   : > { %v841_v14 = vpop.f32.mrf.mxu0 }
  0xe7   : > { %v744_v15 = vpack.c.bf16 %v841_v14, %v840_v10  ;;  %v857_v16 = vpop.f32.mrf.mxu1 }
  0xe8   : > { %v784_v17 = vpack.c.bf16 %v857_v16, %v856_v11  ;;  %v316_v18 = vpop.f32.mrf.mxu0 }
  0xe9   : > { %800 = vst [vmem:[%s968_s20 + $0x28] sm:$0xff] %v744_v15   ;;  %v739_v19 = vpack.c.bf16 %v316_v18, %v313_v12  ;;  %v380_v20 = vpop.f32.mrf.mxu1 }
  0xea   : > { %808 = vst [vmem:[%s968_s20 + $0x68] sm:$0xff] %v784_v17   ;;  %v779_v21 = vpack.c.bf16 %v380_v20, %v377_v13  ;;  %v844_v22 = vpop.f32.mrf.mxu0 }
  0xeb   : > { %799 = vst [vmem:[%s968_s20 + $0x20] sm:$0xff] %v739_v19   ;;  %v860_v23 = vpop.f32.mrf.mxu1 }
  0xec   : > { %807 = vst [vmem:[%s968_s20 + $0x60] sm:$0xff] %v779_v21   ;;  %v329_v24 = vpop.f32.mrf.mxu0 }
  0xed   : > { %v393_v25 = vpop.f32.mrf.mxu1 }
  0xee   : > { %v845_v26 = vpop.f32.mrf.mxu0 }
  0xef   : > { %v754_v27 = vpack.c.bf16 %v845_v26, %v844_v22  ;;  %v861_v28 = vpop.f32.mrf.mxu1 }
  0xf0   : > { %v794_v29 = vpack.c.bf16 %v861_v28, %v860_v23  ;;  %v332_v30 = vpop.f32.mrf.mxu0 }
  0xf1   : > { %802 = vst [vmem:[%s968_s20 + $0x38] sm:$0xff] %v754_v27   ;;  %v749_v31 = vpack.c.bf16 %v332_v30, %v329_v24  ;;  %v396_v32 = vpop.f32.mrf.mxu1 }
  0xf2   : > { %810 = vst [vmem:[%s968_s20 + $0x78] sm:$0xff] %v794_v29   ;;  %v789_v33 = vpack.c.bf16 %v396_v32, %v393_v25 }
  0xf3   : > { %801 = vst [vmem:[%s968_s20 + $0x30] sm:$0xff] %v749_v31  }
  0xf4   : > { %809 = vst [vmem:[%s968_s20 + $0x70] sm:$0xff] %v789_v33  }
  0xf5 PF: > { %s12_s9 = sadd.s32 1, %s880_s9  }
  0xf6   : > { %p9_p4 = scmp.ge.s32.totalorder %s12_s9, 4  }
  0xf8   :  { %11 = sbr.rel (!%p9_p4) target bundleno = 1 (0x1), region = 58 }

// kernel: reduction_a_forward.7
= control target key start
LH: loop header
LB: loop body
LE: loop exit
PB: predicated region body
PF: predicated region fallthrough
CT: control target
= control target key end

     0   :  { %s4148_s9 = smov 0   ;;  %s5187_s0 = inlined_call_operand.vmem [shape: f32[2,18,18,32], index: 0, kind: input, shape index: {}]   ;;  %s5188_s1 = inlined_call_operand.vmem [shape: bf16[9,32,128], index: 1, kind: input, shape index: {}]   ;;  %s5189_s2 = inlined_call_operand.vmem [shape: bf16[2,16,16,128], index: 2, kind: output, shape index: {}]  }
   0x1 LB: > { %s3052_s10 = sadd.s32 4294967295, %s4131_s9   ;;  %p3056_p0 = scmp.ge.s32.totalorder %s4131_s9, 1  ;;  %s4131_s9 = sphi %s4148_s9, %s12_s9  }
   0x2   : > { %p112_p1 = scmp.lt.s32.totalorder %s4131_s9, 3 }
   0x4   : > { %p113_p2 = pnand %p3056_p0, %p112_p1 }
   0x6   : > { %116 = sbr.rel (%p113_p2) target bundleno = 509 (0x1fd), region = 28 }
   0xb   : > { %v4107_v0 = vld [vmem:[%s5188_s1 + $0x18] sm:$0xff]   ;;  %p134_p3 = scmp.lt.s32.totalorder %s3052_s10, 1  ;;  %v4108_v1 = vld [vmem:[%s5188_s1 + $0x10] sm:$0xff]   ;;  %v4109_v2 = vld [vmem:[%s5188_s1 + $0x8] sm:$0xff]   ;;  %vm262_vm0 = vcmask 261120  }
   0xc   : > { %3770 = vmatprep.subr.bf16.mxu0 %v4107_v0  ;;  %4094 = vmatprep.subr.bf16.mxu1 %v4107_v0  ;;  %v4110_v3 = vld [vmem:[%s5188_s1 + $0x28] sm:$0xff]   ;;  %v4111_v11 = vld [vmem:[%s5188_s1] sm:$0xff]   ;;  %v4226_v32 = vld [vmem:[%s5188_s1 + $0x38] sm:$0xff]  }
   0xd   : > { %s5223_s10 = smov (!%p134_p3, %s3052_s10), 1  ;;  %3771 = vmatpush3.bf16.msra.mxu0 %v4107_v0  ;;  %4096 = vmatpush3.bf16.msra.mxu1 %v4107_v0  ;;  %v4112_v23 = vld [vmem:[%s5188_s1 + $0x20] sm:$0xff]   ;;  %v4114_v43 = vld [vmem:[%s5188_s1 + $0x48] sm:$0xff]  }
   0xe   : > { %3772 = vmatprep.subr.bf16.mxu0 %v4108_v1  ;;  %4095 = vmatprep.subr.bf16.mxu1 %v4108_v1  ;;  %s4098_s17 = smul.u32 432, %s5223_s10 }
  0x10   : > { %s4174_s22 = scalar_lea.vmem %s5187_s0, %s4098_s17 }
  0x11   : > { %3773 = vmatpush3.bf16.msra.mxu0 %v4108_v1  ;;  %4097 = vmatpush3.bf16.msra.mxu1 %v4108_v1  ;;  %v197_v4 = vld [vmem:[%s4174_s22 + $0x1] sm:$0xff]  ;;  %v198_v5 = vld [vmem:[%s4174_s22 + $0x9] sm:$0xff]  ;;  %v199_v9 = vld [vmem:[%s4174_s22 + $0x19] sm:$0xff] }
  0x12   : > { %v213_v6 = vld [vmem:[%s4174_s22 + $0xc1] sm:$0xff]  ;;  %v229_v7 = vpack.c.bf16 %v198_v5, %v197_v4  ;;  %v214_v8 = vld [vmem:[%s4174_s22 + $0xc9] sm:$0xff]  ;;  %3806 = vmatprep.subr.bf16.mxu1 %v4109_v2  ;;  %3842 = vmatprep.subr.bf16.mxu0 %v4110_v3  ;;  %v215_v14 = vld [vmem:[%s4174_s22 + $0xd9] sm:$0xff] }
  0x13   : > { %v200_v10 = vld [vmem:[%s4174_s22 + $0x21] sm:$0xff]  ;;  %v4185_v12 = vpack.c.bf16 %v214_v8, %v213_v6  ;;  %v201_v16 = vld [vmem:[%s4174_s22 + $0x31] sm:$0xff]  ;;  %v202_v18 = vld [vmem:[%s4174_s22 + $0x39] sm:$0xff] }
  0x14   : > { %v4187_v13 = vpack.c.bf16 %v200_v10, %v199_v9  ;;  %v216_v15 = vld [vmem:[%s4174_s22 + $0xe1] sm:$0xff]  ;;  %3774 = vmatprep.mubr.msk.bf16.mxu0 %vm262_vm0, %v229_v7  ;;  %v217_v19 = vld [vmem:[%s4174_s22 + $0xf1] sm:$0xff]  ;;  %v218_v20 = vld [vmem:[%s4174_s22 + $0xf9] sm:$0xff]  ;;  %v4202_v21 = vpack.c.bf16 %v202_v18, %v201_v16 }
  0x15   : > { %v4193_v17 = vpack.c.bf16 %v216_v15, %v215_v14  ;;  %3790 = vmatprep.mubr.msk.bf16.mxu1 %vm262_vm0, %v4185_v12  ;;  %v4204_v22 = vpack.c.bf16 %v218_v20, %v217_v19  ;;  %v203_v24 = vld [vmem:[%s4174_s22 + $0x49] sm:$0xff]  ;;  %v204_v25 = vld [vmem:[%s4174_s22 + $0x51] sm:$0xff]  ;;  %v205_v28 = vld [vmem:[%s4174_s22 + $0x61] sm:$0xff] }
  0x16   : > { %3775 = vmatmul.mubr.msk.bf16.vlgmr.msra.gmra.mxu0 %vm262_vm0, %v4187_v13  ;;  %v219_v26 = vld [vmem:[%s4174_s22 + $0x109] sm:$0xff]  ;;  %v220_v27 = vld [vmem:[%s4174_s22 + $0x111] sm:$0xff]  ;;  %v221_v30 = vld [vmem:[%s4174_s22 + $0x121] sm:$0xff]  ;;  %v4228_v33 = vpack.c.bf16 %v204_v25, %v203_v24 }
  0x17   : > { %3791 = vmatmul.mubr.msk.bf16.vlgmr.msra.gmra.mxu1 %vm262_vm0, %v4193_v17  ;;  %3843 = vmatpush3.bf16.msra.mxu0 %v4110_v3  ;;  %v206_v29 = vld [vmem:[%s4174_s22 + $0x69] sm:$0xff]  ;;  %v4230_v34 = vpack.c.bf16 %v220_v27, %v219_v26  ;;  %v207_v37 = vld [vmem:[%s4174_s22 + $0x79] sm:$0xff]  ;;  %v208_v38 = vld [vmem:[%s4174_s22 + $0x81] sm:$0xff] }
  0x18   : > { %3807 = vmatpush3.bf16.msra.mxu1 %v4109_v2  ;;  %3778 = vmatprep.mubr.msk.bf16.mxu0 %vm262_vm0, %v4202_v21  ;;  %v222_v31 = vld [vmem:[%s4174_s22 + $0x129] sm:$0xff]  ;;  %v4232_v35 = vpack.c.bf16 %v206_v29, %v205_v28  ;;  %v223_v39 = vld [vmem:[%s4174_s22 + $0x139] sm:$0xff]  ;;  %v224_v40 = vld [vmem:[%s4174_s22 + $0x141] sm:$0xff]  ;;  %v4256_v46 = vpack.c.bf16 %v208_v38, %v207_v37 }
  0x19   : > { %3794 = vmatprep.mubr.msk.bf16.mxu1 %vm262_vm0, %v4204_v22  ;;  %3808 = vmatprep.subr.bf16.mxu1 %v4111_v11  ;;  %v4234_v36 = vpack.c.bf16 %v222_v31, %v221_v30  ;;  %v209_v41 = vld [vmem:[%s4174_s22 + $0x91] sm:$0xff]  ;;  %v210_v42 = vld [vmem:[%s4174_s22 + $0x99] sm:$0xff]  ;;  %v4258_v47 = vpack.c.bf16 %v224_v40, %v223_v39  ;;  %v211_v50 = vld [vmem:[%s4174_s22 + $0xa9] sm:$0xff] }
  0x1a   : > { %3844 = vmatprep.subr.bf16.mxu0 %v4112_v23  ;;  %v225_v44 = vld [vmem:[%s4174_s22 + $0x151] sm:$0xff]  ;;  %v226_v45 = vld [vmem:[%s4174_s22 + $0x159] sm:$0xff]  ;;  %v4260_v48 = vpack.c.bf16 %v210_v42, %v209_v41  ;;  %v227_v52 = vld [vmem:[%s4174_s22 + $0x169] sm:$0xff] }
  0x1b   : > { %3845 = vmatpush3.bf16.msra.mxu0 %v4112_v23  ;;  %v4262_v49 = vpack.c.bf16 %v226_v45, %v225_v44  ;;  %v212_v51 = vld [vmem:[%s4174_s22 + $0xb1] sm:$0xff]  ;;  %v693_v54 = vld [vmem:[%s4174_s22 + $0x2] sm:$0xff]  ;;  %v695_v62 = vld [vmem:[%s4174_s22 + $0x1a] sm:$0xff] }
  0x1c   : > { %3809 = vmatpush3.bf16.msra.mxu1 %v4111_v11  ;;  %3914 = vmatprep.subr.bf16.mxu0 %v4114_v43  ;;  %v228_v53 = vld [vmem:[%s4174_s22 + $0x171] sm:$0xff]  ;;  %v145_v56 = vld [vmem:[%s4174_s22] sm:$0xff]  ;;  %v146_v57 = vld [vmem:[%s4174_s22 + $0x8] sm:$0xff]  ;;  %v4280_v58 = vpack.c.bf16 %v212_v51, %v211_v50 }
  0x1d   : > { %3878 = vmatprep.subr.bf16.mxu1 %v4226_v32  ;;  %v694_v55 = vld [vmem:[%s4174_s22 + $0xa] sm:$0xff]  ;;  %v4282_v59 = vpack.c.bf16 %v228_v53, %v227_v52  ;;  %v177_v61 = vpack.c.bf16 %v146_v57, %v145_v56  ;;  %v696_v63 = vld [vmem:[%s4174_s22 + $0x22] sm:$0xff]  ;;  %v147_v0 = vld [vmem:[%s4174_s22 + $0x18] sm:$0xff] }
  0x1e   : > { %3779 = vmatmul.mubr.msk.bf16.gmra.mxu0 %vm262_vm0, %v4228_v33  ;;  %v725_v60 = vpack.c.bf16 %v694_v55, %v693_v54  ;;  %v148_v1 = vld [vmem:[%s4174_s22 + $0x20] sm:$0xff]  ;;  %v149_v2 = vld [vmem:[%s4174_s22 + $0x30] sm:$0xff]  ;;  %v150_v3 = vld [vmem:[%s4174_s22 + $0x38] sm:$0xff]  ;;  %v4296_v4 = vpack.c.bf16 %v696_v63, %v695_v62 }
  0x1f   : > { %3795 = vmatmul.mubr.msk.bf16.gmra.mxu1 %vm262_vm0, %v4230_v34  ;;  %3782 = vmatprep.mubr.msk.bf16.mxu0 %vm262_vm0, %v4232_v35  ;;  %v697_v5 = vld [vmem:[%s4174_s22 + $0x32] sm:$0xff]  ;;  %v698_v6 = vld [vmem:[%s4174_s22 + $0x3a] sm:$0xff]  ;;  %v4300_v7 = vpack.c.bf16 %v148_v1, %v147_v0  ;;  %v4302_v8 = vpack.c.bf16 %v150_v3, %v149_v2  ;;  %v699_v10 = vld [vmem:[%s4174_s22 + $0x4a] sm:$0xff] }
  0x20   : > { %3798 = vmatprep.mubr.msk.bf16.mxu1 %vm262_vm0, %v4234_v36  ;;  %v4304_v9 = vpack.c.bf16 %v698_v6, %v697_v5  ;;  %v700_v11 = vld [vmem:[%s4174_s22 + $0x52] sm:$0xff]  ;;  %v151_v15 = vld [vmem:[%s4174_s22 + $0x48] sm:$0xff]  ;;  %v4116_v19 = vld [vmem:[%s5188_s1 + $0x40] sm:$0xff]  }
  0x21   : > { %v4115_v14 = vld [vmem:[%s5188_s1 + $0x30] sm:$0xff]   ;;  %v701_v18 = vld [vmem:[%s4174_s22 + $0x62] sm:$0xff]  ;;  %v4337_v26 = vld [vmem:[%s5188_s1 + $0x58] sm:$0xff]   ;;  %v4339_v27 = vpack.c.bf16 %v700_v11, %v699_v10 }
  0x22   : > { %v152_v16 = vld [vmem:[%s4174_s22 + $0x50] sm:$0xff]  ;;  %v4328_v23 = vld [vmem:[%s5188_s1 + $0x68] sm:$0xff]   ;;  %v153_v24 = vld [vmem:[%s4174_s22 + $0x60] sm:$0xff] }
  0x23   : > { %v702_v20 = vld [vmem:[%s4174_s22 + $0x6a] sm:$0xff]  ;;  %v4341_v28 = vpack.c.bf16 %v152_v16, %v151_v15  ;;  %v155_v31 = vld [vmem:[%s4174_s22 + $0x78] sm:$0xff]  ;;  %v704_v37 = vld [vmem:[%s4174_s22 + $0x82] sm:$0xff] }
  0x24   : > { %v154_v25 = vld [vmem:[%s4174_s22 + $0x68] sm:$0xff]  ;;  %v4343_v29 = vpack.c.bf16 %v702_v20, %v701_v18  ;;  %v156_v38 = vld [vmem:[%s4174_s22 + $0x80] sm:$0xff]  ;;  %v705_v39 = vld [vmem:[%s4174_s22 + $0x92] sm:$0xff] }
  0x25   : > { %v4345_v30 = vpack.c.bf16 %v154_v25, %v153_v24  ;;  %v706_v40 = vld [vmem:[%s4174_s22 + $0x9a] sm:$0xff]  ;;  %v157_v41 = vld [vmem:[%s4174_s22 + $0x90] sm:$0xff]  ;;  %v4367_v44 = vpack.c.bf16 %v156_v38, %v155_v31  ;;  %v159_v51 = vld [vmem:[%s4174_s22 + $0xa8] sm:$0xff] }
  0x26   : > { %3783 = vmatmul.mubr.msk.bf16.gmra.mxu0 %vm262_vm0, %v4256_v46  ;;  %v158_v42 = vld [vmem:[%s4174_s22 + $0x98] sm:$0xff]  ;;  %v4369_v45 = vpack.c.bf16 %v706_v40, %v705_v39  ;;  %v707_v52 = vld [vmem:[%s4174_s22 + $0xaa] sm:$0xff]  ;;  %v709_v55 = vld [vmem:[%s4174_s22 + $0xc2] sm:$0xff] }
  0x27   : > { %3799 = vmatmul.mubr.msk.bf16.gmra.mxu1 %vm262_vm0, %v4258_v47  ;;  %3786 = vmatprep.mubr.msk.bf16.mxu0 %vm262_vm0, %v4260_v48  ;;  %v4371_v50 = vpack.c.bf16 %v158_v42, %v157_v41  ;;  %v708_v53 = vld [vmem:[%s4174_s22 + $0xb2] sm:$0xff]  ;;  %v710_v56 = vld [vmem:[%s4174_s22 + $0xca] sm:$0xff]  ;;  %v161_v57 = vld [vmem:[%s4174_s22 + $0xc0] sm:$0xff] }
  0x28   : > { %3802 = vmatprep.mubr.msk.bf16.mxu1 %vm262_vm0, %v4262_v49  ;;  %v160_v54 = vld [vmem:[%s4174_s22 + $0xb0] sm:$0xff]  ;;  %v4393_v63 = vpack.c.bf16 %v710_v56, %v709_v55  ;;  %v163_v1 = vld [vmem:[%s4174_s22 + $0xd8] sm:$0xff]  ;;  %v712_v3 = vld [vmem:[%s4174_s22 + $0xe2] sm:$0xff] }
  0x29   : > { %v4391_v62 = vpack.c.bf16 %v160_v54, %v159_v51  ;;  %v711_v2 = vld [vmem:[%s4174_s22 + $0xda] sm:$0xff]  ;;  %v713_v6 = vld [vmem:[%s4174_s22 + $0xf2] sm:$0xff]  ;;  %v167_v20 = vld [vmem:[%s4174_s22 + $0x108] sm:$0xff] }
  0x2a   : > { %v164_v5 = vld [vmem:[%s4174_s22 + $0xe0] sm:$0xff]  ;;  %v165_v11 = vld [vmem:[%s4174_s22 + $0xf0] sm:$0xff]  ;;  %v4413_v15 = vpack.c.bf16 %v712_v3, %v711_v2  ;;  %v170_v39 = vld [vmem:[%s4174_s22 + $0x128] sm:$0xff] }
  0x2b   : > { %v714_v10 = vld [vmem:[%s4174_s22 + $0xfa] sm:$0xff]  ;;  %v4415_v16 = vpack.c.bf16 %v164_v5, %v163_v1  ;;  %v715_v24 = vld [vmem:[%s4174_s22 + $0x10a] sm:$0xff]  ;;  %v716_v25 = vld [vmem:[%s4174_s22 + $0x112] sm:$0xff] }
  0x2c   : > { %v4417_v18 = vpack.c.bf16 %v714_v10, %v713_v6  ;;  %v168_v31 = vld [vmem:[%s4174_s22 + $0x110] sm:$0xff]  ;;  %v169_v38 = vld [vmem:[%s4174_s22 + $0x120] sm:$0xff]  ;;  %v4437_v40 = vpack.c.bf16 %v716_v25, %v715_v24  ;;  %v174_v1 = vld [vmem:[%s4174_s22 + $0x158] sm:$0xff] }
  0x2d   : > { %v4439_v41 = vpack.c.bf16 %v168_v31, %v167_v20  ;;  %v4443_v51 = vpack.c.bf16 %v170_v39, %v169_v38  ;;  %v720_v54 = vld [vmem:[%s4174_s22 + $0x142] sm:$0xff]  ;;  %v721_v56 = vld [vmem:[%s4174_s22 + $0x152] sm:$0xff]  ;;  %v723_v10 = vld [vmem:[%s4174_s22 + $0x16a] sm:$0xff] }
  0x2e   : > { %3787 = vmatmul.mubr.msk.bf16.gmra.mxu0 %vm262_vm0, %v4280_v58  ;;  %v172_v55 = vld [vmem:[%s4174_s22 + $0x140] sm:$0xff]  ;;  %v176_v20 = vld [vmem:[%s4174_s22 + $0x170] sm:$0xff] }
  0x2f   : > { %3803 = vmatmul.mubr.msk.bf16.gmra.mxu1 %vm262_vm0, %v4282_v59  ;;  %3846 = vmatprep.mubr.msk.bf16.mxu0 %vm262_vm0, %v725_v60  ;;  %v162_v60 = vld [vmem:[%s4174_s22 + $0xc8] sm:$0xff]  ;;  %v4119_v31 = vld [vmem:[%s5188_s1 + $0x50] sm:$0xff]   ;;  %v3315_v38 = vld [vmem:[%s4174_s22 + $0x1a0] sm:$0xff] }
  0x30   : > { %3810 = vmatprep.mubr.msk.bf16.mxu1 %vm262_vm0, %v177_v61  ;;  %v4389_v61 = vpack.c.bf16 %v708_v53, %v707_v52  ;;  %v4395_v0 = vpack.c.bf16 %v162_v60, %v161_v57  ;;  %v171_v52 = vld [vmem:[%s4174_s22 + $0x138] sm:$0xff]  ;;  %v173_v60 = vld [vmem:[%s4174_s22 + $0x150] sm:$0xff] }
  0x31   : > { %v719_v53 = vld [vmem:[%s4174_s22 + $0x13a] sm:$0xff]  ;;  %v4463_v3 = vpack.c.bf16 %v172_v55, %v171_v52  ;;  %v4467_v6 = vpack.c.bf16 %v174_v1, %v173_v60  ;;  %v3338_v52 = vld [vmem:[%s4174_s22 + $0x31] sm:$0xff] }
  0x32   : > { %v722_v57 = vld [vmem:[%s4174_s22 + $0x15a] sm:$0xff]  ;;  %v4461_v2 = vpack.c.bf16 %v720_v54, %v719_v53 }
  0x33   : > { %v4465_v5 = vpack.c.bf16 %v722_v57, %v721_v56  ;;  %v3339_v53 = vld [vmem:[%s4174_s22 + $0x39] sm:$0xff] }
  0x34   : > { %v2257_v1 = vpack.c.bf16 %v3339_v53, %v3338_v52 }
  0x36   : > { %3847 = vmatmul.mubr.msk.bf16.vlgmr.msra.gmra.mxu0 %vm262_vm0, %v4296_v4 }
  0x37   : > { %3811 = vmatmul.mubr.msk.bf16.vlgmr.msra.gmra.mxu1 %vm262_vm0, %v4300_v7  ;;  %3915 = vmatpush3.bf16.msra.mxu0 %v4114_v43 }
  0x38   : > { %3879 = vmatpush3.bf16.msra.mxu1 %v4226_v32  ;;  %3814 = vmatprep.mubr.msk.bf16.mxu1 %vm262_vm0, %v4302_v8  ;;  %v703_v32 = vld [vmem:[%s4174_s22 + $0x7a] sm:$0xff] }
  0x39   : > { %3850 = vmatprep.mubr.msk.bf16.mxu0 %vm262_vm0, %v4304_v9  ;;  %3880 = vmatprep.subr.bf16.mxu1 %v4115_v14  ;;  %v4365_v43 = vpack.c.bf16 %v704_v37, %v703_v32  ;;  %v717_v32 = vld [vmem:[%s4174_s22 + $0x122] sm:$0xff]  ;;  %v718_v37 = vld [vmem:[%s4174_s22 + $0x12a] sm:$0xff] }
  0x3a   : > { %3916 = vmatprep.subr.bf16.mxu0 %v4116_v19  ;;  %v4441_v42 = vpack.c.bf16 %v718_v37, %v717_v32  ;;  %v4120_v32 = vld [vmem:[%s5188_s1 + $0x60] sm:$0xff]   ;;  %v3314_v37 = vld [vmem:[%s4174_s22 + $0x198] sm:$0xff] }
  0x3b   : > { %3917 = vmatpush3.bf16.msra.mxu0 %v4116_v19  ;;  %v1966_v55 = vpack.c.bf16 %v3315_v38, %v3314_v37  ;;  %v3346_v37 = vld [vmem:[%s4174_s22 + $0x91] sm:$0xff]  ;;  %v3347_v38 = vld [vmem:[%s4174_s22 + $0x99] sm:$0xff] }
  0x3c   : > { %3881 = vmatpush3.bf16.msra.mxu1 %v4115_v14  ;;  %3986 = vmatprep.subr.bf16.mxu0 %v4328_v23  ;;  %v166_v14 = vld [vmem:[%s4174_s22 + $0xf8] sm:$0xff] }
  0x3d   : > { %3950 = vmatprep.subr.bf16.mxu1 %v4337_v26  ;;  %v4419_v19 = vpack.c.bf16 %v166_v14, %v165_v11  ;;  %v724_v11 = vld [vmem:[%s4174_s22 + $0x172] sm:$0xff]  ;;  %v175_v14 = vld [vmem:[%s4174_s22 + $0x168] sm:$0xff] }
  0x3e   : > { %3851 = vmatmul.mubr.msk.bf16.gmra.mxu0 %vm262_vm0, %v4339_v27  ;;  %v4481_v24 = vpack.c.bf16 %v724_v11, %v723_v10  ;;  %v4483_v25 = vpack.c.bf16 %v176_v20, %v175_v14  ;;  %v3340_v10 = vld [vmem:[%s4174_s22 + $0x49] sm:$0xff]  ;;  %v3341_v11 = vld [vmem:[%s4174_s22 + $0x51] sm:$0xff]  ;;  %v3342_v20 = vld [vmem:[%s4174_s22 + $0x61] sm:$0xff] }
  0x3f   : > { %3815 = vmatmul.mubr.msk.bf16.gmra.mxu1 %vm262_vm0, %v4341_v28  ;;  %3854 = vmatprep.mubr.msk.bf16.mxu0 %vm262_vm0, %v4343_v29 }
  0x40   : > { %3818 = vmatprep.mubr.msk.bf16.mxu1 %vm262_vm0, %v4345_v30 }
  0x46   : > { %3855 = vmatmul.mubr.msk.bf16.gmra.mxu0 %vm262_vm0, %v4365_v43 }
  0x47   : > { %3819 = vmatmul.mubr.msk.bf16.gmra.mxu1 %vm262_vm0, %v4367_v44  ;;  %3858 = vmatprep.mubr.msk.bf16.mxu0 %vm262_vm0, %v4369_v45 }
  0x48   : > { %3822 = vmatprep.mubr.msk.bf16.mxu1 %vm262_vm0, %v4371_v50 }
  0x4e   : > { %3859 = vmatmul.mubr.msk.bf16.gmra.mxu0 %vm262_vm0, %v4389_v61 }
  0x4f   : > { %3823 = vmatmul.mubr.msk.bf16.gmra.mxu1 %vm262_vm0, %v4391_v62  ;;  %3862 = vmatprep.mubr.msk.bf16.mxu0 %vm262_vm0, %v4393_v63 }
  0x50   : > { %3826 = vmatprep.mubr.msk.bf16.mxu1 %vm262_vm0, %v4395_v0 }
  0x56   : > { %3863 = vmatmul.mubr.msk.bf16.gmra.mxu0 %vm262_vm0, %v4413_v15 }
  0x57   : > { %3827 = vmatmul.mubr.msk.bf16.gmra.mxu1 %vm262_vm0, %v4415_v16  ;;  %3866 = vmatprep.mubr.msk.bf16.mxu0 %vm262_vm0, %v4417_v18 }
  0x58   : > { %3830 = vmatprep.mubr.msk.bf16.mxu1 %vm262_vm0, %v4419_v19 }
  0x5e   : > { %3867 = vmatmul.mubr.msk.bf16.gmra.mxu0 %vm262_vm0, %v4437_v40 }
  0x5f   : > { %3831 = vmatmul.mubr.msk.bf16.gmra.mxu1 %vm262_vm0, %v4439_v41  ;;  %3870 = vmatprep.mubr.msk.bf16.mxu0 %vm262_vm0, %v4441_v42 }
  0x60   : > { %3834 = vmatprep.mubr.msk.bf16.mxu1 %vm262_vm0, %v4443_v51 }
  0x66   : > { %3871 = vmatmul.mubr.msk.bf16.gmra.mxu0 %vm262_vm0, %v4461_v2 }
  0x67   : > { %3835 = vmatmul.mubr.msk.bf16.gmra.mxu1 %vm262_vm0, %v4463_v3  ;;  %3874 = vmatprep.mubr.msk.bf16.mxu0 %vm262_vm0, %v4465_v5 }
  0x68   : > { %3838 = vmatprep.mubr.msk.bf16.mxu1 %vm262_vm0, %v4467_v6 }
  0x6e   : > { %3875 = vmatmul.mubr.msk.bf16.gmra.mxu0 %vm262_vm0, %v4481_v24 }
  0x6f   : > { %3839 = vmatmul.mubr.msk.bf16.gmra.mxu1 %vm262_vm0, %v4483_v25  ;;  %3918 = vmatprep.mubr.msk.bf16.mxu0 %vm262_vm0, %v4187_v13  ;;  %v4122_v13 = vld [vmem:[%s5188_s1 + $0x88] sm:$0xff]  }
  0x70   : > { %3882 = vmatprep.mubr.msk.bf16.mxu1 %vm262_vm0, %v4300_v7 }
  0x76   : > { %3919 = vmatmul.mubr.msk.bf16.vlgmr.msra.gmra.mxu0 %vm262_vm0, %v4202_v21  ;;  %v4121_v21 = vld [vmem:[%s5188_s1 + $0x78] sm:$0xff]  }
  0x77   : > { %3883 = vmatmul.mubr.msk.bf16.vlgmr.msra.gmra.mxu1 %vm262_vm0, %v4302_v8  ;;  %3987 = vmatpush3.bf16.msra.mxu0 %v4328_v23 }
  0x78   : > { %3951 = vmatpush3.bf16.msra.mxu1 %v4337_v26  ;;  %3886 = vmatprep.mubr.msk.bf16.mxu1 %vm262_vm0, %v4341_v28 }
  0x79   : > { %3922 = vmatprep.mubr.msk.bf16.mxu0 %vm262_vm0, %v4228_v33  ;;  %3952 = vmatprep.subr.bf16.mxu1 %v4119_v31  ;;  %v3153_v33 = vld [vmem:[%s4174_s22 + $0x188] sm:$0xff] }
  0x7a   : > { %3988 = vmatprep.subr.bf16.mxu0 %v4120_v32 }
  0x7b   : > { %3989 = vmatpush3.bf16.msra.mxu0 %v4120_v32  ;;  %v2258_v32 = vpack.c.bf16 %v3341_v11, %v3340_v10 }
  0x7c   : > { %3953 = vmatpush3.bf16.msra.mxu1 %v4119_v31  ;;  %4058 = vmatprep.subr.bf16.mxu0 %v4122_v13 }
  0x7d   : > { %4022 = vmatprep.subr.bf16.mxu1 %v4121_v21 }
  0x7e   : > { %3923 = vmatmul.mubr.msk.bf16.gmra.mxu0 %vm262_vm0, %v4232_v35 }
  0x7f   : > { %3887 = vmatmul.mubr.msk.bf16.gmra.mxu1 %vm262_vm0, %v4345_v30  ;;  %3926 = vmatprep.mubr.msk.bf16.mxu0 %vm262_vm0, %v4256_v46  ;;  %v4124_v46 = vld [vmem:[%s5188_s1 + $0x80] sm:$0xff]  }
  0x80   : > { %3890 = vmatprep.mubr.msk.bf16.mxu1 %vm262_vm0, %v4367_v44 }
  0x86   : > { %3927 = vmatmul.mubr.msk.bf16.gmra.mxu0 %vm262_vm0, %v4260_v48 }
  0x87   : > { %3891 = vmatmul.mubr.msk.bf16.gmra.mxu1 %vm262_vm0, %v4371_v50  ;;  %3930 = vmatprep.mubr.msk.bf16.mxu0 %vm262_vm0, %v4280_v58 }
  0x88   : > { %3894 = vmatprep.mubr.msk.bf16.mxu1 %vm262_vm0, %v4391_v62 }
  0x8e   : > { %3931 = vmatmul.mubr.msk.bf16.gmra.mxu0 %vm262_vm0, %v4185_v12  ;;  %v3206_v12 = vld [vmem:[%s4174_s22 + $0x181] sm:$0xff] }
  0x8f   : > { %3895 = vmatmul.mubr.msk.bf16.gmra.mxu1 %vm262_vm0, %v4395_v0  ;;  %3934 = vmatprep.mubr.msk.bf16.mxu0 %vm262_vm0, %v4193_v17  ;;  %v3207_v17 = vld [vmem:[%s4174_s22 + $0x189] sm:$0xff] }
  0x90   : > { %3898 = vmatprep.mubr.msk.bf16.mxu1 %vm262_vm0, %v4415_v16 }
  0x96   : > { %3935 = vmatmul.mubr.msk.bf16.gmra.mxu0 %vm262_vm0, %v4204_v22  ;;  %v3152_v22 = vld [vmem:[%s4174_s22 + $0x180] sm:$0xff] }
  0x97   : > { %3899 = vmatmul.mubr.msk.bf16.gmra.mxu1 %vm262_vm0, %v4419_v19  ;;  %3938 = vmatprep.mubr.msk.bf16.mxu0 %vm262_vm0, %v4230_v34  ;;  %v4567_v34 = vpack.c.bf16 %v3207_v17, %v3206_v12  ;;  %v1047_v35 = vpack.c.bf16 %v3153_v33, %v3152_v22 }
  0x98   : > { %3902 = vmatprep.mubr.msk.bf16.mxu1 %vm262_vm0, %v4439_v41 }
  0x9e   : > { %3939 = vmatmul.mubr.msk.bf16.gmra.mxu0 %vm262_vm0, %v4234_v36  ;;  %v4123_v36 = vld [vmem:[%s5188_s1 + $0x70] sm:$0xff]  }
  0x9f   : > { %3903 = vmatmul.mubr.msk.bf16.gmra.mxu1 %vm262_vm0, %v4443_v51  ;;  %3942 = vmatprep.mubr.msk.bf16.mxu0 %vm262_vm0, %v4258_v47 }
  0xa0   : > { %3906 = vmatprep.mubr.msk.bf16.mxu1 %vm262_vm0, %v4463_v3 }
  0xa6   : > { %3943 = vmatmul.mubr.msk.bf16.gmra.mxu0 %vm262_vm0, %v4262_v49 }
  0xa7   : > { %3907 = vmatmul.mubr.msk.bf16.gmra.mxu1 %vm262_vm0, %v4467_v6  ;;  %3946 = vmatprep.mubr.msk.bf16.mxu0 %vm262_vm0, %v4282_v59 }
  0xa8   : > { %3910 = vmatprep.mubr.msk.bf16.mxu1 %vm262_vm0, %v4483_v25 }
  0xae   : > { %3947 = vmatmul.mubr.msk.bf16.gmra.mxu0 %vm262_vm0, %v4567_v34 }
  0xaf   : > { %3911 = vmatmul.mubr.msk.bf16.gmra.mxu1 %vm262_vm0, %v1047_v35  ;;  %3990 = vmatprep.mubr.msk.bf16.mxu0 %vm262_vm0, %v4302_v8 }
  0xb0   : > { %3954 = vmatprep.mubr.msk.bf16.mxu1 %vm262_vm0, %v4296_v4 }
  0xb6   : > { %3991 = vmatmul.mubr.msk.bf16.vlgmr.msra.gmra.mxu0 %vm262_vm0, %v4341_v28 }
  0xb7   : > { %3955 = vmatmul.mubr.msk.bf16.vlgmr.msra.gmra.mxu1 %vm262_vm0, %v4304_v9  ;;  %4059 = vmatpush3.bf16.msra.mxu0 %v4122_v13 }
  0xb8   : > { %4023 = vmatpush3.bf16.msra.mxu1 %v4121_v21  ;;  %3958 = vmatprep.mubr.msk.bf16.mxu1 %vm262_vm0, %v4339_v27 }
  0xb9   : > { %3994 = vmatprep.mubr.msk.bf16.mxu0 %vm262_vm0, %v4345_v30  ;;  %4024 = vmatprep.subr.bf16.mxu1 %v4123_v36 }
  0xba   : > { %4060 = vmatprep.subr.bf16.mxu0 %v4124_v46 }
  0xbb   : > { %4061 = vmatpush3.bf16.msra.mxu0 %v4124_v46 }
  0xbc   : > { %4025 = vmatpush3.bf16.msra.mxu1 %v4123_v36  ;;  %v3345_v36 = vld [vmem:[%s4174_s22 + $0x81] sm:$0xff] }
  0xbe   : > { %3995 = vmatmul.mubr.msk.bf16.gmra.mxu0 %vm262_vm0, %v4367_v44 }
  0xbf   : > { %3959 = vmatmul.mubr.msk.bf16.gmra.mxu1 %vm262_vm0, %v4343_v29  ;;  %3998 = vmatprep.mubr.msk.bf16.mxu0 %vm262_vm0, %v4371_v50 }
  0xc0   : > { %3962 = vmatprep.mubr.msk.bf16.mxu1 %vm262_vm0, %v4365_v43 }
  0xc6   : > { %3999 = vmatmul.mubr.msk.bf16.gmra.mxu0 %vm262_vm0, %v4391_v62 }
  0xc7   : > { %3963 = vmatmul.mubr.msk.bf16.gmra.mxu1 %vm262_vm0, %v4369_v45  ;;  %4002 = vmatprep.mubr.msk.bf16.mxu0 %vm262_vm0, %v4395_v0 }
  0xc8   : > { %3966 = vmatprep.mubr.msk.bf16.mxu1 %vm262_vm0, %v4389_v61 }
  0xce   : > { %4003 = vmatmul.mubr.msk.bf16.gmra.mxu0 %vm262_vm0, %v4415_v16 }
  0xcf   : > { %3967 = vmatmul.mubr.msk.bf16.gmra.mxu1 %vm262_vm0, %v4393_v63  ;;  %4006 = vmatprep.mubr.msk.bf16.mxu0 %vm262_vm0, %v4419_v19 }
  0xd0   : > { %3970 = vmatprep.mubr.msk.bf16.mxu1 %vm262_vm0, %v4413_v15 }
  0xd6   : > { %v4614_v47 = vpop.f32.mrf.mxu0  ;;  %4007 = vmatmul.mubr.msk.bf16.gmra.mxu0 %vm262_vm0, %v4439_v41  ;;  %v3260_v41 = vld [vmem:[%s4174_s22 + $0x182] sm:$0xff] }
  0xd7   : > { %v4618_v48 = vpop.f32.mrf.mxu1  ;;  %3971 = vmatmul.mubr.msk.bf16.gmra.mxu1 %vm262_vm0, %v4417_v18  ;;  %4010 = vmatprep.mubr.msk.bf16.mxu0 %vm262_vm0, %v4443_v51 }
  0xd8   : > { %v4624_v49 = vpop.f32.mrf.mxu0  ;;  %3974 = vmatprep.mubr.msk.bf16.mxu1 %vm262_vm0, %v4437_v40 }
  0xd9   : > { %v4628_v58 = vpop.f32.mrf.mxu1 }
  0xda   : > { %v4630_v59 = vpop.f32.mrf.mxu0 }
  0xdb   : > { %v4632_v4 = vpop.f32.mrf.mxu1 }
  0xdc   : > { %v4634_v7 = vpop.f32.mrf.mxu0 }
  0xdd   : > { %v4636_v8 = vpop.f32.mrf.mxu1 }
  0xde   : > { %v4638_v23 = vpop.f32.mrf.mxu0  ;;  %4011 = vmatmul.mubr.msk.bf16.gmra.mxu0 %vm262_vm0, %v4463_v3 }
  0xdf   : > { %v4642_v26 = vpop.f32.mrf.mxu1  ;;  %3975 = vmatmul.mubr.msk.bf16.gmra.mxu1 %vm262_vm0, %v4441_v42  ;;  %4014 = vmatprep.mubr.msk.bf16.mxu0 %vm262_vm0, %v4467_v6  ;;  %v3261_v42 = vld [vmem:[%s4174_s22 + $0x18a] sm:$0xff] }
  0xe0   : > { %v4648_v28 = vpop.f32.mrf.mxu0  ;;  %3978 = vmatprep.mubr.msk.bf16.mxu1 %vm262_vm0, %v4461_v2  ;;  %v4687_v57 = vpack.c.bf16 %v3261_v42, %v3260_v41 }
  0xe1   : > { %v4652_v30 = vpop.f32.mrf.mxu1 }
  0xe2   : > { %v4654_v44 = vpop.f32.mrf.mxu0 }
  0xe3   : > { %v4656_v50 = vpop.f32.mrf.mxu1 }
  0xe4   : > { %v4658_v62 = vpop.f32.mrf.mxu0 }
  0xe5   : > { %v4660_v0 = vpop.f32.mrf.mxu1 }
  0xe6   : > { %v4662_v16 = vpop.f32.mrf.mxu0  ;;  %4015 = vmatmul.mubr.msk.bf16.gmra.mxu0 %vm262_vm0, %v4483_v25 }
  0xe7   : > { %v4666_v19 = vpop.f32.mrf.mxu1  ;;  %3979 = vmatmul.mubr.msk.bf16.gmra.mxu1 %vm262_vm0, %v4465_v5  ;;  %4018 = vmatprep.mubr.msk.bf16.mxu0 %vm262_vm0, %v1047_v35  ;;  %v3344_v35 = vld [vmem:[%s4174_s22 + $0x79] sm:$0xff] }
  0xe8   : > { %v4673_v39 = vpop.f32.mrf.mxu0  ;;  %3982 = vmatprep.mubr.msk.bf16.mxu1 %vm262_vm0, %v4481_v24  ;;  %v3343_v24 = vld [vmem:[%s4174_s22 + $0x69] sm:$0xff]  ;;  %v2260_v53 = vpack.c.bf16 %v3345_v36, %v3344_v35 }
  0xe9   : > { %v4679_v51 = vpop.f32.mrf.mxu1  ;;  %v2259_v13 = vpack.c.bf16 %v3343_v24, %v3342_v20 }
  0xea   : > { %v4683_v54 = vpop.f32.mrf.mxu0 }
  0xeb   : > { %v4685_v56 = vpop.f32.mrf.mxu1 }
  0xec   : > { %v4689_v60 = vpop.f32.mrf.mxu0 }
  0xed   : > { %v4691_v2 = vpop.f32.mrf.mxu1 }
  0xee   : > { %v4693_v3 = vpop.f32.mrf.mxu0  ;;  %4019 = vmatmul.mubr.msk.bf16.gmra.mxu0 %vm262_vm0, %v1966_v55 }
  0xef   : > { %v4696_v5 = vpop.f32.mrf.mxu1  ;;  %3983 = vmatmul.mubr.msk.bf16.gmra.mxu1 %vm262_vm0, %v4687_v57  ;;  %4062 = vmatprep.mubr.msk.bf16.mxu0 %vm262_vm0, %v4304_v9 }
  0xf0   : > { %v4702_v6 = vpop.f32.mrf.mxu0  ;;  %4026 = vmatprep.mubr.msk.bf16.mxu1 %vm262_vm0, %v2257_v1  ;;  %v2261_v1 = vpack.c.bf16 %v3347_v38, %v3346_v37 }
  0xf1   : > { %v4707_v14 = vpop.f32.mrf.mxu1 }
  0xf2   : > { %v4711_v25 = vpop.f32.mrf.mxu0 }
  0xf3   : > { %v4713_v31 = vpop.f32.mrf.mxu1 }
  0xf4   : > { %v4715_v9 = vpop.f32.mrf.mxu0 }
  0xf5   : > { %v4717_v21 = vpop.f32.mrf.mxu1 }
  0xf6   : > { %v3848_v12 = vpop.f32.mrf.mxu0  ;;  %4063 = vmatmul.mubr.msk.bf16.vlgmr.msra.gmra.mxu0 %vm262_vm0, %v4339_v27 }
  0xf7   : > { %v3812_v17 = vpop.f32.mrf.mxu1  ;;  %4027 = vmatmul.mubr.msk.bf16.vlgmr.msra.gmra.mxu1 %vm262_vm0, %v2258_v32  ;;  %4066 = vmatprep.mubr.msk.bf16.mxu0 %vm262_vm0, %v4343_v29 }
  0xf8   : > { %v575_v22 = vadd.f32 %v3812_v17, %v4614_v47  ;;  %v840_v33 = vpop.f32.mrf.mxu0  ;;  %4030 = vmatprep.mubr.msk.bf16.mxu1 %vm262_vm0, %v2259_v13  ;;  %v3349_v17 = vld [vmem:[%s4174_s22 + $0xb1] sm:$0xff] }
  0xf9   : > { %v566_v46 = vpop.f32.mrf.mxu1 }
  0xfa   : > { %v4730_v41 = vadd.f32 %v3848_v12, %v575_v22  ;;  %v567_v27 = vadd.f32 %v566_v46, %v4624_v49  ;;  %v3849_v42 = vpop.f32.mrf.mxu0  ;;  %v3348_v12 = vld [vmem:[%s4174_s22 + $0xa9] sm:$0xff]  ;;  %v3350_v22 = vld [vmem:[%s4174_s22 + $0xc1] sm:$0xff] }
  0xfb   : > { %v3813_v52 = vpop.f32.mrf.mxu1  ;;  %v2262_v37 = vpack.c.bf16 %v3349_v17, %v3348_v12 }
  0xfc   : > { %v4733_v55 = vadd.f32 %v840_v33, %v567_v27  ;;  %v578_v29 = vadd.f32 %v3813_v52, %v4630_v59  ;;  %v843_v47 = vpop.f32.mrf.mxu0  ;;  %v3351_v33 = vld [vmem:[%s4174_s22 + $0xc9] sm:$0xff] }
  0xfd   : > { %v569_v10 = vpop.f32.mrf.mxu1  ;;  %v2263_v27 = vpack.c.bf16 %v3351_v33, %v3350_v22 }
  0xfe   : > { %v4736_v11 = vadd.f32 %v3849_v42, %v578_v29  ;;  %v570_v20 = vadd.f32 %v569_v10, %v4634_v7  ;;  %v3852_v24 = vpop.f32.mrf.mxu0  ;;  %4067 = vmatmul.mubr.msk.bf16.gmra.mxu0 %vm262_vm0, %v4365_v43  ;;  %v3352_v10 = vld [vmem:[%s4174_s22 + $0xd9] sm:$0xff] }
  0xff   : > { %v3816_v49 = vpop.f32.mrf.mxu1  ;;  %4031 = vmatmul.mubr.msk.bf16.gmra.mxu1 %vm262_vm0, %v2260_v53  ;;  %4070 = vmatprep.mubr.msk.bf16.mxu0 %vm262_vm0, %v4369_v45 }
 0x100   : > { %v4744_v59 = vadd.f32 %v843_v47, %v570_v20  ;;  %v591_v32 = vadd.f32 %v3816_v49, %v4638_v23  ;;  %v856_v13 = vpop.f32.mrf.mxu0  ;;  %4034 = vmatprep.mubr.msk.bf16.mxu1 %vm262_vm0, %v2261_v1  ;;  %v3353_v20 = vld [vmem:[%s4174_s22 + $0xe1] sm:$0xff]  ;;  %v3355_v49 = vld [vmem:[%s4174_s22 + $0xf9] sm:$0xff] }
 0x101   : > { %v582_v7 = vpop.f32.mrf.mxu1 }
 0x102   : > { %v4752_v35 = vadd.f32 %v3852_v24, %v591_v32  ;;  %v583_v43 = vadd.f32 %v582_v7, %v4648_v28  ;;  %v3853_v36 = vpop.f32.mrf.mxu0  ;;  %v3354_v24 = vld [vmem:[%s4174_s22 + $0xf1] sm:$0xff] }
 0x103   : > { %v3817_v46 = vpop.f32.mrf.mxu1  ;;  %v2265_v22 = vpack.c.bf16 %v3355_v49, %v3354_v24 }
 0x104   : > { %v4755_v45 = vadd.f32 %v856_v13, %v583_v43  ;;  %v594_v23 = vadd.f32 %v3817_v46, %v4654_v44  ;;  %v859_v38 = vpop.f32.mrf.mxu0 }
 0x105   : > { %v585_v42 = vpop.f32.mrf.mxu1 }
 0x106   : > { %v4758_v52 = vadd.f32 %v3853_v36, %v594_v23  ;;  %v586_v53 = vadd.f32 %v585_v42, %v4658_v62  ;;  %v3856_v29 = vpop.f32.mrf.mxu0  ;;  %4071 = vmatmul.mubr.msk.bf16.gmra.mxu0 %vm262_vm0, %v4389_v61  ;;  %v3413_v42 = vld [vmem:[%s4174_s22 + $0x12a] sm:$0xff] }
 0x107   : > { %v3820_v28 = vpop.f32.mrf.mxu1  ;;  %4035 = vmatmul.mubr.msk.bf16.gmra.mxu1 %vm262_vm0, %v2262_v37  ;;  %4074 = vmatprep.mubr.msk.bf16.mxu0 %vm262_vm0, %v4393_v63  ;;  %v2264_v63 = vpack.c.bf16 %v3353_v20, %v3352_v10 }
 0x108   : > { %v4766_v44 = vadd.f32 %v859_v38, %v586_v53  ;;  %v607_v47 = vadd.f32 %v3820_v28, %v4662_v16  ;;  %v872_v1 = vpop.f32.mrf.mxu0  ;;  %4038 = vmatprep.mubr.msk.bf16.mxu1 %vm262_vm0, %v2263_v27  ;;  %v3412_v27 = vld [vmem:[%s4174_s22 + $0x122] sm:$0xff] }
 0x109   : > { %v598_v62 = vpop.f32.mrf.mxu1 }
 0x10a   : > { %v4774_v32 = vadd.f32 %v3856_v29, %v607_v47  ;;  %v599_v61 = vadd.f32 %v598_v62, %v4673_v39  ;;  %v3857_v13 = vpop.f32.mrf.mxu0  ;;  %v3358_v29 = vld [vmem:[%s4174_s22 + $0x121] sm:$0xff] }
 0x10b   : > { %v3821_v12 = vpop.f32.mrf.mxu1 }
 0x10c   : > { %v4777_v17 = vadd.f32 %v872_v1, %v599_v61  ;;  %v610_v16 = vadd.f32 %v3821_v12, %v4683_v54  ;;  %v875_v7 = vpop.f32.mrf.mxu0  ;;  %v3356_v54 = vld [vmem:[%s4174_s22 + $0x109] sm:$0xff] }
 0x10d   : > { %v601_v33 = vpop.f32.mrf.mxu1 }
 0x10e   : > { %v4780_v43 = vadd.f32 %v3857_v13, %v610_v16  ;;  %v602_v36 = vadd.f32 %v601_v33, %v4689_v60  ;;  %v3860_v39 = vpop.f32.mrf.mxu0  ;;  %4075 = vmatmul.mubr.msk.bf16.gmra.mxu0 %vm262_vm0, %v4413_v15  ;;  %v3357_v60 = vld [vmem:[%s4174_s22 + $0x111] sm:$0xff]  ;;  %v3359_v15 = vld [vmem:[%s4174_s22 + $0x129] sm:$0xff]  ;;  %v3414_v16 = vld [vmem:[%s4174_s22 + $0x13a] sm:$0xff] }
 0x10f   : > { %v3824_v46 = vpop.f32.mrf.mxu1  ;;  %4039 = vmatmul.mubr.msk.bf16.gmra.mxu1 %vm262_vm0, %v2264_v63  ;;  %4078 = vmatprep.mubr.msk.bf16.mxu0 %vm262_vm0, %v4417_v18  ;;  %v2266_v10 = vpack.c.bf16 %v3357_v60, %v3356_v54  ;;  %v2267_v49 = vpack.c.bf16 %v3359_v15, %v3358_v29  ;;  %v3362_v54 = vld [vmem:[%s4174_s22 + $0x151] sm:$0xff] }
 0x110   : > { %v4789_v37 = vadd.f32 %v875_v7, %v602_v36  ;;  %v623_v23 = vadd.f32 %v3824_v46, %v4693_v3  ;;  %v888_v38 = vpop.f32.mrf.mxu0  ;;  %4042 = vmatprep.mubr.msk.bf16.mxu1 %vm262_vm0, %v2265_v22  ;;  %v2573_v3 = vpack.c.bf16 %v3413_v42, %v3412_v27  ;;  %v3415_v7 = vld [vmem:[%s4174_s22 + $0x142] sm:$0xff]  ;;  %v3417_v46 = vld [vmem:[%s4174_s22 + $0x15a] sm:$0xff] }
 0x111   : > { %v614_v53 = vpop.f32.mrf.mxu1  ;;  %v2574_v42 = vpack.c.bf16 %v3415_v7, %v3414_v16 }
 0x112   : > { %v4798_v28 = vadd.f32 %v3860_v39, %v623_v23  ;;  %v615_v47 = vadd.f32 %v614_v53, %v4702_v6  ;;  %v3861_v1 = vpop.f32.mrf.mxu0  ;;  %v3416_v39 = vld [vmem:[%s4174_s22 + $0x152] sm:$0xff] }
 0x113   : > { %v3825_v18 = vpop.f32.mrf.mxu1  ;;  %v3363_v23 = vld [vmem:[%s4174_s22 + $0x159] sm:$0xff] }
 0x114   : > { %v4801_v20 = vadd.f32 %v888_v38, %v615_v47  ;;  %v626_v62 = vadd.f32 %v3825_v18, %v4711_v25  ;;  %v891_v24 = vpop.f32.mrf.mxu0  ;;  %v3360_v25 = vld [vmem:[%s4174_s22 + $0x139] sm:$0xff]  ;;  %v2269_v18 = vpack.c.bf16 %v3363_v23, %v3362_v54 }
 0x115   : > { %v617_v61 = vpop.f32.mrf.mxu1 }
 0x116   : > { %v4804_v13 = vadd.f32 %v3861_v1, %v626_v62  ;;  %v618_v6 = vadd.f32 %v617_v61, %v4715_v9  ;;  %v3864_v12 = vpop.f32.mrf.mxu0  ;;  %4079 = vmatmul.mubr.msk.bf16.gmra.mxu0 %vm262_vm0, %v4437_v40  ;;  %v3361_v9 = vld [vmem:[%s4174_s22 + $0x141] sm:$0xff]  ;;  %v3419_v61 = vld [vmem:[%s4174_s22 + $0x172] sm:$0xff] }
 0x117   : > { %v3828_v63 = vpop.f32.mrf.mxu1  ;;  %4043 = vmatmul.mubr.msk.bf16.gmra.mxu1 %vm262_vm0, %v2266_v10  ;;  %4082 = vmatprep.mubr.msk.bf16.mxu0 %vm262_vm0, %v2573_v3  ;;  %v2268_v29 = vpack.c.bf16 %v3361_v9, %v3360_v25  ;;  %v3365_v25 = vld [vmem:[%s4174_s22 + $0x171] sm:$0xff] }
 0x118   : > { %v4814_v22 = vadd.f32 %v891_v24, %v618_v6  ;;  %v639_v33 = vadd.f32 %v3828_v63, %v4618_v48  ;;  %v904_v36 = vpop.f32.mrf.mxu0  ;;  %4046 = vmatprep.mubr.msk.bf16.mxu1 %vm262_vm0, %v2267_v49  ;;  %v2575_v48 = vpack.c.bf16 %v3417_v46, %v3416_v39  ;;  %v3418_v49 = vld [vmem:[%s4174_s22 + $0x16a] sm:$0xff] }
 0x119   : > { %v630_v40 = vpop.f32.mrf.mxu1  ;;  %v3364_v63 = vld [vmem:[%s4174_s22 + $0x169] sm:$0xff] }
 0x11a   : > { %v4823_v38 = vadd.f32 %v3864_v12, %v639_v33  ;;  %v631_v60 = vadd.f32 %v630_v40, %v4628_v58  ;;  %v3865_v27 = vpop.f32.mrf.mxu0  ;;  %v2270_v39 = vpack.c.bf16 %v3365_v25, %v3364_v63 }
 0x11b   : > { %v3829_v53 = vpop.f32.mrf.mxu1 }
 0x11c   : > { %v4826_v15 = vadd.f32 %v904_v36, %v631_v60  ;;  %v642_v47 = vadd.f32 %v3829_v53, %v4632_v4  ;;  %v907_v1 = vpop.f32.mrf.mxu0  ;;  %v2576_v36 = vpack.c.bf16 %v3419_v61, %v3418_v49  ;;  %v3423_v53 = vld [vmem:[%s4174_s22 + $0x1a2] sm:$0xff] }
 0x11d   : > { %v633_v10 = vpop.f32.mrf.mxu1 }
 0x11e   : > { %v4829_v3 = vadd.f32 %v3865_v27, %v642_v47  ;;  %v634_v58 = vadd.f32 %v633_v10, %v4636_v8  ;;  %v3868_v62 = vpop.f32.mrf.mxu0  ;;  %4083 = vmatmul.mubr.msk.bf16.gmra.mxu0 %vm262_vm0, %v2574_v42  ;;  %v3422_v42 = vld [vmem:[%s4174_s22 + $0x19a] sm:$0xff] }
 0x11f   : > { %v3832_v24 = vpop.f32.mrf.mxu1  ;;  %4047 = vmatmul.mubr.msk.bf16.gmra.mxu1 %vm262_vm0, %v2268_v29  ;;  %4086 = vmatprep.mubr.msk.bf16.mxu0 %vm262_vm0, %v2575_v48  ;;  %v3369_v47 = vld [vmem:[%s4174_s22 + $0x1a1] sm:$0xff] }
 0x120   : > { %v4837_v4 = vadd.f32 %v907_v1, %v634_v58  ;;  %v655_v6 = vadd.f32 %v3832_v24, %v4642_v26  ;;  %v920_v12 = vpop.f32.mrf.mxu0  ;;  %4050 = vmatprep.mubr.msk.bf16.mxu1 %vm262_vm0, %v2269_v18 }
 0x121   : > { %v646_v8 = vpop.f32.mrf.mxu1 }
 0x122   : > { %v4843_v16 = vadd.f32 %v3868_v62, %v655_v6  ;;  %v647_v7 = vadd.f32 %v646_v8, %v4652_v30  ;;  %v3869_v33 = vpop.f32.mrf.mxu0  ;;  %v2578_v62 = vpack.c.bf16 %v3423_v53, %v3422_v42 }
 0x123   : > { %v3833_v9 = vpop.f32.mrf.mxu1 }
 0x124   : > { %v4846_v46 = vadd.f32 %v920_v12, %v647_v7  ;;  %v658_v26 = vadd.f32 %v3833_v9, %v4656_v50  ;;  %v923_v40 = vpop.f32.mrf.mxu0 }
 0x125   : > { %v649_v54 = vpop.f32.mrf.mxu1 }
 0x126   : > { %v4849_v23 = vadd.f32 %v3869_v33, %v658_v26  ;;  %v650_v60 = vadd.f32 %v649_v54, %v4660_v0  ;;  %v3872_v27 = vpop.f32.mrf.mxu0  ;;  %4087 = vmatmul.mubr.msk.bf16.gmra.mxu0 %vm262_vm0, %v2576_v36  ;;  %v3368_v0 = vld [vmem:[%s4174_s22 + $0x199] sm:$0xff]  ;;  %s3480_s22 = sshll.u32 %s5223_s10, 7 }
 0x127   : > { %v3836_v30 = vpop.f32.mrf.mxu1  ;;  %4051 = vmatmul.mubr.msk.bf16.gmra.mxu1 %vm262_vm0, %v2270_v39  ;;  %4090 = vmatprep.mubr.msk.bf16.mxu0 %vm262_vm0, %v4687_v57  ;;  %v2272_v24 = vpack.c.bf16 %v3369_v47, %v3368_v0  ;;  %s5112_s28 = scalar_lea.vmem %s5189_s2, %s3480_s22 }
 0x128   : > { %v4858_v50 = vadd.f32 %v923_v40, %v650_v60  ;;  %v671_v29 = vadd.f32 %v3836_v30, %v4666_v19  ;;  %v936_v48 = vpop.f32.mrf.mxu0  ;;  %4054 = vmatprep.mubr.msk.bf16.mxu1 %vm262_vm0, %v4567_v34 }
 0x129   : > { %v662_v1 = vpop.f32.mrf.mxu1 }
 0x12a   : > { %v4865_v18 = vadd.f32 %v3872_v27, %v671_v29  ;;  %v663_v10 = vadd.f32 %v662_v1, %v4679_v51  ;;  %v3873_v58 = vpop.f32.mrf.mxu0 }
 0x12b   : > { %v3837_v57 = vpop.f32.mrf.mxu1 }
 0x12c   : > { %v4868_v49 = vadd.f32 %v936_v48, %v663_v10  ;;  %v674_v61 = vadd.f32 %v3837_v57, %v4685_v56  ;;  %v939_v19 = vpop.f32.mrf.mxu0 }
 0x12d   : > { %v665_v6 = vpop.f32.mrf.mxu1 }
 0x12e   : > { %v4871_v12 = vadd.f32 %v3873_v58, %v674_v61  ;;  %v666_v34 = vadd.f32 %v665_v6, %v4691_v2  ;;  %v3876_v63 = vpop.f32.mrf.mxu0  ;;  %4091 = vmatmul.mubr.msk.bf16.gmra.mxu0 %vm262_vm0, %v2578_v62 }
 0x12f   : > { %v3840_v25 = vpop.f32.mrf.mxu1  ;;  %4055 = vmatmul.mubr.msk.bf16.gmra.mxu1 %vm262_vm0, %v2272_v24 }
 0x130   : > { %v4876_v51 = vadd.f32 %v939_v19, %v666_v34  ;;  %v687_v8 = vadd.f32 %v3840_v25, %v4696_v5  ;;  %v952_v7 = vpop.f32.mrf.mxu0 }
 0x131   : > { %v678_v33 = vpop.f32.mrf.mxu1 }
 0x132   : > { %v4879_v36 = vadd.f32 %v3876_v63, %v687_v8  ;;  %v679_v56 = vadd.f32 %v678_v33, %v4707_v14  ;;  %v3877_v9 = vpop.f32.mrf.mxu0 }
 0x133   : > { %v3841_v39 = vpop.f32.mrf.mxu1 }
 0x134   : > { %v4882_v26 = vadd.f32 %v952_v7, %v679_v56  ;;  %v690_v2 = vadd.f32 %v3841_v39, %v4713_v31  ;;  %v955_v40 = vpop.f32.mrf.mxu0 }
 0x135   : > { %v681_v54 = vpop.f32.mrf.mxu1 }
 0x136   : > { %v4885_v60 = vadd.f32 %v3877_v9, %v690_v2  ;;  %v682_v27 = vadd.f32 %v681_v54, %v4717_v21  ;;  %v3920_v30 = vpop.f32.mrf.mxu0 }
 0x137   : > { %v3884_v5 = vpop.f32.mrf.mxu1 }
 0x138   : > { %v4888_v42 = vadd.f32 %v955_v40, %v682_v27  ;;  %v1276_v53 = vadd.f32 %v3884_v5, %v4730_v41  ;;  %v1453_v29 = vpop.f32.mrf.mxu0 }
 0x139   : > { %v1147_v14 = vpop.f32.mrf.mxu1 }
 0x13a   : > { %v4891_v48 = vadd.f32 %v3920_v30, %v1276_v53  ;;  %v1274_v0 = vadd.f32 %v1147_v14, %v4733_v55  ;;  %v3921_v47 = vpop.f32.mrf.mxu0 }
 0x13b   : > { %v3885_v31 = vpop.f32.mrf.mxu1 }
 0x13c   : > { %v4894_v1 = vadd.f32 %v1453_v29, %v1274_v0  ;;  %v1277_v10 = vadd.f32 %v3885_v31, %v4736_v11  ;;  %v1456_v58 = vpop.f32.mrf.mxu0 }
 0x13d   : > { %v1150_v21 = vpop.f32.mrf.mxu1 }
 0x13e   : > { %v4897_v62 = vadd.f32 %v3921_v47, %v1277_v10  ;;  %v1275_v57 = vadd.f32 %v1150_v21, %v4744_v59  ;;  %v3924_v24 = vpop.f32.mrf.mxu0 }
 0x13f   : > { %v3888_v41 = vpop.f32.mrf.mxu1 }
 0x140   : > { %v4900_v61 = vadd.f32 %v1456_v58, %v1275_v57  ;;  %v1280_v19 = vadd.f32 %v3888_v41, %v4752_v35  ;;  %v1469_v6 = vpop.f32.mrf.mxu0 }
 0x141   : > { %v1163_v55 = vpop.f32.mrf.mxu1 }
 0x142   : > { %v4903_v34 = vadd.f32 %v3924_v24, %v1280_v19  ;;  %v1278_v63 = vadd.f32 %v1163_v55, %v4755_v45  ;;  %v3925_v25 = vpop.f32.mrf.mxu0 }
 0x143   : > { %v3889_v11 = vpop.f32.mrf.mxu1 }
 0x144   : > { %v4906_v8 = vadd.f32 %v1469_v6, %v1278_v63  ;;  %v1281_v7 = vadd.f32 %v3889_v11, %v4758_v52  ;;  %v1472_v33 = vpop.f32.mrf.mxu0 }
 0x145   : > { %v1166_v59 = vpop.f32.mrf.mxu1 }
 0x146   : > { %v4909_v56 = vadd.f32 %v3925_v25, %v1281_v7  ;;  %v1279_v9 = vadd.f32 %v1166_v59, %v4766_v44  ;;  %v3928_v39 = vpop.f32.mrf.mxu0 }
 0x147   : > { %v3892_v35 = vpop.f32.mrf.mxu1 }
 0x148   : > { %v4912_v2 = vadd.f32 %v1472_v33, %v1279_v9  ;;  %v1284_v40 = vadd.f32 %v3892_v35, %v4774_v32  ;;  %v1485_v54 = vpop.f32.mrf.mxu0 }
 0x149   : > { %v1179_v45 = vpop.f32.mrf.mxu1 }
 0x14a   : > { %v4915_v27 = vadd.f32 %v3928_v39, %v1284_v40  ;;  %v1282_v30 = vadd.f32 %v1179_v45, %v4777_v17  ;;  %v3929_v5 = vpop.f32.mrf.mxu0 }
 0x14b   : > { %v3893_v52 = vpop.f32.mrf.mxu1 }
 0x14c   : > { %v4918_v53 = vadd.f32 %v1485_v54, %v1282_v30  ;;  %v1285_v29 = vadd.f32 %v3893_v52, %v4780_v43  ;;  %v1488_v14 = vpop.f32.mrf.mxu0 }
 0x14d   : > { %v1182_v44 = vpop.f32.mrf.mxu1 }
 0x14e   : > { %v4921_v0 = vadd.f32 %v3929_v5, %v1285_v29  ;;  %v1283_v47 = vadd.f32 %v1182_v44, %v4789_v37  ;;  %v3932_v31 = vpop.f32.mrf.mxu0 }
 0x14f   : > { %v3896_v32 = vpop.f32.mrf.mxu1 }
 0x150   : > { %v4924_v10 = vadd.f32 %v1488_v14, %v1283_v47  ;;  %v1288_v58 = vadd.f32 %v3896_v32, %v4798_v28  ;;  %v1501_v21 = vpop.f32.mrf.mxu0 }
 0x151   : > { %v1195_v17 = vpop.f32.mrf.mxu1 }
 0x152   : > { %v4927_v57 = vadd.f32 %v3932_v31, %v1288_v58  ;;  %v1286_v24 = vadd.f32 %v1195_v17, %v4801_v20  ;;  %v3933_v41 = vpop.f32.mrf.mxu0 }
 0x153   : > { %v3897_v43 = vpop.f32.mrf.mxu1 }
 0x154   : > { %v4930_v19 = vadd.f32 %v1501_v21, %v1286_v24  ;;  %v1289_v6 = vadd.f32 %v3897_v43, %v4804_v13  ;;  %v1504_v55 = vpop.f32.mrf.mxu0 }
 0x155   : > { %v1198_v37 = vpop.f32.mrf.mxu1 }
 0x156   : > { %v4933_v63 = vadd.f32 %v3933_v41, %v1289_v6  ;;  %v1287_v25 = vadd.f32 %v1198_v37, %v4814_v22  ;;  %v3936_v11 = vpop.f32.mrf.mxu0 }
 0x157   : > { %v3900_v28 = vpop.f32.mrf.mxu1 }
 0x158   : > { %v4936_v7 = vadd.f32 %v1504_v55, %v1287_v25  ;;  %v1292_v33 = vadd.f32 %v3900_v28, %v4823_v38  ;;  %v1517_v59 = vpop.f32.mrf.mxu0 }
 0x159   : > { %v1211_v20 = vpop.f32.mrf.mxu1 }
 0x15a   : > { %v4939_v9 = vadd.f32 %v3936_v11, %v1292_v33  ;;  %v1290_v39 = vadd.f32 %v1211_v20, %v4826_v15  ;;  %v3937_v35 = vpop.f32.mrf.mxu0 }
 0x15b   : > { %v3901_v13 = vpop.f32.mrf.mxu1 }
 0x15c   : > { %v4942_v40 = vadd.f32 %v1517_v59, %v1290_v39  ;;  %v1293_v54 = vadd.f32 %v3901_v13, %v4829_v3  ;;  %v1520_v45 = vpop.f32.mrf.mxu0 }
 0x15d   : > { %v1214_v22 = vpop.f32.mrf.mxu1 }
 0x15e   : > { %v4945_v30 = vadd.f32 %v3937_v35, %v1293_v54  ;;  %v1291_v5 = vadd.f32 %v1214_v22, %v4837_v4  ;;  %v3940_v52 = vpop.f32.mrf.mxu0 }
 0x15f   : > { %v3904_v38 = vpop.f32.mrf.mxu1 }
 0x160   : > { %v4948_v29 = vadd.f32 %v1520_v45, %v1291_v5  ;;  %v1296_v14 = vadd.f32 %v3904_v38, %v4843_v16  ;;  %v1533_v44 = vpop.f32.mrf.mxu0 }
 0x161   : > { %v1227_v15 = vpop.f32.mrf.mxu1 }
 0x162   : > { %v4951_v47 = vadd.f32 %v3940_v52, %v1296_v14  ;;  %v1294_v31 = vadd.f32 %v1227_v15, %v4846_v46  ;;  %v3941_v32 = vpop.f32.mrf.mxu0 }
 0x163   : > { %v3905_v3 = vpop.f32.mrf.mxu1 }
 0x164   : > { %v4954_v58 = vadd.f32 %v1533_v44, %v1294_v31  ;;  %v1297_v21 = vadd.f32 %v3905_v3, %v4849_v23  ;;  %v1536_v17 = vpop.f32.mrf.mxu0 }
 0x165   : > { %v1230_v4 = vpop.f32.mrf.mxu1 }
 0x166   : > { %v4957_v24 = vadd.f32 %v3941_v32, %v1297_v21  ;;  %v1295_v41 = vadd.f32 %v1230_v4, %v4858_v50  ;;  %v3944_v43 = vpop.f32.mrf.mxu0 }
 0x167   : > { %v3908_v16 = vpop.f32.mrf.mxu1 }
 0x168   : > { %v4960_v6 = vadd.f32 %v1536_v17, %v1295_v41  ;;  %v1300_v55 = vadd.f32 %v3908_v16, %v4865_v18  ;;  %v1549_v37 = vpop.f32.mrf.mxu0 }
 0x169   : > { %v1243_v46 = vpop.f32.mrf.mxu1 }
 0x16a   : > { %v4963_v25 = vadd.f32 %v3944_v43, %v1300_v55  ;;  %v1298_v11 = vadd.f32 %v1243_v46, %v4868_v49  ;;  %v3945_v28 = vpop.f32.mrf.mxu0 }
 0x16b   : > { %v3909_v23 = vpop.f32.mrf.mxu1 }
 0x16c   : > { %v4966_v33 = vadd.f32 %v1549_v37, %v1298_v11  ;;  %v1301_v59 = vadd.f32 %v3909_v23, %v4871_v12  ;;  %v1552_v20 = vpop.f32.mrf.mxu0 }
 0x16d   : > { %v1246_v50 = vpop.f32.mrf.mxu1 }
 0x16e   : > { %v4969_v39 = vadd.f32 %v3945_v28, %v1301_v59  ;;  %v1299_v35 = vadd.f32 %v1246_v50, %v4876_v51  ;;  %v3948_v13 = vpop.f32.mrf.mxu0 }
 0x16f   : > { %v3912_v18 = vpop.f32.mrf.mxu1 }
 0x170   : > { %5190 = vst [vmem:[#allocation2_spill] sm:$0xff] %v4969_v39  ;;  %v4972_v54 = vadd.f32 %v1552_v20, %v1299_v35  ;;  %v1304_v45 = vadd.f32 %v3912_v18, %v4879_v36  ;;  %v1565_v22 = vpop.f32.mrf.mxu0 }
 0x171   : > { %v1259_v49 = vpop.f32.mrf.mxu1 }
 0x172   : > { %5191 = vst [vmem:[#allocation3_spill] sm:$0xff] %v4972_v54  ;;  %v4975_v5 = vadd.f32 %v3948_v13, %v1304_v45  ;;  %v1302_v52 = vadd.f32 %v1259_v49, %v4882_v26  ;;  %v3949_v38 = vpop.f32.mrf.mxu0 }
 0x173   : > { %v3913_v12 = vpop.f32.mrf.mxu1 }
 0x174   : > { %v4978_v14 = vadd.f32 %v1565_v22, %v1302_v52  ;;  %v1305_v44 = vadd.f32 %v3913_v12, %v4885_v60  ;;  %v1568_v15 = vpop.f32.mrf.mxu0 }
 0x175   : > { %v1262_v51 = vpop.f32.mrf.mxu1 }
 0x176   : > { %v4981_v31 = vadd.f32 %v3949_v38, %v1305_v44  ;;  %v1303_v32 = vadd.f32 %v1262_v51, %v4888_v42  ;;  %v3992_v3 = vpop.f32.mrf.mxu0 }
 0x177   : > { %v3956_v36 = vpop.f32.mrf.mxu1 }
 0x178   : > { %5192 = vst [vmem:[#allocation4_spill] sm:$0xff] %v4981_v31  ;;  %v4984_v21 = vadd.f32 %v1568_v15, %v1303_v32  ;;  %v1888_v17 = vadd.f32 %v3956_v36, %v4891_v48  ;;  %v2066_v4 = vpop.f32.mrf.mxu0 }
 0x179   : > { %v1759_v26 = vpop.f32.mrf.mxu1 }
 0x17a   : > { %5193 = vst [vmem:[#allocation5_spill] sm:$0xff] %v4984_v21  ;;  %v4987_v41 = vadd.f32 %v3992_v3, %v1888_v17  ;;  %v1886_v43 = vadd.f32 %v1759_v26, %v4894_v1  ;;  %v4990_v16 = vpop.f32.mrf.mxu0 }
 0x17b   : > { %v4992_v60 = vpop.f32.mrf.mxu1 }
 0x17c   : > { %v4994_v55 = vadd.f32 %v2066_v4, %v1886_v43  ;;  %v4996_v37 = vpop.f32.mrf.mxu0 }
 0x17d   : > { %v4998_v42 = vpop.f32.mrf.mxu1 }
 0x17e   : > { %v3996_v46 = vpop.f32.mrf.mxu0 }
 0x17f   : > { %v3960_v11 = vpop.f32.mrf.mxu1 }
 0x180   : > { %v1892_v48 = vadd.f32 %v3960_v11, %v4903_v34  ;;  %v2082_v28 = vpop.f32.mrf.mxu0 }
 0x181   : > { %v1775_v23 = vpop.f32.mrf.mxu1 }
 0x182   : > { %v5001_v59 = vadd.f32 %v3996_v46, %v1892_v48  ;;  %v1890_v1 = vadd.f32 %v1775_v23, %v4906_v8  ;;  %v5004_v20 = vpop.f32.mrf.mxu0 }
 0x183   : > { %v5006_v50 = vpop.f32.mrf.mxu1 }
 0x184   : > { %v5008_v35 = vadd.f32 %v2082_v28, %v1890_v1  ;;  %v5010_v13 = vpop.f32.mrf.mxu0 }
 0x185   : > { %v5012_v18 = vpop.f32.mrf.mxu1 }
 0x186   : > { %v4000_v45 = vpop.f32.mrf.mxu0 }
 0x187   : > { %v3964_v22 = vpop.f32.mrf.mxu1 }
 0x188   : > { %v1896_v34 = vadd.f32 %v3964_v22, %v4915_v27  ;;  %v2098_v49 = vpop.f32.mrf.mxu0 }
 0x189   : > { %v1791_v52 = vpop.f32.mrf.mxu1 }
 0x18a   : > { %v5015_v38 = vadd.f32 %v4000_v45, %v1896_v34  ;;  %v1894_v8 = vadd.f32 %v1791_v52, %v4918_v53  ;;  %v5018_v12 = vpop.f32.mrf.mxu0 }
 0x18b   : > { %v5020_v44 = vpop.f32.mrf.mxu1 }
 0x18c   : > { %v5022_v15 = vadd.f32 %v2098_v49, %v1894_v8  ;;  %v5024_v51 = vpop.f32.mrf.mxu0 }
 0x18d   : > { %v5026_v32 = vpop.f32.mrf.mxu1 }
 0x18e   : > { %v4004_v3 = vpop.f32.mrf.mxu0 }
 0x18f   : > { %v3968_v36 = vpop.f32.mrf.mxu1 }
 0x190   : > { %v1900_v27 = vadd.f32 %v3968_v36, %v4927_v57  ;;  %v2114_v17 = vpop.f32.mrf.mxu0 }
 0x191   : > { %v1807_v4 = vpop.f32.mrf.mxu1 }
 0x192   : > { %v5029_v26 = vadd.f32 %v4004_v3, %v1900_v27  ;;  %v1898_v53 = vadd.f32 %v1807_v4, %v4930_v19  ;;  %v5032_v43 = vpop.f32.mrf.mxu0 }
 0x193   : > { %v5034_v46 = vpop.f32.mrf.mxu1 }
 0x194   : > { %v5036_v11 = vadd.f32 %v2114_v17, %v1898_v53  ;;  %v5038_v48 = vpop.f32.mrf.mxu0 }
 0x195   : > { %v5040_v28 = vpop.f32.mrf.mxu1 }
 0x196   : > { %v4008_v23 = vpop.f32.mrf.mxu0 }
 0x197   : > { %v3972_v1 = vpop.f32.mrf.mxu1 }
 0x198   : > { %v1904_v57 = vadd.f32 %v3972_v1, %v4939_v9  ;;  %v2130_v45 = vpop.f32.mrf.mxu0 }
 0x199   : > { %v1823_v22 = vpop.f32.mrf.mxu1 }
 0x19a   : > { %v5043_v34 = vadd.f32 %v4008_v23, %v1904_v57  ;;  %v1902_v19 = vadd.f32 %v1823_v22, %v4942_v40  ;;  %v5046_v49 = vpop.f32.mrf.mxu0 }
 0x19b   : > { %v5048_v52 = vpop.f32.mrf.mxu1 }
 0x19c   : > { %v5050_v8 = vadd.f32 %v2130_v45, %v1902_v19  ;;  %v5052_v3 = vpop.f32.mrf.mxu0 }
 0x19d   : > { %v5054_v36 = vpop.f32.mrf.mxu1 }
 0x19e   : > { %v4012_v27 = vpop.f32.mrf.mxu0 }
 0x19f   : > { %v3976_v17 = vpop.f32.mrf.mxu1 }
 0x1a0   : > { %v1908_v9 = vadd.f32 %v3976_v17, %v4951_v47  ;;  %v2146_v4 = vpop.f32.mrf.mxu0 }
 0x1a1   : > { %v1839_v53 = vpop.f32.mrf.mxu1 }
 0x1a2   : > { %v5057_v23 = vadd.f32 %v4012_v27, %v1908_v9  ;;  %v1906_v40 = vadd.f32 %v1839_v53, %v4954_v58  ;;  %v5060_v1 = vpop.f32.mrf.mxu0 }
 0x1a3   : > { %v5062_v57 = vpop.f32.mrf.mxu1 }
 0x1a4   : > { %5194 = vst [vmem:[#allocation6_spill] sm:$0xff] %v5057_v23  ;;  %v5064_v45 = vadd.f32 %v2146_v4, %v1906_v40  ;;  %v5066_v22 = vpop.f32.mrf.mxu0 }
 0x1a5   : > { %5196 = vst [vmem:[#allocation8_spill] sm:$0xff] %v5066_v22  ;;  %v5068_v19 = vpop.f32.mrf.mxu1 }
 0x1a6   : > { %5195 = vst [vmem:[#allocation7_spill] sm:$0xff] %v5064_v45  ;;  %v4016_v21 = vpop.f32.mrf.mxu0 }
 0x1a7   : > { %v3980_v31 = vpop.f32.mrf.mxu1 }
 0x1a8   : > { %v1912_v47 = vadd.f32 %v3980_v31, %v4963_v25  ;;  %v2162_v17 = vpop.f32.mrf.mxu0 }
 0x1a9   : > { %v1855_v54 = vpop.f32.mrf.mxu1 }
 0x1aa   : > { %v5071_v27 = vadd.f32 %v4016_v21, %v1912_v47  ;;  %v1910_v58 = vadd.f32 %v1855_v54, %v4966_v33  ;;  %v5074_v9 = vpop.f32.mrf.mxu0 }
 0x1ab   : > { %v5076_v53 = vpop.f32.mrf.mxu1 }
 0x1ac   : > { %5197 = vst [vmem:[#allocation9_spill] sm:$0xff] %v5071_v27  ;;  %v5078_v4 = vadd.f32 %v2162_v17, %v1910_v58  ;;  %v5080_v40 = vpop.f32.mrf.mxu0 }
 0x1ad   : > { %5199 = vst [vmem:[#allocation11_spill] sm:$0xff] %v5080_v40  ;;  %v5082_v39 = vpop.f32.mrf.mxu1 }
 0x1ae   : > { %5198 = vst [vmem:[#allocation10_spill] sm:$0xff] %v5078_v4  ;;  %v4020_v45 = vpop.f32.mrf.mxu0 }
 0x1af   : > { %v3984_v22 = vpop.f32.mrf.mxu1 }
 0x1b0   : > { %v1916_v25 = vadd.f32 %v3984_v22, %v4975_v5  ;;  %v2178_v31 = vpop.f32.mrf.mxu0  ;;  %v1889_v5 = vadd.f32 %v4992_v60, %v4897_v62 }
 0x1b1   : > { %v1871_v23 = vpop.f32.mrf.mxu1 }
 0x1b2   : > { %v5085_v21 = vadd.f32 %v4020_v45, %v1916_v25  ;;  %v1914_v33 = vadd.f32 %v1871_v23, %v4978_v14  ;;  %v5088_v54 = vpop.f32.mrf.mxu0  ;;  %v1887_v45 = vadd.f32 %v4998_v42, %v4900_v61  ;;  %v2196_v25 = vadd.f32 %v4990_v16, %v1889_v5 }
 0x1b3   : > { %5201 = vst [vmem:[#allocation13_spill] sm:$0xff] %v5088_v54  ;;  %v5090_v47 = vpop.f32.mrf.mxu1  ;;  %v1891_v16 = vadd.f32 %v5012_v18, %v4912_v2 }
 0x1b4   : > { %5200 = vst [vmem:[#allocation12_spill] sm:$0xff] %v5085_v21  ;;  %5202 = vst [vmem:[#allocation14_spill] sm:$0xff] %v5090_v47  ;;  %v5092_v17 = vadd.f32 %v2178_v31, %v1914_v33  ;;  %v5094_v58 = vpop.f32.mrf.mxu0 }
 0x1b5   : > { %5204 = vst [vmem:[#allocation16_spill] sm:$0xff] %v5094_v58  ;;  %v5096_v4 = vpop.f32.mrf.mxu1  ;;  %v2194_v58 = vadd.f32 %v4996_v37, %v1887_v45  ;;  %v2198_v45 = vadd.f32 %v5010_v13, %v1891_v16 }
 0x1b6   : > { %5203 = vst [vmem:[#allocation15_spill] sm:$0xff] %v5092_v17  ;;  %5205 = vst [vmem:[#allocation17_spill] sm:$0xff] %v5096_v4  ;;  %v4064_v22 = vpop.f32.mrf.mxu0  ;;  %v1893_v4 = vadd.f32 %v5006_v50, %v4909_v56 }
 0x1b7   : > { %v4028_v40 = vpop.f32.mrf.mxu1 }
 0x1b8   : > { %v2678_v14 = vpop.f32.mrf.mxu0  ;;  %v2501_v31 = vadd.f32 %v4028_v40, %v4987_v41  ;;  %v2200_v50 = vadd.f32 %v5004_v20, %v1893_v4 }
 0x1b9   : > { %v2372_v23 = vpop.f32.mrf.mxu1 }
 0x1ba   : > { %v4065_v33 = vpop.f32.mrf.mxu0  ;;  %v2499_v21 = vadd.f32 %v2372_v23, %v4994_v55  ;;  %v2807_v61 = vadd.f32 %v4064_v22, %v2501_v31  ;;  %v1895_v31 = vadd.f32 %v5026_v32, %v4924_v10 }
 0x1bb   : > { %v4029_v17 = vpop.f32.mrf.mxu1 }
 0x1bc   : > { %v2502_v54 = vadd.f32 %v4029_v17, %v2196_v25  ;;  %v2681_v62 = vpop.f32.mrf.mxu0  ;;  %v2805_v55 = vadd.f32 %v2678_v14, %v2499_v21  ;;  %v1897_v21 = vadd.f32 %v5020_v44, %v4921_v0 }
 0x1bd   : > { %v2375_v60 = vpop.f32.mrf.mxu1 }
 0x1be   : > { %v2808_v42 = vadd.f32 %v4065_v33, %v2502_v54  ;;  %v2500_v47 = vadd.f32 %v2375_v60, %v2194_v58  ;;  %v4068_v27 = vpop.f32.mrf.mxu0 }
 0x1bf   : > { %v4032_v41 = vpop.f32.mrf.mxu1 }
 0x1c0   : > { %v3521_v37 = vpack.c.bf16 %v2808_v42, %v2807_v61  ;;  %v2806_v40 = vadd.f32 %v2681_v62, %v2500_v47  ;;  %v2694_v17 = vpop.f32.mrf.mxu0  ;;  %v2505_v58 = vadd.f32 %v4032_v41, %v5001_v59  ;;  %v2204_v61 = vadd.f32 %v5018_v12, %v1897_v21 }
 0x1c1   : > { %v2388_v56 = vpop.f32.mrf.mxu1  ;;  %v2202_v41 = vadd.f32 %v5024_v51, %v1895_v31  ;;  %v1905_v21 = vadd.f32 %v5048_v52, %v4945_v30 }
 0x1c2   : > { %3593 = vst [vmem:[%s5112_s28 + $0x8] sm:$0xff] %v3521_v37   ;;  %v3516_v54 = vpack.c.bf16 %v2806_v40, %v2805_v55  ;;  %v4069_v5 = vpop.f32.mrf.mxu0  ;;  %v2503_v23 = vadd.f32 %v2388_v56, %v5008_v35  ;;  %v2811_v47 = vadd.f32 %v4068_v27, %v2505_v58  ;;  %v1901_v37 = vadd.f32 %v5034_v46, %v4933_v63 }
 0x1c3   : > { %v4033_v22 = vpop.f32.mrf.mxu1 }
 0x1c4   : > { %3517 = vst [vmem:[%s5112_s28] sm:$0xff] %v3516_v54   ;;  %v2506_v25 = vadd.f32 %v4033_v22, %v2200_v50  ;;  %v2697_v2 = vpop.f32.mrf.mxu0  ;;  %v2809_v13 = vadd.f32 %v2694_v17, %v2503_v23  ;;  %v1899_v50 = vadd.f32 %v5040_v28, %v4936_v7  ;;  %v2208_v22 = vadd.f32 %v5032_v43, %v1901_v37 }
 0x1c5   : > { %v2391_v18 = vpop.f32.mrf.mxu1 }
 0x1c6   : > { %v2812_v20 = vadd.f32 %v4069_v5, %v2506_v25  ;;  %v2504_v4 = vadd.f32 %v2391_v18, %v2198_v45  ;;  %v4072_v14 = vpop.f32.mrf.mxu0  ;;  %v2206_v25 = vadd.f32 %v5038_v48, %v1899_v50  ;;  %v5208_v50 = vld [vmem:[#allocation7_spill] sm:$0xff] }
 0x1c7   : > { %v4036_v59 = vpop.f32.mrf.mxu1 }
 0x1c8   : > { %v3531_v33 = vpack.c.bf16 %v2812_v20, %v2811_v47  ;;  %v2810_v62 = vadd.f32 %v2697_v2, %v2504_v4  ;;  %v2710_v35 = vpop.f32.mrf.mxu0  ;;  %v2509_v0 = vadd.f32 %v4036_v59, %v5015_v38 }
 0x1c9   : > { %v2404_v60 = vpop.f32.mrf.mxu1 }
 0x1ca   : > { %3595 = vst [vmem:[%s5112_s28 + $0x18] sm:$0xff] %v3531_v33   ;;  %v3526_v42 = vpack.c.bf16 %v2810_v62, %v2809_v13  ;;  %v4073_v44 = vpop.f32.mrf.mxu0  ;;  %v2507_v16 = vadd.f32 %v2404_v60, %v5022_v15  ;;  %v2815_v40 = vadd.f32 %v4072_v14, %v2509_v0  ;;  %v1903_v14 = vadd.f32 %v5054_v36, %v4948_v29 }
 0x1cb   : > { %v4037_v27 = vpop.f32.mrf.mxu1  ;;  %v2212_v33 = vadd.f32 %v5046_v49, %v1905_v21  ;;  %v1909_v0 = vadd.f32 %v5062_v57, %v4957_v24 }
 0x1cc   : > { %3594 = vst [vmem:[%s5112_s28 + $0x10] sm:$0xff] %v3526_v42   ;;  %v2510_v55 = vadd.f32 %v4037_v27, %v2204_v61  ;;  %v2713_v10 = vpop.f32.mrf.mxu0  ;;  %v2813_v51 = vadd.f32 %v2710_v35, %v2507_v16  ;;  %v2210_v60 = vadd.f32 %v5052_v3, %v1903_v14  ;;  %v1907_v16 = vadd.f32 %v5068_v19, %v4960_v6 }
 0x1cd   : > { %v2407_v32 = vpop.f32.mrf.mxu1  ;;  %v2216_v37 = vadd.f32 %v5060_v1, %v1909_v0 }
 0x1ce   : > { %v2816_v12 = vadd.f32 %v4073_v44, %v2510_v55  ;;  %v2508_v17 = vadd.f32 %v2407_v32, %v2202_v41  ;;  %v4076_v56 = vpop.f32.mrf.mxu0 }
 0x1cf   : > { %v4040_v38 = vpop.f32.mrf.mxu1 }
 0x1d0   : > { %v3541_v54 = vpack.c.bf16 %v2816_v12, %v2815_v40  ;;  %v2814_v58 = vadd.f32 %v2713_v10, %v2508_v17  ;;  %v2726_v15 = vpop.f32.mrf.mxu0  ;;  %v2513_v63 = vadd.f32 %v4040_v38, %v5029_v26  ;;  %v5206_v12 = vld [vmem:[#allocation6_spill] sm:$0xff] }
 0x1d1   : > { %v2420_v5 = vpop.f32.mrf.mxu1 }
 0x1d2   : > { %3597 = vst [vmem:[%s5112_s28 + $0x28] sm:$0xff] %v3541_v54   ;;  %v3536_v45 = vpack.c.bf16 %v2814_v58, %v2813_v51  ;;  %v4077_v46 = vpop.f32.mrf.mxu0  ;;  %v2511_v2 = vadd.f32 %v2420_v5, %v5036_v11  ;;  %v2819_v47 = vadd.f32 %v4076_v56, %v2513_v63  ;;  %v5207_v56 = vld [vmem:[#allocation8_spill] sm:$0xff]  ;;  %v5209_v58 = vld [vmem:[#allocation2_spill] sm:$0xff] }
 0x1d3   : > { %v4041_v23 = vpop.f32.mrf.mxu1  ;;  %v2214_v38 = vadd.f32 %v5207_v56, %v1907_v16 }
 0x1d4   : > { %3596 = vst [vmem:[%s5112_s28 + $0x20] sm:$0xff] %v3536_v45   ;;  %v2514_v18 = vadd.f32 %v4041_v23, %v2208_v22  ;;  %v2729_v7 = vpop.f32.mrf.mxu0  ;;  %v2817_v48 = vadd.f32 %v2726_v15, %v2511_v2  ;;  %v1913_v15 = vadd.f32 %v5076_v53, %v5209_v58 }
 0x1d5   : > { %v2423_v28 = vpop.f32.mrf.mxu1 }
 0x1d6   : > { %v2820_v43 = vadd.f32 %v4077_v46, %v2514_v18  ;;  %v2512_v20 = vadd.f32 %v2423_v28, %v2206_v25  ;;  %v4080_v4 = vpop.f32.mrf.mxu0  ;;  %v5210_v46 = vld [vmem:[#allocation3_spill] sm:$0xff]  ;;  %v2220_v21 = vadd.f32 %v5074_v9, %v1913_v15 }
 0x1d7   : > { %v4044_v26 = vpop.f32.mrf.mxu1  ;;  %v1911_v23 = vadd.f32 %v5082_v39, %v5210_v46 }
 0x1d8   : > { %v3551_v59 = vpack.c.bf16 %v2820_v43, %v2819_v47  ;;  %v2818_v31 = vadd.f32 %v2729_v7, %v2512_v20  ;;  %v2742_v11 = vpop.f32.mrf.mxu0  ;;  %v2517_v30 = vadd.f32 %v4044_v26, %v5043_v34  ;;  %v5211_v43 = vld [vmem:[#allocation9_spill] sm:$0xff]  ;;  %v5212_v26 = vld [vmem:[#allocation11_spill] sm:$0xff] }
 0x1d9   : > { %v2436_v13 = vpop.f32.mrf.mxu1  ;;  %v2218_v14 = vadd.f32 %v5212_v26, %v1911_v23 }
 0x1da   : > { %3599 = vst [vmem:[%s5112_s28 + $0x38] sm:$0xff] %v3551_v59   ;;  %v3546_v62 = vpack.c.bf16 %v2818_v31, %v2817_v48  ;;  %v4081_v52 = vpop.f32.mrf.mxu0  ;;  %v2515_v61 = vadd.f32 %v2436_v13, %v5050_v8  ;;  %v2823_v44 = vadd.f32 %v4080_v4, %v2517_v30  ;;  %v5213_v48 = vld [vmem:[#allocation10_spill] sm:$0xff]  ;;  %v5214_v13 = vld [vmem:[#allocation4_spill] sm:$0xff] }
 0x1db   : > { %v4045_v35 = vpop.f32.mrf.mxu1 }
 0x1dc   : > { %3598 = vst [vmem:[%s5112_s28 + $0x30] sm:$0xff] %v3546_v62   ;;  %v2518_v42 = vadd.f32 %v4045_v35, %v2212_v33  ;;  %v2745_v29 = vpop.f32.mrf.mxu0  ;;  %v2821_v3 = vadd.f32 %v2742_v11, %v2515_v61  ;;  %v5215_v33 = vld [vmem:[#allocation14_spill] sm:$0xff]  ;;  %v5216_v61 = vld [vmem:[#allocation5_spill] sm:$0xff] }
 0x1dd   : > { %v2439_v36 = vpop.f32.mrf.mxu1  ;;  %v1917_v62 = vadd.f32 %v5215_v33, %v5214_v13 }
 0x1de   : > { %v2824_v49 = vadd.f32 %v4081_v52, %v2518_v42  ;;  %v2516_v27 = vadd.f32 %v2439_v36, %v2210_v60  ;;  %v4084_v41 = vpop.f32.mrf.mxu0  ;;  %v5217_v42 = vld [vmem:[#allocation17_spill] sm:$0xff] }
 0x1df   : > { %v4048_v34 = vpop.f32.mrf.mxu1 }
 0x1e0   : > { %v3561_v55 = vpack.c.bf16 %v2824_v49, %v2823_v44  ;;  %v2822_v10 = vadd.f32 %v2745_v29, %v2516_v27  ;;  %v2758_v8 = vpop.f32.mrf.mxu0  ;;  %v2521_v24 = vadd.f32 %v4048_v34, %v5206_v12  ;;  %v1915_v29 = vadd.f32 %v5217_v42, %v5216_v61 }
 0x1e1   : > { %v2452_v32 = vpop.f32.mrf.mxu1 }
 0x1e2   : > { %3601 = vst [vmem:[%s5112_s28 + $0x48] sm:$0xff] %v3561_v55   ;;  %v3556_v40 = vpack.c.bf16 %v2822_v10, %v2821_v3  ;;  %v4085_v57 = vpop.f32.mrf.mxu0  ;;  %v2519_v51 = vadd.f32 %v2452_v32, %v5208_v50  ;;  %v2827_v5 = vadd.f32 %v4084_v41, %v2521_v24  ;;  %v5218_v41 = vld [vmem:[#allocation13_spill] sm:$0xff]  ;;  %v5219_v3 = vld [vmem:[#allocation12_spill] sm:$0xff] }
 0x1e3   : > { %v4049_v17 = vpop.f32.mrf.mxu1  ;;  %v2224_v34 = vadd.f32 %v5218_v41, %v1917_v62  ;;  %v5220_v32 = vld [vmem:[#allocation16_spill] sm:$0xff] }
 0x1e4   : > { %3600 = vst [vmem:[%s5112_s28 + $0x40] sm:$0xff] %v3556_v40   ;;  %v2522_v54 = vadd.f32 %v4049_v17, %v2216_v37  ;;  %v2761_v6 = vpop.f32.mrf.mxu0  ;;  %v2825_v25 = vadd.f32 %v2758_v8, %v2519_v51  ;;  %v2222_v37 = vadd.f32 %v5220_v32, %v1915_v29  ;;  %v5221_v40 = vld [vmem:[#allocation15_spill] sm:$0xff] }
 0x1e5   : > { %v2455_v19 = vpop.f32.mrf.mxu1 }
 0x1e6   : > { %v2828_v1 = vadd.f32 %v4085_v57, %v2522_v54  ;;  %v2520_v22 = vadd.f32 %v2455_v19, %v2214_v38  ;;  %v4088_v45 = vpop.f32.mrf.mxu0 }
 0x1e7   : > { %v4052_v63 = vpop.f32.mrf.mxu1 }
 0x1e8   : > { %v3571_v2 = vpack.c.bf16 %v2828_v1, %v2827_v5  ;;  %v2826_v18 = vadd.f32 %v2761_v6, %v2520_v22  ;;  %v2774_v7 = vpop.f32.mrf.mxu0  ;;  %v2525_v53 = vadd.f32 %v4052_v63, %v5211_v43 }
 0x1e9   : > { %v2468_v28 = vpop.f32.mrf.mxu1 }
 0x1ea   : > { %3603 = vst [vmem:[%s5112_s28 + $0x58] sm:$0xff] %v3571_v2   ;;  %v3566_v47 = vpack.c.bf16 %v2826_v18, %v2825_v25  ;;  %v4089_v20 = vpop.f32.mrf.mxu0  ;;  %v2523_v59 = vadd.f32 %v2468_v28, %v5213_v48  ;;  %v2831_v30 = vadd.f32 %v4088_v45, %v2525_v53 }
 0x1eb   : > { %v4053_v4 = vpop.f32.mrf.mxu1 }
 0x1ec   : > { %3602 = vst [vmem:[%s5112_s28 + $0x50] sm:$0xff] %v3566_v47   ;;  %v2526_v31 = vadd.f32 %v4053_v4, %v2220_v21  ;;  %v2777_v39 = vpop.f32.mrf.mxu0  ;;  %v2829_v36 = vadd.f32 %v2774_v7, %v2523_v59 }
 0x1ed   : > { %v2471_v11 = vpop.f32.mrf.mxu1 }
 0x1ee   : > { %v2832_v9 = vadd.f32 %v4089_v20, %v2526_v31  ;;  %v2524_v52 = vadd.f32 %v2471_v11, %v2218_v14  ;;  %v4092_v35 = vpop.f32.mrf.mxu0 }
 0x1ef   : > { %v4056_v60 = vpop.f32.mrf.mxu1 }
 0x1f0   : > { %v3581_v0 = vpack.c.bf16 %v2832_v9, %v2831_v30  ;;  %v2830_v44 = vadd.f32 %v2777_v39, %v2524_v52  ;;  %v2790_v49 = vpop.f32.mrf.mxu0  ;;  %v2529_v55 = vadd.f32 %v4056_v60, %v5219_v3 }
 0x1f1   : > { %v2484_v27 = vpop.f32.mrf.mxu1 }
 0x1f2   : > { %3605 = vst [vmem:[%s5112_s28 + $0x68] sm:$0xff] %v3581_v0   ;;  %v3576_v16 = vpack.c.bf16 %v2830_v44, %v2829_v36  ;;  %v4093_v8 = vpop.f32.mrf.mxu0  ;;  %v2527_v12 = vadd.f32 %v2484_v27, %v5221_v40  ;;  %v2835_v17 = vadd.f32 %v4092_v35, %v2529_v55 }
 0x1f3   : > { %v4057_v10 = vpop.f32.mrf.mxu1 }
 0x1f4   : > { %3604 = vst [vmem:[%s5112_s28 + $0x60] sm:$0xff] %v3576_v16   ;;  %v2530_v24 = vadd.f32 %v4057_v10, %v2224_v34  ;;  %v2793_v50 = vpop.f32.mrf.mxu0  ;;  %v2833_v51 = vadd.f32 %v2790_v49, %v2527_v12 }
 0x1f5   : > { %v2487_v57 = vpop.f32.mrf.mxu1 }
 0x1f6   : > { %v2836_v56 = vadd.f32 %v4093_v8, %v2530_v24  ;;  %v2528_v38 = vadd.f32 %v2487_v57, %v2222_v37 }
 0x1f8   : > { %v3591_v54 = vpack.c.bf16 %v2836_v56, %v2835_v17  ;;  %v2834_v6 = vadd.f32 %v2793_v50, %v2528_v38 }
 0x1fa   : > { %3607 = vst [vmem:[%s5112_s28 + $0x78] sm:$0xff] %v3591_v54   ;;  %v3586_v19 = vpack.c.bf16 %v2834_v6, %v2833_v51 }
 0x1fc   : > { %3606 = vst [vmem:[%s5112_s28 + $0x70] sm:$0xff] %v3586_v19  }
 0x1fd PF: > { %s12_s9 = sadd.s32 1, %s4131_s9  }
 0x1fe   : > { %p9_p4 = scmp.ge.s32.totalorder %s12_s9, 4  }
 0x200   :  { %11 = sbr.rel (!%p9_p4) target bundleno = 1 (0x1), region = 68 }

// kernel: reduction_a_forward.8
= control target key start
LH: loop header
LB: loop body
LE: loop exit
PB: predicated region body
PF: predicated region fallthrough
CT: control target
= control target key end

     0   :  { %s1733_s9 = smov 0   ;;  %s2027_s0 = inlined_call_operand.vmem [shape: f32[8,9,9,48], index: 0, kind: input, shape index: {}]   ;;  %s2028_s1 = inlined_call_operand.vmem [shape: bf16[9,48,128], index: 1, kind: input, shape index: {}]   ;;  %s2029_s2 = inlined_call_operand.vmem [shape: f32[2,8,8,128], index: 2, kind: output, shape index: {}]  }
   0x1 LB: > { %s1739_s10 = sadd.s32 4294967295, %s1716_s9   ;;  %p1304_p0 = scmp.ge.s32.totalorder %s1716_s9, 1  ;;  %s1716_s9 = sphi %s1733_s9, %s12_s9  }
   0x2   : > { %p114_p1 = scmp.lt.s32.totalorder %s1716_s9, 3 }
   0x4   : > { %p115_p2 = pnand %p1304_p0, %p114_p1 }
   0x5   : > { %s1305_s13 = sshll.u32 (!%p115_p2), %s1739_s10, 2  ;;  %p144_p4 = scmp.lt.s32.totalorder (!%p115_p2), %s1739_s10, 1 }
   0x6   : > { %118 = sbr.rel (%p115_p2) target bundleno = 290 (0x122), region = 28  ;;  %p138_p3 = scmp.lt.s32.totalorder (!%p115_p2), %s1305_s13, 7 }
   0xb   : > { %v1683_v0 = vld [vmem:[%s2028_s1 + $0x28] sm:$0xff]   ;;  %v1684_v1 = vld [vmem:[%s2028_s1 + $0x10] sm:$0xff]   ;;  %v1685_v2 = vld [vmem:[%s2028_s1 + $0x20] sm:$0xff]   ;;  %s2031_s13 = smov (!%p138_p3, %s1305_s13), 7  ;;  %vm206_vm0 = vcmask 392192   ;;  %s2033_s10 = smov (!%p144_p4, %s1739_s10), 1 }
   0xc   : > { %1542 = vmatprep.subr.bf16.mxu0 %v1683_v0  ;;  %1556 = vmatprep.subr.bf16.mxu1 %v1684_v1  ;;  %v1686_v3 = vld [vmem:[%s2028_s1 + $0x8] sm:$0xff]   ;;  %v1687_v4 = vld [vmem:[%s2028_s1 + $0x18] sm:$0xff]   ;;  %v1688_v5 = vld [vmem:[%s2028_s1] sm:$0xff]   ;;  %s1674_s24 = smul.u32 144, %s2031_s13 }
   0xd   : > { %1543 = vmatpush3.bf16.msra.mxu0 %v1683_v0  ;;  %1557 = vmatpush3.bf16.msra.mxu1 %v1684_v1  ;;  %v1689_v6 = vld [vmem:[%s2028_s1 + $0x40] sm:$0xff]   ;;  %v1690_v7 = vld [vmem:[%s2028_s1 + $0x58] sm:$0xff]   ;;  %v1692_v21 = vld [vmem:[%s2028_s1 + $0x50] sm:$0xff]  }
   0xe   : > { %1544 = vmatprep.subr.bf16.mxu0 %v1685_v2  ;;  %1558 = vmatprep.subr.bf16.mxu1 %v1686_v3  ;;  %s1765_s27 = scalar_lea.vmem %s2027_s0, %s1674_s24  ;;  %v1691_v20 = vld [vmem:[%s2028_s1 + $0x38] sm:$0xff]   ;;  %v1693_v32 = vld [vmem:[%s2028_s1 + $0x30] sm:$0xff]   ;;  %v1694_v33 = vld [vmem:[%s2028_s1 + $0x48] sm:$0xff]  }
   0xf   : > { %v1309_v8 = vld [vmem:[%s1765_s27 + $0x90] sm:$0xff]  ;;  %v1775_v9 = vld [vmem:[%s1765_s27 + $0xa0] sm:$0xff]  ;;  %v1696_v44 = vld [vmem:[%s2028_s1 + $0x88] sm:$0xff]  }
  0x10   : > { %v150_v10 = vld [vmem:[%s1765_s27] sm:$0xff]  ;;  %v177_v11 = vpack.c.bf16 %v1775_v9, %v1309_v8  ;;  %v1780_v12 = vld [vmem:[%s1765_s27 + $0x10] sm:$0xff]  ;;  %v1697_v54 = vld [vmem:[%s2028_s1 + $0x68] sm:$0xff]  }
  0x11   : > { %1545 = vmatpush3.bf16.msra.mxu0 %v1685_v2  ;;  %1559 = vmatpush3.bf16.msra.mxu1 %v1686_v3  ;;  %v1783_v13 = vld [vmem:[%s1765_s27 + $0xb0] sm:$0xff]  ;;  %v1786_v14 = vld [vmem:[%s1765_s27 + $0xc0] sm:$0xff]  ;;  %v158_v15 = vpack.c.bf16 %v1780_v12, %v150_v10  ;;  %v1700_v63 = vld [vmem:[%s2028_s1 + $0x78] sm:$0xff]  }
  0x12   : > { %1546 = vmatprep.subr.bf16.mxu0 %v1687_v4  ;;  %1560 = vmatprep.subr.bf16.mxu1 %v1688_v5  ;;  %v178_v16 = vpack.c.bf16 %v1786_v14, %v1783_v13  ;;  %v1792_v17 = vld [vmem:[%s1765_s27 + $0x20] sm:$0xff]  ;;  %v1795_v18 = vld [vmem:[%s1765_s27 + $0x30] sm:$0xff] }
  0x13   : > { %1548 = vmatprep.mubr.msk.bf16.mxu0 %vm206_vm0, %v177_v11  ;;  %v159_v19 = vpack.c.bf16 %v1795_v18, %v1792_v17  ;;  %1562 = vmatprep.mubr.msk.bf16.mxu1 %vm206_vm0, %v158_v15  ;;  %v1808_v22 = vld [vmem:[%s1765_s27 + $0xd0] sm:$0xff]  ;;  %v1811_v23 = vld [vmem:[%s1765_s27 + $0xe0] sm:$0xff]  ;;  %v1702_v15 = vld [vmem:[%s2028_s1 + $0xb8] sm:$0xff]  }
  0x14   : > { %v1814_v24 = vld [vmem:[%s1765_s27 + $0x40] sm:$0xff]  ;;  %v1817_v25 = vld [vmem:[%s1765_s27 + $0x50] sm:$0xff]  ;;  %v179_v26 = vpack.c.bf16 %v1811_v23, %v1808_v22 }
  0x15   : > { %1547 = vmatpush3.bf16.msra.mxu0 %v1687_v4  ;;  %1561 = vmatpush3.bf16.msra.mxu1 %v1688_v5  ;;  %v160_v27 = vpack.c.bf16 %v1817_v25, %v1814_v24  ;;  %v1825_v28 = vld [vmem:[%s1765_s27 + $0xf0] sm:$0xff]  ;;  %v1828_v29 = vld [vmem:[%s1765_s27 + $0x100] sm:$0xff] }
  0x16   : > { %1570 = vmatprep.subr.bf16.mxu0 %v1689_v6  ;;  %1584 = vmatprep.subr.bf16.mxu1 %v1690_v7  ;;  %v1831_v30 = vld [vmem:[%s1765_s27 + $0x60] sm:$0xff]  ;;  %v1835_v31 = vld [vmem:[%s1765_s27 + $0x70] sm:$0xff]  ;;  %v180_v36 = vpack.c.bf16 %v1828_v29, %v1825_v28 }
  0x17   : > { %v379_v34 = vld [vmem:[%s1765_s27 + $0x1] sm:$0xff]  ;;  %v1846_v35 = vld [vmem:[%s1765_s27 + $0x11] sm:$0xff]  ;;  %v161_v39 = vpack.c.bf16 %v1835_v31, %v1831_v30 }
  0x18   : > { %1549 = vmatmul.mubr.msk.bf16.vlgmr.msra.gmra.mxu0 %vm206_vm0, %v178_v16  ;;  %1563 = vmatmul.mubr.msk.bf16.vlgmr.msra.gmra.mxu1 %vm206_vm0, %v159_v19  ;;  %v1350_v37 = vld [vmem:[%s1765_s27 + $0x120] sm:$0xff]  ;;  %v1351_v38 = vld [vmem:[%s1765_s27 + $0x130] sm:$0xff]  ;;  %v387_v40 = vpack.c.bf16 %v1846_v35, %v379_v34  ;;  %v1703_v34 = vld [vmem:[%s2028_s1 + $0x98] sm:$0xff]  }
  0x19   : > { %1571 = vmatpush3.bf16.msra.mxu0 %v1689_v6  ;;  %1585 = vmatpush3.bf16.msra.mxu1 %v1690_v7  ;;  %v510_v41 = vpack.c.bf16 %v1351_v38, %v1350_v37  ;;  %v1857_v42 = vld [vmem:[%s1765_s27 + $0x21] sm:$0xff]  ;;  %v1695_v43 = vld [vmem:[%s2028_s1 + $0x70] sm:$0xff]  }
  0x1a   : > { %1572 = vmatprep.subr.bf16.mxu0 %v1691_v20  ;;  %1586 = vmatprep.subr.bf16.mxu1 %v1692_v21  ;;  %v1868_v45 = vld [vmem:[%s1765_s27 + $0x31] sm:$0xff]  ;;  %v1352_v46 = vld [vmem:[%s1765_s27 + $0x140] sm:$0xff] }
  0x1b   : > { %1552 = vmatprep.mubr.msk.bf16.mxu0 %vm206_vm0, %v179_v26  ;;  %1566 = vmatprep.mubr.msk.bf16.mxu1 %vm206_vm0, %v160_v27  ;;  %v1353_v47 = vld [vmem:[%s1765_s27 + $0x150] sm:$0xff]  ;;  %v1875_v48 = vld [vmem:[%s1765_s27 + $0x41] sm:$0xff]  ;;  %v388_v49 = vpack.c.bf16 %v1868_v45, %v1857_v42 }
  0x1c   : > { %v1880_v50 = vld [vmem:[%s1765_s27 + $0x51] sm:$0xff]  ;;  %v1354_v51 = vld [vmem:[%s1765_s27 + $0x160] sm:$0xff]  ;;  %v511_v52 = vpack.c.bf16 %v1353_v47, %v1352_v46  ;;  %v1706_v46 = vld [vmem:[%s2028_s1 + $0xa8] sm:$0xff]  }
  0x1d   : > { %1573 = vmatpush3.bf16.msra.mxu0 %v1691_v20  ;;  %1587 = vmatpush3.bf16.msra.mxu1 %v1692_v21  ;;  %v1355_v53 = vld [vmem:[%s1765_s27 + $0x170] sm:$0xff]  ;;  %v1698_v55 = vld [vmem:[%s2028_s1 + $0x80] sm:$0xff]   ;;  %v389_v56 = vpack.c.bf16 %v1880_v50, %v1875_v48 }
  0x1e   : > { %1574 = vmatprep.subr.bf16.mxu0 %v1693_v32  ;;  %1588 = vmatprep.subr.bf16.mxu1 %v1694_v33  ;;  %v1893_v57 = vld [vmem:[%s1765_s27 + $0x61] sm:$0xff]  ;;  %v1896_v58 = vld [vmem:[%s1765_s27 + $0x71] sm:$0xff]  ;;  %v512_v59 = vpack.c.bf16 %v1355_v53, %v1354_v51  ;;  %v878_v51 = vpack.c.bf16 %v1792_v17, %v1780_v12  ;;  %v1002_v12 = vpack.c.bf16 %v1808_v22, %v1786_v14 }
  0x1f   : > { %v1356_v60 = vld [vmem:[%s1765_s27 + $0x180] sm:$0xff]  ;;  %v1357_v61 = vld [vmem:[%s1765_s27 + $0x190] sm:$0xff]  ;;  %v390_v3 = vpack.c.bf16 %v1896_v58, %v1893_v57  ;;  %v880_v17 = vpack.c.bf16 %v1831_v30, %v1817_v25  ;;  %v1123_v25 = vpack.c.bf16 %v1857_v42, %v1846_v35 }
  0x20   : > { %1553 = vmatmul.mubr.msk.bf16.gmra.mxu0 %vm206_vm0, %v180_v36  ;;  %1567 = vmatmul.mubr.msk.bf16.gmra.mxu1 %vm206_vm0, %v161_v39  ;;  %v1699_v62 = vld [vmem:[%s2028_s1 + $0x60] sm:$0xff]   ;;  %v1371_v0 = vld [vmem:[%s1765_s27 + $0x1b0] sm:$0xff]  ;;  %v513_v5 = vpack.c.bf16 %v1357_v61, %v1356_v60 }
  0x21   : > { %1575 = vmatpush3.bf16.msra.mxu0 %v1693_v32  ;;  %1589 = vmatpush3.bf16.msra.mxu1 %v1694_v33  ;;  %v1372_v1 = vld [vmem:[%s1765_s27 + $0x1c0] sm:$0xff]  ;;  %v1393_v4 = vld [vmem:[%s1765_s27 + $0x131] sm:$0xff] }
  0x22   : > { %1576 = vmatprep.mubr.msk.bf16.mxu0 %vm206_vm0, %v387_v40  ;;  %1590 = vmatprep.mubr.msk.bf16.mxu1 %vm206_vm0, %v510_v41  ;;  %v1392_v2 = vld [vmem:[%s1765_s27 + $0x121] sm:$0xff]  ;;  %v633_v6 = vpack.c.bf16 %v1372_v1, %v1371_v0  ;;  %v1373_v8 = vld [vmem:[%s1765_s27 + $0x1d0] sm:$0xff] }
  0x23   : > { %1598 = vmatprep.subr.bf16.mxu0 %v1695_v43  ;;  %1612 = vmatprep.subr.bf16.mxu1 %v1696_v44  ;;  %v755_v7 = vpack.c.bf16 %v1393_v4, %v1392_v2  ;;  %v1374_v10 = vld [vmem:[%s1765_s27 + $0x1e0] sm:$0xff]  ;;  %v1395_v19 = vld [vmem:[%s1765_s27 + $0x151] sm:$0xff] }
  0x24   : > { %v1701_v11 = vld [vmem:[%s2028_s1 + $0xa0] sm:$0xff]   ;;  %v634_v20 = vpack.c.bf16 %v1374_v10, %v1373_v8  ;;  %v1375_v21 = vld [vmem:[%s1765_s27 + $0x1f0] sm:$0xff] }
  0x25   : > { %v1394_v16 = vld [vmem:[%s1765_s27 + $0x141] sm:$0xff]  ;;  %v1397_v33 = vld [vmem:[%s1765_s27 + $0x171] sm:$0xff] }
  0x26   : > { %v1376_v26 = vld [vmem:[%s1765_s27 + $0x200] sm:$0xff]  ;;  %v756_v27 = vpack.c.bf16 %v1395_v19, %v1394_v16  ;;  %v1704_v36 = vld [vmem:[%s2028_s1 + $0xb0] sm:$0xff]  }
  0x27   : > { %v1396_v32 = vld [vmem:[%s1765_s27 + $0x161] sm:$0xff]  ;;  %v635_v37 = vpack.c.bf16 %v1376_v26, %v1375_v21  ;;  %v1377_v39 = vld [vmem:[%s1765_s27 + $0x210] sm:$0xff] }
  0x28   : > { %1577 = vmatmul.mubr.msk.bf16.vlgmr.msra.gmra.mxu0 %vm206_vm0, %v388_v49  ;;  %1591 = vmatmul.mubr.msk.bf16.vlgmr.msra.gmra.mxu1 %vm206_vm0, %v511_v52  ;;  %v757_v38 = vpack.c.bf16 %v1397_v33, %v1396_v32  ;;  %v1378_v40 = vld [vmem:[%s1765_s27 + $0x220] sm:$0xff]  ;;  %v1001_v52 = vpack.c.bf16 %v1783_v13, %v1775_v9  ;;  %v1707_v53 = vld [vmem:[%s2028_s1 + $0xd0] sm:$0xff]   ;;  %v879_v9 = vpack.c.bf16 %v1814_v24, %v1795_v18  ;;  %v1708_v13 = vld [vmem:[%s2028_s1 + $0xc8] sm:$0xff]  }
  0x29   : > { %1599 = vmatpush3.bf16.msra.mxu0 %v1695_v43  ;;  %1613 = vmatpush3.bf16.msra.mxu1 %v1696_v44  ;;  %v1398_v41 = vld [vmem:[%s1765_s27 + $0x181] sm:$0xff]  ;;  %v1399_v43 = vld [vmem:[%s1765_s27 + $0x191] sm:$0xff]  ;;  %v636_v47 = vpack.c.bf16 %v1378_v40, %v1377_v39 }
  0x2a   : > { %1600 = vmatprep.subr.bf16.mxu0 %v1697_v54  ;;  %1614 = vmatprep.subr.bf16.mxu1 %v1698_v55  ;;  %v1705_v44 = vld [vmem:[%s2028_s1 + $0x90] sm:$0xff]   ;;  %v758_v49 = vpack.c.bf16 %v1399_v43, %v1398_v41  ;;  %v1420_v18 = vld [vmem:[%s1765_s27 + $0x80] sm:$0xff] }
  0x2b   : > { %1580 = vmatprep.mubr.msk.bf16.mxu0 %vm206_vm0, %v389_v56  ;;  %1594 = vmatprep.mubr.msk.bf16.mxu1 %vm206_vm0, %v512_v59  ;;  %v1441_v24 = vld [vmem:[%s1765_s27 + $0x110] sm:$0xff]  ;;  %v1709_v14 = vld [vmem:[%s2028_s1 + $0xc0] sm:$0xff]   ;;  %v881_v22 = vpack.c.bf16 %v1420_v18, %v1835_v31 }
  0x2c   : > { %v1462_v30 = vld [vmem:[%s1765_s27 + $0x81] sm:$0xff]  ;;  %s1478_s27 = sshll.u32 %s2033_s10, 6 }
  0x2d   : > { %1601 = vmatpush3.bf16.msra.mxu0 %v1697_v54  ;;  %1615 = vmatpush3.bf16.msra.mxu1 %v1698_v55  ;;  %v1003_v54 = vpack.c.bf16 %v1825_v28, %v1811_v23  ;;  %v1004_v23 = vpack.c.bf16 %v1441_v24, %v1828_v29  ;;  %v1125_v28 = vpack.c.bf16 %v1893_v57, %v1880_v50  ;;  %s2014_s21 = scalar_lea.vmem %s2029_s2, %s1478_s27 }
  0x2e   : > { %1602 = vmatprep.subr.bf16.mxu0 %v1699_v62  ;;  %1616 = vmatprep.subr.bf16.mxu1 %v1700_v63  ;;  %v1124_v29 = vpack.c.bf16 %v1875_v48, %v1868_v45  ;;  %v1126_v31 = vpack.c.bf16 %v1462_v30, %v1896_v58 }
  0x30   : > { %1581 = vmatmul.mubr.msk.bf16.gmra.mxu0 %vm206_vm0, %v390_v3  ;;  %1595 = vmatmul.mubr.msk.bf16.gmra.mxu1 %vm206_vm0, %v513_v5 }
  0x31   : > { %1603 = vmatpush3.bf16.msra.mxu0 %v1699_v62  ;;  %1617 = vmatpush3.bf16.msra.mxu1 %v1700_v63 }
  0x32   : > { %1604 = vmatprep.mubr.msk.bf16.mxu0 %vm206_vm0, %v633_v6  ;;  %1618 = vmatprep.mubr.msk.bf16.mxu1 %vm206_vm0, %v755_v7 }
  0x33   : > { %1626 = vmatprep.subr.bf16.mxu0 %v1701_v11  ;;  %1640 = vmatprep.subr.bf16.mxu1 %v1702_v15 }
  0x38   : > { %1605 = vmatmul.mubr.msk.bf16.vlgmr.msra.gmra.mxu0 %vm206_vm0, %v634_v20  ;;  %1619 = vmatmul.mubr.msk.bf16.vlgmr.msra.gmra.mxu1 %vm206_vm0, %v756_v27 }
  0x39   : > { %1627 = vmatpush3.bf16.msra.mxu0 %v1701_v11  ;;  %1641 = vmatpush3.bf16.msra.mxu1 %v1702_v15 }
  0x3a   : > { %1628 = vmatprep.subr.bf16.mxu0 %v1703_v34  ;;  %1642 = vmatprep.subr.bf16.mxu1 %v1704_v36 }
  0x3b   : > { %1608 = vmatprep.mubr.msk.bf16.mxu0 %vm206_vm0, %v635_v37  ;;  %1622 = vmatprep.mubr.msk.bf16.mxu1 %vm206_vm0, %v757_v38 }
  0x3d   : > { %1629 = vmatpush3.bf16.msra.mxu0 %v1703_v34  ;;  %1643 = vmatpush3.bf16.msra.mxu1 %v1704_v36 }
  0x3e   : > { %1630 = vmatprep.subr.bf16.mxu0 %v1705_v44  ;;  %1644 = vmatprep.subr.bf16.mxu1 %v1706_v46 }
  0x40   : > { %1609 = vmatmul.mubr.msk.bf16.gmra.mxu0 %vm206_vm0, %v636_v47  ;;  %1623 = vmatmul.mubr.msk.bf16.gmra.mxu1 %vm206_vm0, %v758_v49 }
  0x41   : > { %1631 = vmatpush3.bf16.msra.mxu0 %v1705_v44  ;;  %1645 = vmatpush3.bf16.msra.mxu1 %v1706_v46 }
  0x42   : > { %1632 = vmatprep.mubr.msk.bf16.mxu0 %vm206_vm0, %v878_v51  ;;  %1646 = vmatprep.mubr.msk.bf16.mxu1 %vm206_vm0, %v1001_v52 }
  0x43   : > { %1654 = vmatprep.subr.bf16.mxu0 %v1707_v53  ;;  %1668 = vmatprep.subr.bf16.mxu1 %v1707_v53 }
  0x48   : > { %1633 = vmatmul.mubr.msk.bf16.vlgmr.msra.gmra.mxu0 %vm206_vm0, %v879_v9  ;;  %1647 = vmatmul.mubr.msk.bf16.vlgmr.msra.gmra.mxu1 %vm206_vm0, %v1002_v12 }
  0x49   : > { %1655 = vmatpush3.bf16.msra.mxu0 %v1707_v53  ;;  %1671 = vmatpush3.bf16.msra.mxu1 %v1707_v53 }
  0x4a   : > { %1656 = vmatprep.subr.bf16.mxu0 %v1708_v13  ;;  %1669 = vmatprep.subr.bf16.mxu1 %v1708_v13 }
  0x4b   : > { %1636 = vmatprep.mubr.msk.bf16.mxu0 %vm206_vm0, %v880_v17  ;;  %1650 = vmatprep.mubr.msk.bf16.mxu1 %vm206_vm0, %v1003_v54 }
  0x4d   : > { %1657 = vmatpush3.bf16.msra.mxu0 %v1708_v13  ;;  %1672 = vmatpush3.bf16.msra.mxu1 %v1708_v13 }
  0x4e   : > { %1658 = vmatprep.subr.bf16.mxu0 %v1709_v14  ;;  %1670 = vmatprep.subr.bf16.mxu1 %v1709_v14 }
  0x50   : > { %1637 = vmatmul.mubr.msk.bf16.gmra.mxu0 %vm206_vm0, %v881_v22  ;;  %1651 = vmatmul.mubr.msk.bf16.gmra.mxu1 %vm206_vm0, %v1004_v23 }
  0x51   : > { %1659 = vmatpush3.bf16.msra.mxu0 %v1709_v14  ;;  %1673 = vmatpush3.bf16.msra.mxu1 %v1709_v14 }
  0x52   : > { %1660 = vmatprep.mubr.msk.bf16.mxu0 %vm206_vm0, %v1123_v25  ;;  %1664 = vmatprep.mubr.msk.bf16.mxu1 %vm206_vm0, %v1125_v28 }
  0x58   : > { %1661 = vmatmul.mubr.msk.bf16.vlgmr.msra.gmra.mxu0 %vm206_vm0, %v1124_v29  ;;  %1665 = vmatmul.mubr.msk.bf16.vlgmr.msra.gmra.mxu1 %vm206_vm0, %v1126_v31 }
  0xd8   : > { %v1550_v35 = vpop.f32.mrf.mxu0  ;;  %v1564_v42 = vpop.f32.mrf.mxu1 }
  0xd9   : > { %v357_v49 = vadd.f32 %v1564_v42, %v1550_v35 }
  0xda   : > { %v253_v50 = vpop.f32.mrf.mxu0  ;;  %v348_v55 = vpop.f32.mrf.mxu1 }
  0xdb   : > { %v349_v9 = vadd.f32 %v348_v55, %v253_v50 }
  0xdc   : > { %v1551_v56 = vpop.f32.mrf.mxu0  ;;  %v1565_v57 = vpop.f32.mrf.mxu1 }
  0xdd   : > { %v360_v24 = vadd.f32 %v1565_v57, %v1551_v56 }
  0xde   : > { %v256_v59 = vpop.f32.mrf.mxu0  ;;  %v351_v60 = vpop.f32.mrf.mxu1 }
  0xdf   : > { %v352_v30 = vadd.f32 %v351_v60, %v256_v59 }
  0xe0   : > { %v1554_v61 = vpop.f32.mrf.mxu0  ;;  %v1568_v62 = vpop.f32.mrf.mxu1 }
  0xe1   : > { %v373_v52 = vadd.f32 %v1568_v62, %v1554_v61 }
  0xe2   : > { %v269_v63 = vpop.f32.mrf.mxu0  ;;  %v364_v0 = vpop.f32.mrf.mxu1 }
  0xe3   : > { %v365_v17 = vadd.f32 %v364_v0, %v269_v63 }
  0xe4   : > { %v1555_v1 = vpop.f32.mrf.mxu0  ;;  %v1569_v45 = vpop.f32.mrf.mxu1 }
  0xe5   : > { %v376_v23 = vadd.f32 %v1569_v45, %v1555_v1 }
  0xe6   : > { %v272_v48 = vpop.f32.mrf.mxu0  ;;  %v367_v58 = vpop.f32.mrf.mxu1 }
  0xe7   : > { %v368_v42 = vadd.f32 %v367_v58, %v272_v48 }
  0xe8   : > { %v1578_v2 = vpop.f32.mrf.mxu0  ;;  %v1592_v3 = vpop.f32.mrf.mxu1 }
  0xe9   : > { %v495_v12 = vadd.f32 %v1578_v2, %v357_v49 }
  0xea   : > { %v462_v4 = vpop.f32.mrf.mxu0  ;;  %v585_v5 = vpop.f32.mrf.mxu1 }
  0xeb   : > { %v493_v14 = vadd.f32 %v462_v4, %v349_v9  ;;  %v618_v29 = vadd.f32 %v1592_v3, %v495_v12 }
  0xec   : > { %v1579_v6 = vpop.f32.mrf.mxu0  ;;  %v1593_v7 = vpop.f32.mrf.mxu1 }
  0xed   : > { %v496_v31 = vadd.f32 %v1579_v6, %v360_v24  ;;  %v616_v55 = vadd.f32 %v585_v5, %v493_v14 }
  0xee   : > { %v465_v8 = vpop.f32.mrf.mxu0  ;;  %v588_v10 = vpop.f32.mrf.mxu1 }
  0xef   : > { %v494_v2 = vadd.f32 %v465_v8, %v352_v30  ;;  %v619_v4 = vadd.f32 %v1593_v7, %v496_v31 }
  0xf0   : > { %v1582_v11 = vpop.f32.mrf.mxu0  ;;  %v1596_v15 = vpop.f32.mrf.mxu1 }
  0xf1   : > { %v499_v54 = vadd.f32 %v1582_v11, %v373_v52  ;;  %v617_v58 = vadd.f32 %v588_v10, %v494_v2 }
  0xf2   : > { %v478_v16 = vpop.f32.mrf.mxu0  ;;  %v601_v19 = vpop.f32.mrf.mxu1 }
  0xf3   : > { %v497_v25 = vadd.f32 %v478_v16, %v365_v17  ;;  %v622_v61 = vadd.f32 %v1596_v15, %v499_v54 }
  0xf4   : > { %v1583_v20 = vpop.f32.mrf.mxu0  ;;  %v1597_v21 = vpop.f32.mrf.mxu1 }
  0xf5   : > { %v500_v62 = vadd.f32 %v1583_v20, %v376_v23  ;;  %v620_v56 = vadd.f32 %v601_v19, %v497_v25 }
  0xf6   : > { %v481_v26 = vpop.f32.mrf.mxu0  ;;  %v604_v27 = vpop.f32.mrf.mxu1 }
  0xf7   : > { %v498_v57 = vadd.f32 %v481_v26, %v368_v42  ;;  %v623_v3 = vadd.f32 %v1597_v21, %v500_v62 }
  0xf8   : > { %v1606_v32 = vpop.f32.mrf.mxu0  ;;  %v1620_v33 = vpop.f32.mrf.mxu1 }
  0xf9   : > { %v741_v63 = vadd.f32 %v1606_v32, %v618_v29  ;;  %v621_v8 = vadd.f32 %v604_v27, %v498_v57 }
  0xfa   : > { %v708_v34 = vpop.f32.mrf.mxu0  ;;  %v830_v36 = vpop.f32.mrf.mxu1 }
  0xfb   : > { %v739_v59 = vadd.f32 %v708_v34, %v616_v55  ;;  %v863_v11 = vadd.f32 %v1620_v33, %v741_v63 }
  0xfc   : > { %v1607_v37 = vpop.f32.mrf.mxu0  ;;  %v2001_v38 = vpop.f32.mrf.mxu1 }
  0xfd   : > { %v742_v15 = vadd.f32 %v1607_v37, %v619_v4  ;;  %v861_v19 = vadd.f32 %v830_v36, %v739_v59 }
  0xfe   : > { %v711_v39 = vpop.f32.mrf.mxu0  ;;  %v2003_v40 = vpop.f32.mrf.mxu1 }
  0xff   : > { %v740_v26 = vadd.f32 %v711_v39, %v617_v58 }
 0x100   : > { %v1610_v41 = vpop.f32.mrf.mxu0  ;;  %v1624_v43 = vpop.f32.mrf.mxu1 }
 0x101   : > { %v745_v1 = vadd.f32 %v1610_v41, %v622_v61  ;;  %v862_v27 = vadd.f32 %v2003_v40, %v740_v26 }
 0x102   : > { %v724_v44 = vpop.f32.mrf.mxu0  ;;  %v846_v46 = vpop.f32.mrf.mxu1 }
 0x103   : > { %v743_v6 = vadd.f32 %v724_v44, %v620_v56  ;;  %v867_v16 = vadd.f32 %v1624_v43, %v745_v1  ;;  %v864_v44 = vadd.f32 %v2001_v38, %v742_v15 }
 0x104   : > { %v1611_v47 = vpop.f32.mrf.mxu0  ;;  %v1625_v51 = vpop.f32.mrf.mxu1 }
 0x105   : > { %v746_v20 = vadd.f32 %v1611_v47, %v623_v3  ;;  %v865_v7 = vadd.f32 %v846_v46, %v743_v6 }
 0x106   : > { %v727_v53 = vpop.f32.mrf.mxu0  ;;  %v849_v13 = vpop.f32.mrf.mxu1 }
 0x107   : > { %v744_v34 = vadd.f32 %v727_v53, %v621_v8  ;;  %v868_v37 = vadd.f32 %v1625_v51, %v746_v20 }
 0x108   : > { %v1634_v18 = vpop.f32.mrf.mxu0  ;;  %v1648_v22 = vpop.f32.mrf.mxu1 }
 0x109   : > { %v986_v41 = vadd.f32 %v1634_v18, %v863_v11  ;;  %v866_v39 = vadd.f32 %v849_v13, %v744_v34 }
 0x10a   : > { %v953_v28 = vpop.f32.mrf.mxu0  ;;  %v1076_v35 = vpop.f32.mrf.mxu1 }
 0x10b   : > { %v984_v10 = vadd.f32 %v953_v28, %v861_v19  ;;  %v1109_v43 = vadd.f32 %v1648_v22, %v986_v41 }
 0x10c   : > { %v1635_v50 = vpop.f32.mrf.mxu0  ;;  %v1649_v0 = vpop.f32.mrf.mxu1 }
 0x10d   : > { %v987_v47 = vadd.f32 %v1635_v50, %v864_v44  ;;  %v1107_v46 = vadd.f32 %v1076_v35, %v984_v10 }
 0x10e   : > { %v956_v45 = vpop.f32.mrf.mxu0  ;;  %v1079_v60 = vpop.f32.mrf.mxu1 }
 0x10f   : > { %v985_v51 = vadd.f32 %v956_v45, %v862_v27  ;;  %v1110_v22 = vadd.f32 %v1649_v0, %v987_v47 }
 0x110   : > { %v1638_v48 = vpop.f32.mrf.mxu0  ;;  %v1652_v5 = vpop.f32.mrf.mxu1 }
 0x111   : > { %v990_v52 = vadd.f32 %v1638_v48, %v867_v16  ;;  %v1108_v31 = vadd.f32 %v1079_v60, %v985_v51 }
 0x112   : > { %v969_v32 = vpop.f32.mrf.mxu0  ;;  %v1092_v49 = vpop.f32.mrf.mxu1 }
 0x113   : > { %v988_v9 = vadd.f32 %v969_v32, %v865_v7  ;;  %v1113_v17 = vadd.f32 %v1652_v5, %v990_v52 }
 0x114   : > { %v1639_v21 = vpop.f32.mrf.mxu0  ;;  %v1653_v33 = vpop.f32.mrf.mxu1 }
 0x115   : > { %v991_v54 = vadd.f32 %v1639_v21, %v868_v37  ;;  %v1111_v40 = vadd.f32 %v1092_v49, %v988_v9 }
 0x116   : > { %v972_v12 = vpop.f32.mrf.mxu0  ;;  %v1095_v36 = vpop.f32.mrf.mxu1 }
 0x117   : > { %v989_v24 = vadd.f32 %v972_v12, %v866_v39  ;;  %v1114_v28 = vadd.f32 %v1653_v33, %v991_v54 }
 0x118   : > { %v1662_v38 = vpop.f32.mrf.mxu0  ;;  %v1666_v18 = vpop.f32.mrf.mxu1 }
 0x119   : > { %v1231_v53 = vadd.f32 %v1662_v38, %v1109_v43  ;;  %v1235_v14 = vadd.f32 %v1666_v18, %v1113_v17  ;;  %v1112_v61 = vadd.f32 %v1095_v36, %v989_v24 }
 0x11a   : > { %v1198_v13 = vpop.f32.mrf.mxu0  ;;  %v1214_v25 = vpop.f32.mrf.mxu1 }
 0x11b   : > { %1239 = vst [vmem:[%s2014_s21 + $0x10] sm:$0xff] %v1231_v53  ;;  %v1229_v23 = vadd.f32 %v1198_v13, %v1107_v46  ;;  %1243 = vst [vmem:[%s2014_s21 + $0x30] sm:$0xff] %v1235_v14  ;;  %v1233_v30 = vadd.f32 %v1214_v25, %v1111_v40 }
 0x11c   : > { %v1663_v29 = vpop.f32.mrf.mxu0  ;;  %v1667_v42 = vpop.f32.mrf.mxu1 }
 0x11d   : > { %1237 = vst [vmem:[%s2014_s21] sm:$0xff] %v1229_v23  ;;  %v1232_v35 = vadd.f32 %v1663_v29, %v1110_v22  ;;  %1241 = vst [vmem:[%s2014_s21 + $0x20] sm:$0xff] %v1233_v30  ;;  %v1236_v62 = vadd.f32 %v1667_v42, %v1114_v28 }
 0x11e   : > { %v1201_v50 = vpop.f32.mrf.mxu0  ;;  %v1217_v2 = vpop.f32.mrf.mxu1 }
 0x11f   : > { %1240 = vst [vmem:[%s2014_s21 + $0x18] sm:$0xff] %v1232_v35  ;;  %v1230_v55 = vadd.f32 %v1201_v50, %v1108_v31  ;;  %1244 = vst [vmem:[%s2014_s21 + $0x38] sm:$0xff] %v1236_v62  ;;  %v1234_v63 = vadd.f32 %v1217_v2, %v1112_v61 }
 0x121   : > { %1238 = vst [vmem:[%s2014_s21 + $0x8] sm:$0xff] %v1230_v55  ;;  %1242 = vst [vmem:[%s2014_s21 + $0x28] sm:$0xff] %v1234_v63 }
 0x122 PF: > { %s12_s9 = sadd.s32 1, %s1716_s9  }
 0x123   : > { %p9_p5 = scmp.ge.s32.totalorder %s12_s9, 4  }
 0x125   :  { %11 = sbr.rel (!%p9_p5) target bundleno = 1 (0x1), region = 71 }

// kernel: reduction_a_forward.9
= control target key start
LH: loop header
LB: loop body
LE: loop exit
PB: predicated region body
PF: predicated region fallthrough
CT: control target
= control target key end

     0   :  { %s422_s6 = smov 0   ;;  %s560_s0 = inlined_call_operand.vmem [shape: f32[8,9,9,4], index: 0, kind: input, shape index: {}]   ;;  %s561_s1 = inlined_call_operand.vmem [shape: f32[2,8,8,4], index: 1, kind: output, shape index: {}]  }
   0x1 LB: > { %s428_s7 = sadd.s32 4294967295, %s410_s6   ;;  %p331_p0 = scmp.ge.s32.totalorder %s410_s6, 1  ;;  %s410_s6 = sphi %s422_s6, %s11_s6  }
   0x2   : > { %p89_p1 = scmp.lt.s32.totalorder %s410_s6, 3 }
   0x4   : > { %p90_p2 = pnand %p331_p0, %p89_p1 }
   0x5   : > { %s332_s8 = sshll.u32 (!%p90_p2), %s428_s7, 2  ;;  %p117_p4 = scmp.lt.s32.totalorder (!%p90_p2), %s428_s7, 1 }
   0x6   : > { %93 = sbr.rel (%p90_p2) target bundleno = 52 (0x34), region = 24  ;;  %p111_p3 = scmp.lt.s32.totalorder (!%p90_p2), %s332_s8, 7 }
   0xb   : > { %s563_s8 = smov (!%p111_p3, %s332_s8), 7  ;;  %s565_s7 = smov (!%p117_p4, %s428_s7), 1  ;;  %vm263_vm0 = vcmask 31744  }
   0xc   : > { %s395_s9 = smul.u32 144, %s563_s8  ;;  %s394_s13 = sshll.u32 %s565_s7, 6 }
   0xd   : > { %s514_s16 = scalar_lea.vmem %s561_s1, %s394_s13 }
   0xe   : > { %s436_s12 = scalar_lea.vmem %s560_s0, %s395_s9 }
   0xf   : > { %v122_v0 = vld [vmem:[%s436_s12] sm:$0xff]  ;;  %v336_v1 = vld [vmem:[%s436_s12 + $0x90] sm:$0xff] }
  0x10   : > { %v147_v2 = vld [vmem:[%s436_s12 + $0x1] sm:$0xff]  ;;  %v139_v3 = vmax.f32 %v122_v0, %v336_v1  ;;  %v368_v5 = vld [vmem:[%s436_s12 + $0x10] sm:$0xff] }
  0x11   : > { %v344_v4 = vld [vmem:[%s436_s12 + $0x120] sm:$0xff]  ;;  %v447_v7 = vld [vmem:[%s436_s12 + $0x11] sm:$0xff] }
  0x12   : > { %v444_v6 = vld [vmem:[%s436_s12 + $0xa0] sm:$0xff]  ;;  %v155_v8 = vmax.f32 %v139_v3, %v147_v2  ;;  %v352_v9 = vld [vmem:[%s436_s12 + $0x1b0] sm:$0xff] }
  0x13   : > { %v140_v10 = vmax.f32 %v368_v5, %v444_v6  ;;  %v345_v11 = vld [vmem:[%s436_s12 + $0x130] sm:$0xff]  ;;  %v369_v12 = vld [vmem:[%s436_s12 + $0x20] sm:$0xff] }
  0x14   : > { %v455_v13 = vld [vmem:[%s436_s12 + $0xb0] sm:$0xff]  ;;  %v458_v14 = vld [vmem:[%s436_s12 + $0x21] sm:$0xff]  ;;  %v172_v15 = vmax.f32 %v155_v8, %v344_v4 }
  0x15   : > { %v360_v16 = vld [vmem:[%s436_s12 + $0x121] sm:$0xff]  ;;  %v156_v17 = vmax.f32 %v140_v10, %v447_v7  ;;  %v141_v19 = vmax.f32 %v369_v12, %v455_v13  ;;  %v370_v21 = vld [vmem:[%s436_s12 + $0x30] sm:$0xff] }
  0x16   : > { %v353_v18 = vld [vmem:[%s436_s12 + $0x1c0] sm:$0xff]  ;;  %v470_v23 = vld [vmem:[%s436_s12 + $0x31] sm:$0xff]  ;;  %v189_v24 = vmax.f32 %v172_v15, %v352_v9 }
  0x17   : > { %v346_v20 = vld [vmem:[%s436_s12 + $0x140] sm:$0xff]  ;;  %v173_v25 = vmax.f32 %v156_v17, %v345_v11  ;;  %v361_v26 = vld [vmem:[%s436_s12 + $0x131] sm:$0xff]  ;;  %v157_v27 = vmax.f32 %v141_v19, %v458_v14 }
  0x18   : > { %v467_v22 = vld [vmem:[%s436_s12 + $0xc0] sm:$0xff]  ;;  %v354_v28 = vld [vmem:[%s436_s12 + $0x1d0] sm:$0xff]  ;;  %v205_v33 = vmax.f32 %v189_v24, %v360_v16 }
  0x19   : > { %v142_v29 = vmax.f32 %v370_v21, %v467_v22  ;;  %v347_v30 = vld [vmem:[%s436_s12 + $0x150] sm:$0xff]  ;;  %v371_v31 = vld [vmem:[%s436_s12 + $0x40] sm:$0xff]  ;;  %v190_v34 = vmax.f32 %v173_v25, %v353_v18  ;;  %v174_v35 = vmax.f32 %v157_v27, %v346_v20 }
  0x1a   : > { %v484_v32 = vld [vmem:[%s436_s12 + $0xd0] sm:$0xff]  ;;  %v362_v36 = vld [vmem:[%s436_s12 + $0x141] sm:$0xff]  ;;  %v222_v43 = vmax.f32 %v205_v33, %v368_v5 }
  0x1b   : > { %v158_v37 = vmax.f32 %v142_v29, %v470_v23  ;;  %v489_v38 = vld [vmem:[%s436_s12 + $0x41] sm:$0xff]  ;;  %v143_v40 = vmax.f32 %v371_v31, %v484_v32  ;;  %v372_v41 = vld [vmem:[%s436_s12 + $0x50] sm:$0xff]  ;;  %v206_v44 = vmax.f32 %v190_v34, %v361_v26  ;;  %v191_v45 = vmax.f32 %v174_v35, %v354_v28 }
  0x1c   : > { %v355_v39 = vld [vmem:[%s436_s12 + $0x1e0] sm:$0xff]  ;;  %v388_v48 = vld [vmem:[%s436_s12 + $0x51] sm:$0xff]  ;;  %v239_v54 = vmax.f32 %v222_v43, %v444_v6 }
  0x1d   : > { %v495_v42 = vld [vmem:[%s436_s12 + $0xe0] sm:$0xff]  ;;  %v175_v46 = vmax.f32 %v158_v37, %v347_v30  ;;  %v363_v49 = vld [vmem:[%s436_s12 + $0x151] sm:$0xff]  ;;  %v159_v50 = vmax.f32 %v143_v40, %v489_v38  ;;  %v223_v55 = vmax.f32 %v206_v44, %v369_v12  ;;  %v207_v56 = vmax.f32 %v191_v45, %v362_v36 }
  0x1e   : > { %v348_v47 = vld [vmem:[%s436_s12 + $0x160] sm:$0xff]  ;;  %v144_v51 = vmax.f32 %v372_v41, %v495_v42  ;;  %v505_v53 = vld [vmem:[%s436_s12 + $0xf0] sm:$0xff]  ;;  %v255_v3 = vmax.f32 %v239_v54, %v447_v7 }
  0x1f   : > { %v373_v52 = vld [vmem:[%s436_s12 + $0x60] sm:$0xff]  ;;  %v192_v57 = vmax.f32 %v175_v46, %v355_v39  ;;  %v356_v58 = vld [vmem:[%s436_s12 + $0x1f0] sm:$0xff]  ;;  %v176_v61 = vmax.f32 %v159_v50, %v348_v47  ;;  %v240_v4 = vmax.f32 %v223_v55, %v455_v13  ;;  %v224_v5 = vmax.f32 %v207_v56, %v370_v21 }
  0x20   : > { %v349_v59 = vld [vmem:[%s436_s12 + $0x170] sm:$0xff]  ;;  %v389_v60 = vld [vmem:[%s436_s12 + $0x61] sm:$0xff]  ;;  %v160_v63 = vmax.f32 %v144_v51, %v388_v48  ;;  %v145_v0 = vmax.f32 %v373_v52, %v505_v53  ;;  %264 = vst.msk [vmem:[%s514_s16] sm:$0xff] %vm263_vm0, %v255_v3 }
  0x21   : > { %v364_v62 = vld [vmem:[%s436_s12 + $0x161] sm:$0xff]  ;;  %v374_v1 = vld [vmem:[%s436_s12 + $0x70] sm:$0xff]  ;;  %v208_v6 = vmax.f32 %v192_v57, %v363_v49  ;;  %v193_v11 = vmax.f32 %v176_v61, %v356_v58  ;;  %v256_v7 = vmax.f32 %v240_v4, %v458_v14  ;;  %v241_v17 = vmax.f32 %v224_v5, %v467_v22 }
  0x22   : > { %v382_v2 = vld [vmem:[%s436_s12 + $0x100] sm:$0xff]  ;;  %v390_v10 = vld [vmem:[%s436_s12 + $0x71] sm:$0xff]  ;;  %v177_v12 = vmax.f32 %v160_v63, %v349_v59  ;;  %v161_v15 = vmax.f32 %v145_v0, %v389_v60 }
  0x23   : > { %v357_v8 = vld [vmem:[%s436_s12 + $0x200] sm:$0xff]  ;;  %v146_v16 = vmax.f32 %v374_v1, %v382_v2  ;;  %v225_v13 = vmax.f32 %v208_v6, %v371_v31  ;;  %v365_v18 = vld [vmem:[%s436_s12 + $0x171] sm:$0xff]  ;;  %v209_v21 = vmax.f32 %v193_v11, %v364_v62  ;;  %265 = vst.msk [vmem:[%s514_s16 + $0x8] sm:$0xff] %vm263_vm0, %v256_v7  ;;  %v257_v27 = vmax.f32 %v241_v17, %v470_v23 }
  0x24   : > { %v350_v9 = vld [vmem:[%s436_s12 + $0x180] sm:$0xff]  ;;  %v358_v19 = vld [vmem:[%s436_s12 + $0x210] sm:$0xff]  ;;  %v194_v24 = vmax.f32 %v177_v12, %v357_v8 }
  0x25   : > { %v351_v20 = vld [vmem:[%s436_s12 + $0x190] sm:$0xff]  ;;  %v178_v25 = vmax.f32 %v161_v15, %v350_v9  ;;  %v162_v26 = vmax.f32 %v146_v16, %v390_v10  ;;  %v242_v14 = vmax.f32 %v225_v13, %v484_v32  ;;  %v366_v28 = vld [vmem:[%s436_s12 + $0x181] sm:$0xff]  ;;  %v226_v29 = vmax.f32 %v209_v21, %v372_v41  ;;  %266 = vst.msk [vmem:[%s514_s16 + $0x10] sm:$0xff] %vm263_vm0, %v257_v27 }
  0x26   : > { %v359_v22 = vld [vmem:[%s436_s12 + $0x220] sm:$0xff]  ;;  %v210_v30 = vmax.f32 %v194_v24, %v365_v18  ;;  %v367_v35 = vld [vmem:[%s436_s12 + $0x191] sm:$0xff] }
  0x27   : > { %v195_v31 = vmax.f32 %v178_v25, %v358_v19  ;;  %v179_v33 = vmax.f32 %v162_v26, %v351_v20  ;;  %v258_v34 = vmax.f32 %v242_v14, %v489_v38  ;;  %v243_v36 = vmax.f32 %v226_v29, %v495_v42  ;;  %v375_v39 = vld [vmem:[%s436_s12 + $0x80] sm:$0xff]  ;;  %v383_v45 = vld [vmem:[%s436_s12 + $0x110] sm:$0xff] }
  0x28   : > { %v227_v23 = vmax.f32 %v210_v30, %v373_v52  ;;  %v391_v47 = vld [vmem:[%s436_s12 + $0x81] sm:$0xff] }
  0x29   : > { %v211_v37 = vmax.f32 %v195_v31, %v366_v28  ;;  %v196_v32 = vmax.f32 %v179_v33, %v359_v22  ;;  %267 = vst.msk [vmem:[%s514_s16 + $0x18] sm:$0xff] %vm263_vm0, %v258_v34  ;;  %v259_v40 = vmax.f32 %v243_v36, %v388_v48 }
  0x2a   : > { %v244_v41 = vmax.f32 %v227_v23, %v505_v53 }
  0x2b   : > { %v228_v43 = vmax.f32 %v211_v37, %v374_v1  ;;  %v212_v44 = vmax.f32 %v196_v32, %v367_v35  ;;  %268 = vst.msk [vmem:[%s514_s16 + $0x20] sm:$0xff] %vm263_vm0, %v259_v40 }
  0x2c   : > { %v260_v38 = vmax.f32 %v244_v41, %v389_v60 }
  0x2d   : > { %v245_v46 = vmax.f32 %v228_v43, %v382_v2  ;;  %v229_v42 = vmax.f32 %v212_v44, %v375_v39 }
  0x2e   : > { %269 = vst.msk [vmem:[%s514_s16 + $0x28] sm:$0xff] %vm263_vm0, %v260_v38 }
  0x2f   : > { %v261_v49 = vmax.f32 %v245_v46, %v390_v10  ;;  %v246_v50 = vmax.f32 %v229_v42, %v383_v45 }
  0x31   : > { %270 = vst.msk [vmem:[%s514_s16 + $0x30] sm:$0xff] %vm263_vm0, %v261_v49  ;;  %v262_v51 = vmax.f32 %v246_v50, %v391_v47 }
  0x33   : > { %271 = vst.msk [vmem:[%s514_s16 + $0x38] sm:$0xff] %vm263_vm0, %v262_v51 }
  0x34 PF: > { %s11_s6 = sadd.s32 1, %s410_s6  }
  0x35   : > { %p8_p5 = scmp.ge.s32.totalorder %s11_s6, 4  }
  0x37   :  { %10 = sbr.rel (!%p8_p5) target bundleno = 1 (0x1), region = 59 }

// kernel: reduction_a_forward.5
= control target key start
LH: loop header
LB: loop body
LE: loop exit
PB: predicated region body
PF: predicated region fallthrough
CT: control target
= control target key end

     0   :  { %s1412_s9 = smov 0   ;;  %s1686_s0 = inlined_call_operand.vmem [shape: f32[8,9,9,4], index: 0, kind: input, shape index: {}]   ;;  %s1687_s1 = inlined_call_operand.vmem [shape: bf16[9,4,128], index: 1, kind: input, shape index: {}]   ;;  %s1688_s2 = inlined_call_operand.vmem [shape: f32[2,8,8,128], index: 2, kind: output, shape index: {}]  }
   0x1 LB: > { %s1418_s10 = sadd.s32 4294967295, %s1395_s9   ;;  %p1125_p0 = scmp.ge.s32.totalorder %s1395_s9, 1  ;;  %s1395_s9 = sphi %s1412_s9, %s12_s9  }
   0x2   : > { %p114_p1 = scmp.lt.s32.totalorder %s1395_s9, 3 }
   0x4   : > { %p115_p2 = pnand %p1125_p0, %p114_p1 }
   0x5   : > { %s1126_s13 = sshll.u32 (!%p115_p2), %s1418_s10, 2  ;;  %p144_p4 = scmp.lt.s32.totalorder (!%p115_p2), %s1418_s10, 1 }
   0x6   : > { %118 = sbr.rel (%p115_p2) target bundleno = 289 (0x121), region = 28  ;;  %p138_p3 = scmp.lt.s32.totalorder (!%p115_p2), %s1126_s13, 7 }
   0xb   : > { %v1138_v0 = vld [vmem:[%s1687_s1 + $0x2] sm:$0x3]  ;;  %vm191_vm0 = vcmask 1041408   ;;  %v162_v2 = vld [vmem:[%s1687_s1] sm:$0x3]  ;;  %s1690_s13 = smov (!%p138_p3, %s1126_s13), 7 }
   0xc   : > { %1371 = vmatprep.subr.msk.bf16.mxu1 %vm191_vm0, %v1138_v0  ;;  %1370 = vmatprep.subr.msk.bf16.mxu0 %vm191_vm0, %v1138_v0  ;;  %v193_v1 = vsel %vm191_vm0, %v1138_v0, 0  ;;  %v1147_v3 = vld [vmem:[%s1687_s1 + $0x4] sm:$0x3]  ;;  %s1380_s18 = smul.u32 144, %s1690_s13  ;;  %vm178_vm1 = vcmask 31744   ;;  %v273_v18 = vsel %vm191_vm0, %v162_v2, 0 }
   0xd   : > { %1369 = vmatpush3.bf16.msra.mxu1 %v193_v1  ;;  %1279 = vmatpush3.bf16.msra.mxu0 %v193_v1  ;;  %v367_v15 = vsel %vm191_vm0, %v1147_v3, 0  ;;  %v1160_v24 = vld [vmem:[%s1687_s1 + $0x6] sm:$0x3]  ;;  %v1173_v27 = vld [vmem:[%s1687_s1 + $0x8] sm:$0x3]  ;;  %s1692_s10 = smov (!%p144_p4, %s1418_s10), 1 }
   0xe   : > { %1372 = vmatprep.subr.msk.bf16.mxu1 %vm191_vm0, %v162_v2  ;;  %1373 = vmatprep.subr.msk.bf16.mxu0 %vm191_vm0, %v1147_v3  ;;  %s1440_s21 = scalar_lea.vmem %s1686_s0, %s1380_s18  ;;  %v573_v36 = vsel %vm191_vm0, %v1173_v27, 0  ;;  %v470_v38 = vsel %vm191_vm0, %v1160_v24, 0  ;;  %v1186_v40 = vld [vmem:[%s1687_s1 + $0xa] sm:$0x3]  ;;  %v1199_v41 = vld [vmem:[%s1687_s1 + $0xc] sm:$0x3] }
   0xf   : > { %v1130_v4 = vld [vmem:[%s1440_s21 + $0x90] sm:$0xff]  ;;  %v1444_v5 = vld [vmem:[%s1440_s21 + $0xa0] sm:$0xff]  ;;  %v778_v2 = vsel %vm191_vm0, %v1199_v41, 0  ;;  %s1232_s6 = sshll.u32 %s1692_s10, 6 }
  0x10   : > { %v1447_v6 = vld [vmem:[%s1440_s21 + $0xd0] sm:$0xff]  ;;  %v172_v7 = vpack.c.bf16 %v1444_v5, %v1130_v4  ;;  %v1451_v8 = vld [vmem:[%s1440_s21 + $0xe0] sm:$0xff]  ;;  %v675_v4 = vsel %vm191_vm0, %v1186_v40, 0  ;;  %s1671_s11 = scalar_lea.vmem %s1688_s2, %s1232_s6 }
  0x11   : > { %v1454_v9 = vld [vmem:[%s1440_s21 + $0xb0] sm:$0xff]  ;;  %v1457_v10 = vld [vmem:[%s1440_s21 + $0xc0] sm:$0xff]  ;;  %v174_v11 = vpack.c.bf16 %v1451_v8, %v1447_v6 }
  0x12   : > { %v173_v12 = vpack.c.bf16 %v1457_v10, %v1454_v9  ;;  %v1464_v13 = vld [vmem:[%s1440_s21 + $0xf0] sm:$0xff]  ;;  %v1467_v14 = vld [vmem:[%s1440_s21 + $0x100] sm:$0xff]  ;;  %1280 = vmatprep.mubr.msk.bf16.mxu0 %vm178_vm1, %v172_v7 }
  0x13   : > { %v150_v16 = vld [vmem:[%s1440_s21] sm:$0xff]  ;;  %v175_v17 = vpack.c.bf16 %v1467_v14, %v1464_v13  ;;  %v1476_v19 = vld [vmem:[%s1440_s21 + $0x10] sm:$0xff]  ;;  %1284 = vmatprep.mubr.msk.bf16.mxu1 %vm178_vm1, %v174_v11  ;;  %v1212_v11 = vld [vmem:[%s1687_s1 + $0xe] sm:$0x3] }
  0x14   : > { %v340_v20 = vld [vmem:[%s1440_s21 + $0x1] sm:$0xff]  ;;  %v1480_v21 = vld [vmem:[%s1440_s21 + $0x11] sm:$0xff]  ;;  %1281 = vmatmul.mubr.msk.bf16.vlgmr.msra.gmra.mxu0 %vm178_vm1, %v173_v12  ;;  %v158_v22 = vpack.c.bf16 %v1476_v19, %v150_v16 }
  0x15   : > { %v348_v23 = vpack.c.bf16 %v1480_v21, %v340_v20  ;;  %1285 = vmatmul.mubr.msk.bf16.vlgmr.msra.gmra.mxu1 %vm178_vm1, %v175_v17  ;;  %1299 = vmatpush3.bf16.msra.mxu0 %v367_v15  ;;  %v1491_v25 = vld [vmem:[%s1440_s21 + $0x21] sm:$0xff]  ;;  %v1494_v26 = vld [vmem:[%s1440_s21 + $0x31] sm:$0xff] }
  0x16   : > { %1289 = vmatpush3.bf16.msra.mxu1 %v273_v18  ;;  %1290 = vmatprep.mubr.msk.bf16.mxu1 %vm178_vm1, %v158_v22  ;;  %v1501_v28 = vld [vmem:[%s1440_s21 + $0x20] sm:$0xff]  ;;  %v1504_v29 = vld [vmem:[%s1440_s21 + $0x30] sm:$0xff]  ;;  %v349_v32 = vpack.c.bf16 %v1494_v26, %v1491_v25 }
  0x17   : > { %1300 = vmatprep.mubr.msk.bf16.mxu0 %vm178_vm1, %v348_v23  ;;  %1374 = vmatprep.subr.msk.bf16.mxu1 %vm191_vm0, %v1160_v24  ;;  %v1509_v30 = vld [vmem:[%s1440_s21 + $0x40] sm:$0xff]  ;;  %v1512_v31 = vld [vmem:[%s1440_s21 + $0x50] sm:$0xff]  ;;  %v159_v35 = vpack.c.bf16 %v1504_v29, %v1501_v28 }
  0x18   : > { %1375 = vmatprep.subr.msk.bf16.mxu0 %vm191_vm0, %v1173_v27  ;;  %v1518_v33 = vld [vmem:[%s1440_s21 + $0x41] sm:$0xff]  ;;  %v1521_v34 = vld [vmem:[%s1440_s21 + $0x51] sm:$0xff]  ;;  %v160_v37 = vpack.c.bf16 %v1512_v31, %v1509_v30  ;;  %v759_v27 = vpack.c.bf16 %v1501_v28, %v1476_v19 }
  0x19   : > { %v350_v39 = vpack.c.bf16 %v1521_v34, %v1518_v33  ;;  %v1540_v42 = vld [vmem:[%s1440_s21 + $0x60] sm:$0xff]  ;;  %v1546_v44 = vld [vmem:[%s1440_s21 + $0x71] sm:$0xff] }
  0x1a   : > { %v1543_v43 = vld [vmem:[%s1440_s21 + $0x61] sm:$0xff]  ;;  %v1550_v45 = vld [vmem:[%s1440_s21 + $0x70] sm:$0xff] }
  0x1b   : > { %v1165_v46 = vld [vmem:[%s1440_s21 + $0x1b0] sm:$0xff]  ;;  %v1166_v47 = vld [vmem:[%s1440_s21 + $0x1c0] sm:$0xff]  ;;  %v351_v50 = vpack.c.bf16 %v1546_v44, %v1543_v43  ;;  %v161_v52 = vpack.c.bf16 %v1550_v45, %v1540_v42 }
  0x1c   : > { %1301 = vmatmul.mubr.msk.bf16.vlgmr.msra.gmra.mxu0 %vm178_vm1, %v349_v32  ;;  %v1152_v48 = vld [vmem:[%s1440_s21 + $0x120] sm:$0xff]  ;;  %v1153_v49 = vld [vmem:[%s1440_s21 + $0x130] sm:$0xff]  ;;  %v554_v53 = vpack.c.bf16 %v1166_v47, %v1165_v46  ;;  %v761_v46 = vpack.c.bf16 %v1540_v42, %v1512_v31  ;;  %v964_v31 = vpack.c.bf16 %v1491_v25, %v1480_v21  ;;  %v862_v42 = vpack.c.bf16 %v1454_v9, %v1444_v5 }
  0x1d   : > { %1291 = vmatmul.mubr.msk.bf16.vlgmr.msra.gmra.mxu1 %vm178_vm1, %v159_v35  ;;  %1319 = vmatpush3.bf16.msra.mxu0 %v573_v36  ;;  %v1562_v51 = vld [vmem:[%s1440_s21 + $0x110] sm:$0xff]  ;;  %v451_v55 = vpack.c.bf16 %v1153_v49, %v1152_v48  ;;  %v1168_v57 = vld [vmem:[%s1440_s21 + $0x1e0] sm:$0xff]  ;;  %v966_v21 = vpack.c.bf16 %v1543_v43, %v1521_v34  ;;  %v864_v5 = vpack.c.bf16 %v1464_v13, %v1451_v8 }
  0x1e   : > { %1309 = vmatpush3.bf16.msra.mxu1 %v470_v38  ;;  %1294 = vmatprep.mubr.msk.bf16.mxu1 %vm178_vm1, %v160_v37  ;;  %v865_v54 = vpack.c.bf16 %v1562_v51, %v1467_v14  ;;  %v1167_v56 = vld [vmem:[%s1440_s21 + $0x1d0] sm:$0xff]  ;;  %v1154_v58 = vld [vmem:[%s1440_s21 + $0x140] sm:$0xff] }
  0x1f   : > { %1304 = vmatprep.mubr.msk.bf16.mxu0 %vm178_vm1, %v350_v39  ;;  %1376 = vmatprep.subr.msk.bf16.mxu1 %vm191_vm0, %v1186_v40  ;;  %v1155_v59 = vld [vmem:[%s1440_s21 + $0x150] sm:$0xff]  ;;  %v1156_v60 = vld [vmem:[%s1440_s21 + $0x160] sm:$0xff]  ;;  %v555_v62 = vpack.c.bf16 %v1168_v57, %v1167_v56  ;;  %v760_v39 = vpack.c.bf16 %v1509_v30, %v1504_v29 }
  0x20   : > { %1377 = vmatprep.subr.msk.bf16.mxu0 %vm191_vm0, %v1199_v41  ;;  %v1157_v61 = vld [vmem:[%s1440_s21 + $0x170] sm:$0xff]  ;;  %v1170_v0 = vld [vmem:[%s1440_s21 + $0x200] sm:$0xff]  ;;  %v452_v1 = vpack.c.bf16 %v1155_v59, %v1154_v58  ;;  %v881_v41 = vsel %vm191_vm0, %v1212_v11, 0 }
  0x21   : > { %v1169_v63 = vld [vmem:[%s1440_s21 + $0x1f0] sm:$0xff]  ;;  %v453_v3 = vpack.c.bf16 %v1157_v61, %v1156_v60  ;;  %v1172_v15 = vld [vmem:[%s1440_s21 + $0x220] sm:$0xff] }
  0x22   : > { %v556_v7 = vpack.c.bf16 %v1170_v0, %v1169_v63  ;;  %v1171_v12 = vld [vmem:[%s1440_s21 + $0x210] sm:$0xff]  ;;  %v1158_v17 = vld [vmem:[%s1440_s21 + $0x180] sm:$0xff] }
  0x23   : > { %v1225_v16 = vld [vmem:[%s1687_s1 + $0x10] sm:$0x3]  ;;  %v1178_v20 = vld [vmem:[%s1440_s21 + $0x121] sm:$0xff]  ;;  %v557_v23 = vpack.c.bf16 %v1172_v15, %v1171_v12 }
  0x24   : > { %1305 = vmatmul.mubr.msk.bf16.gmra.mxu0 %vm178_vm1, %v351_v50  ;;  %v1159_v18 = vld [vmem:[%s1440_s21 + $0x190] sm:$0xff]  ;;  %v1180_v35 = vld [vmem:[%s1440_s21 + $0x141] sm:$0xff]  ;;  %v983_v28 = vsel %vm191_vm0, %v1225_v16, 0  ;;  %v965_v50 = vpack.c.bf16 %v1518_v33, %v1494_v26 }
  0x25   : > { %1295 = vmatmul.mubr.msk.bf16.gmra.mxu1 %vm178_vm1, %v161_v52  ;;  %1320 = vmatprep.mubr.msk.bf16.mxu0 %vm178_vm1, %v554_v53  ;;  %v1179_v22 = vld [vmem:[%s1440_s21 + $0x131] sm:$0xff]  ;;  %v454_v24 = vpack.c.bf16 %v1159_v18, %v1158_v17  ;;  %v1182_v37 = vld [vmem:[%s1440_s21 + $0x161] sm:$0xff] }
  0x26   : > { %1310 = vmatprep.mubr.msk.bf16.mxu1 %vm178_vm1, %v451_v55  ;;  %v656_v32 = vpack.c.bf16 %v1179_v22, %v1178_v20  ;;  %v1181_v36 = vld [vmem:[%s1440_s21 + $0x151] sm:$0xff]  ;;  %v1198_v47 = vld [vmem:[%s1440_s21 + $0x80] sm:$0xff] }
  0x27   : > { %v1183_v38 = vld [vmem:[%s1440_s21 + $0x171] sm:$0xff]  ;;  %v657_v19 = vpack.c.bf16 %v1181_v36, %v1180_v35  ;;  %v1184_v48 = vld [vmem:[%s1440_s21 + $0x181] sm:$0xff]  ;;  %v762_v30 = vpack.c.bf16 %v1198_v47, %v1550_v45  ;;  %v863_v45 = vpack.c.bf16 %v1447_v6, %v1457_v10 }
  0x28   : > { %v658_v40 = vpack.c.bf16 %v1183_v38, %v1182_v37  ;;  %v1185_v29 = vld [vmem:[%s1440_s21 + $0x191] sm:$0xff]  ;;  %v1224_v9 = vld [vmem:[%s1440_s21 + $0x81] sm:$0xff] }
  0x29   : > { %v659_v49 = vpack.c.bf16 %v1185_v29, %v1184_v48  ;;  %v967_v25 = vpack.c.bf16 %v1224_v9, %v1546_v44 }
  0x2c   : > { %1321 = vmatmul.mubr.msk.bf16.vlgmr.msra.gmra.mxu0 %vm178_vm1, %v555_v62 }
  0x2d   : > { %1311 = vmatmul.mubr.msk.bf16.vlgmr.msra.gmra.mxu1 %vm178_vm1, %v452_v1  ;;  %1339 = vmatpush3.bf16.msra.mxu0 %v778_v2 }
  0x2e   : > { %1329 = vmatpush3.bf16.msra.mxu1 %v675_v4  ;;  %1314 = vmatprep.mubr.msk.bf16.mxu1 %vm178_vm1, %v453_v3 }
  0x2f   : > { %1324 = vmatprep.mubr.msk.bf16.mxu0 %vm178_vm1, %v556_v7  ;;  %1378 = vmatprep.subr.msk.bf16.mxu1 %vm191_vm0, %v1212_v11 }
  0x30   : > { %1379 = vmatprep.subr.msk.bf16.mxu0 %vm191_vm0, %v1225_v16 }
  0x34   : > { %1325 = vmatmul.mubr.msk.bf16.gmra.mxu0 %vm178_vm1, %v557_v23 }
  0x35   : > { %1315 = vmatmul.mubr.msk.bf16.gmra.mxu1 %vm178_vm1, %v454_v24  ;;  %1340 = vmatprep.mubr.msk.bf16.mxu0 %vm178_vm1, %v759_v27 }
  0x36   : > { %1330 = vmatprep.mubr.msk.bf16.mxu1 %vm178_vm1, %v656_v32 }
  0x3c   : > { %1341 = vmatmul.mubr.msk.bf16.vlgmr.msra.gmra.mxu0 %vm178_vm1, %v760_v39 }
  0x3d   : > { %1331 = vmatmul.mubr.msk.bf16.vlgmr.msra.gmra.mxu1 %vm178_vm1, %v657_v19  ;;  %1359 = vmatpush3.bf16.msra.mxu0 %v983_v28 }
  0x3e   : > { %1349 = vmatpush3.bf16.msra.mxu1 %v881_v41  ;;  %1334 = vmatprep.mubr.msk.bf16.mxu1 %vm178_vm1, %v658_v40 }
  0x3f   : > { %1344 = vmatprep.mubr.msk.bf16.mxu0 %vm178_vm1, %v761_v46 }
  0x44   : > { %1345 = vmatmul.mubr.msk.bf16.gmra.mxu0 %vm178_vm1, %v762_v30 }
  0x45   : > { %1335 = vmatmul.mubr.msk.bf16.gmra.mxu1 %vm178_vm1, %v659_v49  ;;  %1360 = vmatprep.mubr.msk.bf16.mxu0 %vm178_vm1, %v964_v31 }
  0x46   : > { %1350 = vmatprep.mubr.msk.bf16.mxu1 %vm178_vm1, %v862_v42 }
  0x4c   : > { %1361 = vmatmul.mubr.msk.bf16.vlgmr.msra.gmra.mxu0 %vm178_vm1, %v965_v50 }
  0x4d   : > { %1351 = vmatmul.mubr.msk.bf16.vlgmr.msra.gmra.mxu1 %vm178_vm1, %v863_v45  ;;  %1364 = vmatprep.mubr.msk.bf16.mxu0 %vm178_vm1, %v966_v21 }
  0x4e   : > { %1354 = vmatprep.mubr.msk.bf16.mxu1 %vm178_vm1, %v864_v5 }
  0x54   : > { %1365 = vmatmul.mubr.msk.bf16.gmra.mxu0 %vm178_vm1, %v967_v25 }
  0x55   : > { %1355 = vmatmul.mubr.msk.bf16.gmra.mxu1 %vm178_vm1, %v865_v54 }
  0xd4   : > { %v1282_v6 = vpop.f32.mrf.mxu0 }
  0xd5   : > { %v1286_v8 = vpop.f32.mrf.mxu1 }
  0xd6   : > { %v229_v10 = vpop.f32.mrf.mxu0 }
  0xd7   : > { %v245_v13 = vpop.f32.mrf.mxu1 }
  0xd8   : > { %v1283_v26 = vpop.f32.mrf.mxu0 }
  0xd9   : > { %v1287_v33 = vpop.f32.mrf.mxu1 }
  0xda   : > { %v232_v34 = vpop.f32.mrf.mxu0 }
  0xdb   : > { %v1651_v43 = vpop.f32.mrf.mxu1 }
  0xdc   : > { %v1302_v52 = vpop.f32.mrf.mxu0 }
  0xdd   : > { %v1292_v53 = vpop.f32.mrf.mxu1 }
  0xde   : > { %v403_v55 = vpop.f32.mrf.mxu0  ;;  %v318_v32 = vadd.f32 %v1292_v53, %v1282_v6 }
  0xdf   : > { %v309_v44 = vpop.f32.mrf.mxu1 }
  0xe0   : > { %v1303_v56 = vpop.f32.mrf.mxu0  ;;  %v310_v37 = vadd.f32 %v309_v44, %v229_v10  ;;  %v436_v19 = vadd.f32 %v1302_v52, %v318_v32 }
  0xe1   : > { %v1293_v57 = vpop.f32.mrf.mxu1 }
  0xe2   : > { %v406_v58 = vpop.f32.mrf.mxu0  ;;  %v321_v28 = vadd.f32 %v1293_v57, %v1283_v26  ;;  %v434_v46 = vadd.f32 %v403_v55, %v310_v37 }
  0xe3   : > { %v312_v59 = vpop.f32.mrf.mxu1 }
  0xe4   : > { %v1306_v14 = vpop.f32.mrf.mxu0  ;;  %v313_v47 = vadd.f32 %v312_v59, %v232_v34  ;;  %v437_v49 = vadd.f32 %v1303_v56, %v321_v28 }
  0xe5   : > { %v1296_v51 = vpop.f32.mrf.mxu1 }
  0xe6   : > { %v419_v54 = vpop.f32.mrf.mxu0  ;;  %v334_v31 = vadd.f32 %v1296_v51, %v1286_v8  ;;  %v435_v5 = vadd.f32 %v406_v58, %v313_v47 }
  0xe7   : > { %v325_v60 = vpop.f32.mrf.mxu1 }
  0xe8   : > { %v1307_v61 = vpop.f32.mrf.mxu0  ;;  %v326_v45 = vadd.f32 %v325_v60, %v245_v13  ;;  %v440_v52 = vadd.f32 %v1306_v14, %v334_v31 }
  0xe9   : > { %v1297_v62 = vpop.f32.mrf.mxu1 }
  0xea   : > { %v1653_v63 = vpop.f32.mrf.mxu0  ;;  %v337_v10 = vadd.f32 %v1297_v62, %v1287_v33  ;;  %v438_v8 = vadd.f32 %v419_v54, %v326_v45 }
  0xeb   : > { %v328_v0 = vpop.f32.mrf.mxu1 }
  0xec   : > { %v1322_v1 = vpop.f32.mrf.mxu0  ;;  %v329_v56 = vadd.f32 %v328_v0, %v1651_v43  ;;  %v441_v60 = vadd.f32 %v1307_v61, %v337_v10 }
  0xed   : > { %v1312_v2 = vpop.f32.mrf.mxu1 }
  0xee   : > { %v609_v3 = vpop.f32.mrf.mxu0  ;;  %v539_v48 = vadd.f32 %v1312_v2, %v436_v19 }
  0xef   : > { %v506_v4 = vpop.f32.mrf.mxu1 }
  0xf0   : > { %v1323_v7 = vpop.f32.mrf.mxu0  ;;  %v537_v42 = vadd.f32 %v506_v4, %v434_v46  ;;  %v642_v9 = vadd.f32 %v1322_v1, %v539_v48  ;;  %v439_v4 = vadd.f32 %v1653_v63, %v329_v56 }
  0xf1   : > { %v1313_v11 = vpop.f32.mrf.mxu1 }
  0xf2   : > { %v612_v12 = vpop.f32.mrf.mxu0  ;;  %v540_v25 = vadd.f32 %v1313_v11, %v437_v49  ;;  %v640_v34 = vadd.f32 %v609_v3, %v537_v42 }
  0xf3   : > { %v509_v15 = vpop.f32.mrf.mxu1 }
  0xf4   : > { %v1326_v16 = vpop.f32.mrf.mxu0  ;;  %v538_v53 = vadd.f32 %v509_v15, %v435_v5  ;;  %v643_v59 = vadd.f32 %v1323_v7, %v540_v25 }
  0xf5   : > { %v1316_v17 = vpop.f32.mrf.mxu1 }
  0xf6   : > { %v1655_v18 = vpop.f32.mrf.mxu0  ;;  %v543_v13 = vadd.f32 %v1316_v17, %v440_v52  ;;  %v641_v33 = vadd.f32 %v612_v12, %v538_v53 }
  0xf7   : > { %v522_v20 = vpop.f32.mrf.mxu1 }
  0xf8   : > { %v1657_v22 = vpop.f32.mrf.mxu0  ;;  %v541_v1 = vadd.f32 %v522_v20, %v438_v8  ;;  %v646_v54 = vadd.f32 %v1326_v16, %v543_v13 }
  0xf9   : > { %v1317_v23 = vpop.f32.mrf.mxu1 }
  0xfa   : > { %v1659_v24 = vpop.f32.mrf.mxu0  ;;  %v544_v11 = vadd.f32 %v1317_v23, %v441_v60  ;;  %v644_v17 = vadd.f32 %v1655_v18, %v541_v1 }
  0xfb   : > { %v525_v27 = vpop.f32.mrf.mxu1 }
  0xfc   : > { %v1342_v35 = vpop.f32.mrf.mxu0 }
  0xfd   : > { %v1332_v36 = vpop.f32.mrf.mxu1 }
  0xfe   : > { %v814_v38 = vpop.f32.mrf.mxu0  ;;  %v744_v55 = vadd.f32 %v1332_v36, %v642_v9  ;;  %v542_v36 = vadd.f32 %v525_v27, %v439_v4 }
  0xff   : > { %v711_v39 = vpop.f32.mrf.mxu1 }
 0x100   : > { %v1343_v40 = vpop.f32.mrf.mxu0  ;;  %v742_v51 = vadd.f32 %v711_v39, %v640_v34  ;;  %v847_v62 = vadd.f32 %v1342_v35, %v744_v55  ;;  %v647_v35 = vadd.f32 %v1657_v22, %v544_v11  ;;  %v645_v28 = vadd.f32 %v1659_v24, %v542_v36 }
 0x101   : > { %v1333_v41 = vpop.f32.mrf.mxu1 }
 0x102   : > { %v817_v29 = vpop.f32.mrf.mxu0  ;;  %v745_v14 = vadd.f32 %v1333_v41, %v643_v59  ;;  %v845_v32 = vadd.f32 %v814_v38, %v742_v51 }
 0x103   : > { %v714_v30 = vpop.f32.mrf.mxu1 }
 0x104   : > { %v1346_v50 = vpop.f32.mrf.mxu0  ;;  %v743_v43 = vadd.f32 %v714_v30, %v641_v33  ;;  %v848_v12 = vadd.f32 %v1343_v40, %v745_v14 }
 0x105   : > { %v1336_v21 = vpop.f32.mrf.mxu1 }
 0x106   : > { %v830_v6 = vpop.f32.mrf.mxu0  ;;  %v748_v20 = vadd.f32 %v1336_v21, %v646_v54  ;;  %v846_v38 = vadd.f32 %v817_v29, %v743_v43 }
 0x107   : > { %v727_v26 = vpop.f32.mrf.mxu1 }
 0x108   : > { %v1347_v44 = vpop.f32.mrf.mxu0  ;;  %v746_v39 = vadd.f32 %v727_v26, %v644_v17  ;;  %v851_v40 = vadd.f32 %v1346_v50, %v748_v20 }
 0x109   : > { %v1337_v57 = vpop.f32.mrf.mxu1 }
 0x10a   : > { %v833_v58 = vpop.f32.mrf.mxu0  ;;  %v749_v46 = vadd.f32 %v1337_v57, %v647_v35  ;;  %v849_v49 = vadd.f32 %v830_v6, %v746_v39 }
 0x10b   : > { %v730_v2 = vpop.f32.mrf.mxu1 }
 0x10c   : > { %v1362_v3 = vpop.f32.mrf.mxu0  ;;  %v747_v29 = vadd.f32 %v730_v2, %v645_v28  ;;  %v852_v24 = vadd.f32 %v1347_v44, %v749_v46 }
 0x10d   : > { %v1352_v15 = vpop.f32.mrf.mxu1 }
 0x10e   : > { %v950_v0 = vadd.f32 %v1352_v15, %v847_v62  ;;  %v1019_v7 = vpop.f32.mrf.mxu0  ;;  %v850_v10 = vadd.f32 %v833_v58, %v747_v29 }
 0x10f   : > { %v917_v61 = vpop.f32.mrf.mxu1 }
 0x110   : > { %v1052_v63 = vadd.f32 %v1362_v3, %v950_v0  ;;  %v948_v23 = vadd.f32 %v917_v61, %v845_v32  ;;  %v1363_v16 = vpop.f32.mrf.mxu0 }
 0x111   : > { %v1353_v37 = vpop.f32.mrf.mxu1 }
 0x112   : > { %1060 = vst [vmem:[%s1671_s11 + $0x10] sm:$0xff] %v1052_v63  ;;  %v1050_v18 = vadd.f32 %v1019_v7, %v948_v23  ;;  %v951_v27 = vadd.f32 %v1353_v37, %v848_v12  ;;  %v1022_v19 = vpop.f32.mrf.mxu0 }
 0x113   : > { %v920_v41 = vpop.f32.mrf.mxu1 }
 0x114   : > { %1058 = vst [vmem:[%s1671_s11] sm:$0xff] %v1050_v18  ;;  %v1053_v47 = vadd.f32 %v1363_v16, %v951_v27  ;;  %v949_v48 = vadd.f32 %v920_v41, %v846_v38  ;;  %v1366_v30 = vpop.f32.mrf.mxu0 }
 0x115   : > { %v1356_v22 = vpop.f32.mrf.mxu1 }
 0x116   : > { %1061 = vst [vmem:[%s1671_s11 + $0x18] sm:$0xff] %v1053_v47  ;;  %v1051_v31 = vadd.f32 %v1022_v19, %v949_v48  ;;  %v954_v42 = vadd.f32 %v1356_v22, %v851_v40  ;;  %v1035_v45 = vpop.f32.mrf.mxu0 }
 0x117   : > { %v933_v21 = vpop.f32.mrf.mxu1 }
 0x118   : > { %1059 = vst [vmem:[%s1671_s11 + $0x8] sm:$0xff] %v1051_v31  ;;  %v1056_v50 = vadd.f32 %v1366_v30, %v954_v42  ;;  %v952_v5 = vadd.f32 %v933_v21, %v849_v49  ;;  %v1367_v25 = vpop.f32.mrf.mxu0 }
 0x119   : > { %v1357_v9 = vpop.f32.mrf.mxu1 }
 0x11a   : > { %1064 = vst [vmem:[%s1671_s11 + $0x30] sm:$0xff] %v1056_v50  ;;  %v1054_v26 = vadd.f32 %v1035_v45, %v952_v5  ;;  %v955_v52 = vadd.f32 %v1357_v9, %v852_v24  ;;  %v1038_v55 = vpop.f32.mrf.mxu0 }
 0x11b   : > { %v936_v6 = vpop.f32.mrf.mxu1 }
 0x11c   : > { %1062 = vst [vmem:[%s1671_s11 + $0x20] sm:$0xff] %v1054_v26  ;;  %v1057_v34 = vadd.f32 %v1367_v25, %v955_v52  ;;  %v953_v53 = vadd.f32 %v936_v6, %v850_v10 }
 0x11e   : > { %1065 = vst [vmem:[%s1671_s11 + $0x38] sm:$0xff] %v1057_v34  ;;  %v1055_v8 = vadd.f32 %v1038_v55, %v953_v53 }
 0x120   : > { %1063 = vst [vmem:[%s1671_s11 + $0x28] sm:$0xff] %v1055_v8 }
 0x121 PF: > { %s12_s9 = sadd.s32 1, %s1395_s9  }
 0x122   : > { %p9_p5 = scmp.ge.s32.totalorder %s12_s9, 4  }
 0x124   :  { %11 = sbr.rel (!%p9_p5) target bundleno = 1 (0x1), region = 71 }

</bundles_post_ra>
